<compile_context>
chip_gen: v6e
topology: v6e:2x2x1
jax: 0.10.0
libtpu: 0.0.40
codegen_flags: <defaults>
</compile_context>

<pallas_src>
import functools

import jax
import jax.numpy as jnp
from jax import lax
from jax.experimental import pallas as pl
from jax.experimental.pallas import tpu as pltpu

GAN_LOSS_WEIGHT = 1.0
DRIFT_LOSS_WEIGHT = 0.001

_LANES = 128
_SUBLANES = 8
_TARGET_TILE_BYTES = 2 * 1024 * 1024     # per input, per grid step (native dtype)
_VMEM_LIMIT_BYTES = 48 * 1024 * 1024     # windows + in-kernel f32 temporaries
_PALLAS_MIN_ELEMS = 16384                # below this, plain XLA is strictly cheaper


def _round_up(x, m):
    return ((x + m - 1) // m) * m


def _granule(dtype):
    # Packed sublane granule: 8 rows for 4-byte dtypes, 16 for 2-byte, 32 for 1-byte.
    return max(_SUBLANES, 32 // jnp.dtype(dtype).itemsize)


def _max_chunk_rows(dtype):
    return _TARGET_TILE_BYTES // (_LANES * jnp.dtype(dtype).itemsize)


def _combine(sum_fake, sum_real, sum_real_sq, n_fake, n_real, w_gan, w_drift):
    # Note: empty inputs (n == 0) give nan, matching torch .mean() of an empty tensor.
    gan_loss = sum_fake / n_fake - sum_real / n_real
    drift = sum_real_sq / n_real
    return w_gan * gan_loss + w_drift * drift


def _as_lane_major(x, min_rows):
    """(rows, 128) lane-dense view of x, plus its row count.

    When x.size is a multiple of 128 and covers at least one chunk this is a
    free reshape of the original buffer (no extra HBM traffic); otherwise the
    array is zero-padded (exact zeros keep the sums unchanged).
    """
    flat = x.reshape(-1)
    n = flat.shape[0]
    rows = pl.cdiv(n, _LANES)
    if n % _LANES == 0 and rows >= min_rows:
        return flat.reshape(rows, _LANES), rows
    rows = max(rows, min_rows)
    flat = jnp.pad(flat, (0, rows * _LANES - n))
    return flat.reshape(rows, _LANES), rows


def _make_in_index_map(chunks_x, chunks_per_core, total_chunks):
    """Block-index map along the chunk axis, clamped to the array's extent."""
    if chunks_x >= total_chunks:          # this array covers every grid step
        return lambda c, i: (c * chunks_per_core + i, 0)
    last = chunks_x - 1                   # shorter array: revisit its last block
    return lambda c, i: (jnp.minimum(c * chunks_per_core + i, last), 0)


def _disc_sums_kernel(fake_ref, real_ref, out_ref, *, chunk_rows,
                      rows_fake, rows_real, mask_fake, mask_real):
    """Accumulate [sum(fake), sum(real), sum(real^2)] into a lane-dense
    (3, 8, 128) output block that stays VMEM-resident across the chunk axis."""
    i = pl.program_id(1)

    @pl.when(i == 0)
    def _init():
        out_ref[...] = jnp.zeros_like(out_ref)

    fake = fake_ref[...].astype(jnp.float32)
    real = real_ref[...].astype(jnp.float32)

    if mask_fake or mask_real:
        # Rows past an input's true extent (ragged last block / clamped
        # revisits) hold unspecified data; zero them before accumulating.
        gchunk = pl.program_id(0) * pl.num_programs(1) + i
        row0 = gchunk * chunk_rows
        local_row = lax.broadcasted_iota(jnp.int32, (chunk_rows, _LANES), 0)
        if mask_fake:
            fake = jnp.where(local_row < rows_fake - row0, fake, 0.0)
        if mask_real:
            real = jnp.where(local_row < rows_real - row0, real, 0.0)

    # Deferred cross-lane reduction: fold sublane groups with pure VPU adds;
    # the (8, 128) -> scalar reduce happens once, outside the kernel.
    groups = chunk_rows // _SUBLANES
    out_ref[0, :, :] += jnp.sum(fake.reshape(groups, _SUBLANES, _LANES), axis=0)
    out_ref[1, :, :] += jnp.sum(real.reshape(groups, _SUBLANES, _LANES), axis=0)
    out_ref[2, :, :] += jnp.sum((real * real).reshape(groups, _SUBLANES, _LANES),
                                axis=0)


def discriminator_loss(dis, fake_imgs, real_imgs, fake_outs, real_outs,
                       n_block=None, alpha=None, *,
                       gan_loss_weight=GAN_LOSS_WEIGHT,
                       drift_loss_weight=DRIFT_LOSS_WEIGHT):
    """JAX/Pallas equivalent of DiscriminatorLoss.forward.

    `dis`, `fake_imgs`, `real_imgs`, `n_block`, `alpha` are accepted for
    interface parity but (exactly as in the reference forward) do not enter
    the loss math.
    """
    del dis, fake_imgs, real_imgs, n_block, alpha

    fake_outs = jnp.asarray(fake_outs)
    real_outs = jnp.asarray(real_outs)
    n_fake = int(fake_outs.size)
    n_real = int(real_outs.size)

    # Tiny / empty inputs (the typical (batch, 1) critic outputs): a fused XLA
    # reduction beats the pallas_call launch + layout plumbing on all chips.
    if max(n_fake, n_real) < _PALLAS_MIN_ELEMS or min(n_fake, n_real) == 0:
        f = fake_outs.reshape(-1).astype(jnp.float32)
        r = real_outs.reshape(-1).astype(jnp.float32)
        return _combine(jnp.sum(f), jnp.sum(r), jnp.sum(r * r),
                        n_fake, n_real, gan_loss_weight, drift_loss_weight)

    # ---- chunk geometry (dtype-aware) ----
    gran = max(_granule(fake_outs.dtype), _granule(real_outs.dtype))
    rows_f0 = pl.cdiv(n_fake, _LANES)
    rows_r0 = pl.cdiv(n_real, _LANES)
    rows_max = max(rows_f0, rows_r0)
    chunk_rows = min(min(_max_chunk_rows(fake_outs.dtype),
                         _max_chunk_rows(real_outs.dtype)),
                     _round_up(rows_max, gran))   # positive multiple of `gran`

    num_chunks = pl.cdiv(rows_max, chunk_rows)
    core_splits = 2 if num_chunks >= 2 else 1     # v7x: one half per TensorCore
    chunks_per_core = pl.cdiv(num_chunks, core_splits)
    total_chunks = core_splits * chunks_per_core

    fake2d, rows_f = _as_lane_major(fake_outs, chunk_rows)
    real2d, rows_r = _as_lane_major(real_outs, chunk_rows)
    chunks_f = pl.cdiv(rows_f, chunk_rows)
    chunks_r = pl.cdiv(rows_r, chunk_rows)

    kernel = functools.partial(
        _disc_sums_kernel,
        chunk_rows=chunk_rows,
        rows_fake=rows_f, rows_real=rows_r,
        mask_fake=rows_f < total_chunks * chunk_rows,
        mask_real=rows_r < total_chunks * chunk_rows)

    partials = pl.pallas_call(
        kernel,
        out_shape=jax.ShapeDtypeStruct((core_splits, 3, _SUBLANES, _LANES),
                                       jnp.float32),
        grid_spec=pltpu.PrefetchScalarGridSpec(
            num_scalar_prefetch=0,
            grid=(core_splits, chunks_per_core),
            in_specs=[
                pl.BlockSpec((chunk_rows, _LANES),
                             _make_in_index_map(chunks_f, chunks_per_core,
                                                total_chunks)),
                pl.BlockSpec((chunk_rows, _LANES),
                             _make_in_index_map(chunks_r, chunks_per_core,
                                                total_chunks)),
            ],
            out_specs=pl.BlockSpec((None, 3, _SUBLANES, _LANES),
                                   lambda c, i: (c, 0, 0, 0)),
        ),
        compiler_params=pltpu.CompilerParams(
            dimension_semantics=("parallel", "arbitrary"),
            vmem_limit_bytes=_VMEM_LIMIT_BYTES),
    )(fake2d, real2d)

    # Tiny epilogue: cross-core + cross-lane reduce of 3*8*128 floats, then the
    # weighted combine with the TRUE element counts (zero padding is exact).
    sums = jnp.sum(partials, axis=(0, 2, 3))
    return _combine(sums[0], sums[1], sums[2], n_fake, n_real,
                    gan_loss_weight, drift_loss_weight)


def _reference_loss(fake_outs, real_outs,
                    w_gan=GAN_LOSS_WEIGHT, w_drift=DRIFT_LOSS_WEIGHT):
    f = jnp.asarray(fake_outs).astype(jnp.float32)
    r = jnp.asarray(real_outs).astype(jnp.float32)
    return w_gan * (f.mean() - r.mean()) + w_drift * (r ** 2).mean()


if __name__ == "__main__":
    key = jax.random.PRNGKey(0)
    k = jax.random.split(key, 8)

    # 1) Typical ProGAN shapes: (batch, 1) critic outputs + NCHW images (the
    #    images enter the signature but, as in the reference forward, not the
    #    math).  Small N -> fused-XLA bypass path.
    batch, ch, hw = 2, 3, 16
    fake_imgs = jax.random.normal(k[0], (batch, ch, hw, hw), jnp.float32)
    real_imgs = jax.random.normal(k[1], (batch, ch, hw, hw), jnp.float32)
    fake_outs = jax.random.normal(k[2], (batch, 1), jnp.float32)
    real_outs = jax.random.normal(k[3], (batch, 1), jnp.float32)
    small = discriminator_loss(None, fake_imgs, real_imgs, fake_outs, real_outs,
                               n_block=4, alpha=0.5)
    small = jax.block_until_ready(small)
    ref_small = _reference_loss(fake_outs, real_outs)
    assert jnp.allclose(small, ref_small, atol=1e-6, rtol=1e-6), (small, ref_small)

    # 2) f32, exact multiple of the chunk size: exercises the zero-copy reshape
    #    path, two chunks, the 2-way core split, and the no-masking fast path.
    n = 4096 * 128 * 2
    f32_fake = jax.random.normal(k[4], (n, 1), jnp.float32)
    f32_real = jax.random.normal(k[5], (n, 1), jnp.float32)
    loss_f32 = jax.block_until_ready(
        discriminator_loss(None, None, None, f32_fake, f32_real))
    ref_f32 = _reference_loss(f32_fake, f32_real)
    assert jnp.allclose(loss_f32, ref_f32, atol=1e-5, rtol=1e-4), (loss_f32, ref_f32)

    # 3) bf16, ragged and unequal sizes: exercises the zero-pad path, clamped
    #    index maps, in-kernel row masking and the multi-chunk accumulators.
    n_fake_big = 8192 * 128 * 2 + 5
    n_real_big = 8192 * 128 * 3 + 37
    bf_fake = jax.random.normal(k[6], (n_fake_big,), jnp.float32).astype(jnp.bfloat16)
    bf_real = jax.random.normal(k[7], (n_real_big,), jnp.float32).astype(jnp.bfloat16)
    loss_bf = jax.block_until_ready(
        discriminator_loss(None, None, None, bf_fake, bf_real))
    ref_bf = _reference_loss(bf_fake, bf_real)
    assert jnp.allclose(loss_bf, ref_bf, atol=1e-4, rtol=1e-3), (loss_bf, ref_bf)

    print("KERNEL_OK")
</pallas_src>

<mosaic_0001>
module attributes {stable_mosaic.version = 11 : i64} {
  func.func @_disc_sums_kernel(%arg0: i32, %arg1: i32, %arg2: memref<4096x128xf32, #tpu.memory_space<vmem>>, %arg3: memref<4096x128xf32, #tpu.memory_space<vmem>>, %arg4: memref<1x3x8x128xf32, #tpu.memory_space<vmem>>) attributes {dimension_semantics = [#tpu.dimension_semantics<parallel>, #tpu.dimension_semantics<arbitrary>], iteration_bounds = array<i64: 2, 1>, scalar_prefetch = 0 : i64, scratch_operands = 0 : i64, tpu.core_type = #tpu.core_type<tc>, window_params = [{transform_indices = @transform_0, window_bounds = array<i64: 4096, 128>}, {transform_indices = @transform_1, window_bounds = array<i64: 4096, 128>}, {transform_indices = @transform_2, window_bounds = array<i64: 1, 3, 8, 128>}]} {
    %c0_i32 = arith.constant 0 : i32
    %0 = arith.cmpi eq, %arg1, %c0_i32 : i32
    %1 = arith.extui %0 : i1 to i32
    %c0_i32_0 = arith.constant 0 : i32
    %2 = arith.cmpi ne, %1, %c0_i32_0 : i32
    scf.if %2 {
      %cst_28 = arith.constant 0.000000e+00 : f32
      %30 = vector.broadcast %cst_28 : f32 to vector<3x8x128xf32>
      %c0_29 = arith.constant 0 : index
      %c0_30 = arith.constant 0 : index
      %c0_31 = arith.constant 0 : index
      %c0_32 = arith.constant 0 : index
      %31 = vector.load %arg4[%c0_29, %c0_30, %c0_31, %c0_32] : memref<1x3x8x128xf32, #tpu.memory_space<vmem>>, vector<1x3x8x128xf32>
      %32 = vector.shape_cast %31 : vector<1x3x8x128xf32> to vector<3x8x128xf32>
      %33 = vector.shape_cast %30 : vector<3x8x128xf32> to vector<1x3x8x128xf32>
      tpu.vector_store %arg4[%c0_29, %c0_30, %c0_31, %c0_32], %33 {strides = array<i32>} : memref<1x3x8x128xf32, #tpu.memory_space<vmem>>, vector<1x3x8x128xf32>,
    } else {
    }
    %c0 = arith.constant 0 : index
    %c0_1 = arith.constant 0 : index
    %3 = vector.load %arg2[%c0, %c0_1] : memref<4096x128xf32, #tpu.memory_space<vmem>>, vector<4096x128xf32>
    %c0_2 = arith.constant 0 : index
    %c0_3 = arith.constant 0 : index
    %4 = vector.load %arg3[%c0_2, %c0_3] : memref<4096x128xf32, #tpu.memory_space<vmem>>, vector<4096x128xf32>
    %c0_4 = arith.constant 0 : index
    %c0_5 = arith.constant 0 : index
    %c0_6 = arith.constant 0 : index
    %c0_7 = arith.constant 0 : index
    %5 = vector.load %arg4[%c0_4, %c0_5, %c0_6, %c0_7] : memref<1x3x8x128xf32, #tpu.memory_space<vmem>>, vector<1x1x8x128xf32>
    %6 = vector.shape_cast %5 : vector<1x1x8x128xf32> to vector<8x128xf32>
    %7 = vector.shape_cast %3 : vector<4096x128xf32> to vector<512x8x128xf32>
    %cst = arith.constant dense<0.000000e+00> : vector<8x128xf32>
    %8 = vector.multi_reduction <add>, %7, %cst [0] : vector<512x8x128xf32> to vector<8x128xf32>
    %9 = arith.addf %6, %8 : vector<8x128xf32>
    %c0_8 = arith.constant 0 : index
    %c0_9 = arith.constant 0 : index
    %c0_10 = arith.constant 0 : index
    %c0_11 = arith.constant 0 : index
    %10 = vector.load %arg4[%c0_8, %c0_9, %c0_10, %c0_11] : memref<1x3x8x128xf32, #tpu.memory_space<vmem>>, vector<1x1x8x128xf32>
    %11 = vector.shape_cast %10 : vector<1x1x8x128xf32> to vector<8x128xf32>
    %12 = vector.shape_cast %9 : vector<8x128xf32> to vector<1x1x8x128xf32>
    tpu.vector_store %arg4[%c0_8, %c0_9, %c0_10, %c0_11], %12 {strides = array<i32>} : memref<1x3x8x128xf32, #tpu.memory_space<vmem>>, vector<1x1x8x128xf32>,
    %c0_12 = arith.constant 0 : index
    %c1 = arith.constant 1 : index
    %c0_13 = arith.constant 0 : index
    %c0_14 = arith.constant 0 : index
    %13 = vector.load %arg4[%c0_12, %c1, %c0_13, %c0_14] : memref<1x3x8x128xf32, #tpu.memory_space<vmem>>, vector<1x1x8x128xf32>
    %14 = vector.shape_cast %13 : vector<1x1x8x128xf32> to vector<8x128xf32>
    %15 = vector.shape_cast %4 : vector<4096x128xf32> to vector<512x8x128xf32>
    %cst_15 = arith.constant dense<0.000000e+00> : vector<8x128xf32>
    %16 = vector.multi_reduction <add>, %15, %cst_15 [0] : vector<512x8x128xf32> to vector<8x128xf32>
    %17 = arith.addf %14, %16 : vector<8x128xf32>
    %c0_16 = arith.constant 0 : index
    %c1_17 = arith.constant 1 : index
    %c0_18 = arith.constant 0 : index
    %c0_19 = arith.constant 0 : index
    %18 = vector.load %arg4[%c0_16, %c1_17, %c0_18, %c0_19] : memref<1x3x8x128xf32, #tpu.memory_space<vmem>>, vector<1x1x8x128xf32>
    %19 = vector.shape_cast %18 : vector<1x1x8x128xf32> to vector<8x128xf32>
    %20 = vector.shape_cast %17 : vector<8x128xf32> to vector<1x1x8x128xf32>
    tpu.vector_store %arg4[%c0_16, %c1_17, %c0_18, %c0_19], %20 {strides = array<i32>} : memref<1x3x8x128xf32, #tpu.memory_space<vmem>>, vector<1x1x8x128xf32>,
    %c0_20 = arith.constant 0 : index
    %c2 = arith.constant 2 : index
    %c0_21 = arith.constant 0 : index
    %c0_22 = arith.constant 0 : index
    %21 = vector.load %arg4[%c0_20, %c2, %c0_21, %c0_22] : memref<1x3x8x128xf32, #tpu.memory_space<vmem>>, vector<1x1x8x128xf32>
    %22 = vector.shape_cast %21 : vector<1x1x8x128xf32> to vector<8x128xf32>
    %23 = arith.mulf %4, %4 : vector<4096x128xf32>
    %24 = vector.shape_cast %23 : vector<4096x128xf32> to vector<512x8x128xf32>
    %cst_23 = arith.constant dense<0.000000e+00> : vector<8x128xf32>
    %25 = vector.multi_reduction <add>, %24, %cst_23 [0] : vector<512x8x128xf32> to vector<8x128xf32>
    %26 = arith.addf %22, %25 : vector<8x128xf32>
    %c0_24 = arith.constant 0 : index
    %c2_25 = arith.constant 2 : index
    %c0_26 = arith.constant 0 : index
    %c0_27 = arith.constant 0 : index
    %27 = vector.load %arg4[%c0_24, %c2_25, %c0_26, %c0_27] : memref<1x3x8x128xf32, #tpu.memory_space<vmem>>, vector<1x1x8x128xf32>
    %28 = vector.shape_cast %27 : vector<1x1x8x128xf32> to vector<8x128xf32>
    %29 = vector.shape_cast %26 : vector<8x128xf32> to vector<1x1x8x128xf32>
    tpu.vector_store %arg4[%c0_24, %c2_25, %c0_26, %c0_27], %29 {strides = array<i32>} : memref<1x3x8x128xf32, #tpu.memory_space<vmem>>, vector<1x1x8x128xf32>,
    return
  }
  func.func @transform_0(%arg0: i32, %arg1: i32) -> (i32, i32) {
    %c1_i32 = arith.constant 1 : i32
    %0 = arith.muli %arg0, %c1_i32 : i32
    %1 = arith.addi %0, %arg1 : i32
    %c0_i32 = arith.constant 0 : i32
    %c0_i32_0 = arith.constant 0 : i32
    return %1, %c0_i32 : i32, i32
  }
  func.func @transform_1(%arg0: i32, %arg1: i32) -> (i32, i32) {
    %c1_i32 = arith.constant 1 : i32
    %0 = arith.muli %arg0, %c1_i32 : i32
    %1 = arith.addi %0, %arg1 : i32
    %c0_i32 = arith.constant 0 : i32
    %c0_i32_0 = arith.constant 0 : i32
    return %1, %c0_i32 : i32, i32
  }
  func.func @transform_2(%arg0: i32, %arg1: i32) -> (i32, i32, i32, i32) {
    %c0_i32 = arith.constant 0 : i32
    %c0_i32_0 = arith.constant 0 : i32
    %c0_i32_1 = arith.constant 0 : i32
    %c0_i32_2 = arith.constant 0 : i32
    return %arg0, %c0_i32, %c0_i32_0, %c0_i32_1 : i32, i32, i32, i32
  }
}

</mosaic_0001>

<bundles_post_ra>
// kernel: tpu_custom_call.1
= control target key start
LH: loop header
LB: loop body
LE: loop exit
PB: predicated region body
PF: predicated region fallthrough
CT: control target
= control target key end

     0   :  { %7 = vsyncpa [#allocation3], 0  ;;  %s7057_s0 = inlined_call_operand.hbm [shape: f32[8192,128], index: 0, kind: input, shape index: {}]   ;;  %s7058_s1 = inlined_call_operand.hbm [shape: f32[8192,128], index: 1, kind: input, shape index: {}]   ;;  %s7059_s2 = inlined_call_operand.hbm [shape: f32[2,3,8,128], index: 2, kind: output, shape index: {}]  }
   0x1   :  { %9 = vsyncpa [#allocation3 + $0x1], 0 }
   0x2   :  { %10 = vsyncpa [#allocation6], 0 }
   0x3   :  { %12 = vsyncpa [#allocation6 + $0x1], 0 }
   0x4   :  { %13 = vsyncpa [#allocation4], 0 }
   0x5   :  { %15 = vsyncpa [#allocation4 + $0x1], 0  ;;  %s3691_s9 = smov 0   ;;  %s3693_s10 = smov 0  }
   0x6   :  { %s3695_s11 = smov 0   ;;  %s3697_s12 = smov 0  }
   0x7   :  { %s3699_s13 = smov 0   ;;  %s3701_s14 = smov 0  }
   0x8 LB: > { %s3431_s15 = sadd.s32 4294967295, %s3667_s14   ;;  %s3432_s16 = sadd.s32 4294967294, %s3667_s14   ;;  %s3667_s14 = sphi %s3701_s14, %s21_s14   ;;  %s3663_s13 = sphi %s3699_s13, %s7070_s13   ;;  %s3659_s12 = sphi %s3697_s12, %s7069_s12   ;;  %s3655_s11 = sphi %s3695_s11, %s7068_s11   ;;  %s3651_s10 = sphi %s3693_s10, %s7067_s10   ;;  %s3647_s9 = sphi %s3691_s9, %s7066_s9  }
   0x9   : > { %s33_s17 = sadd.s32 1, %s3663_s13  ;;  %s42_s18 = sadd.s32 1, %s3655_s11 }
   0xa   : > { %p35_p0 = scmp.ge.s32.totalorder %s33_s17, 2  ;;  %p49_p1 = scmp.ne.s32.totalorder %s3655_s11, %s3651_s10 }
   0xb   : > { %p50_p2 = scmp.eq.s32.totalorder %s3667_s14, 0  ;;  %p55_p3 = scmp.ne.s32.totalorder %s3651_s10, %s3647_s9 }
   0xc   : > { %s7072_s17 = smov (%p35_p0, %s33_s17), 0  ;;  %p56_p5 = scmp.eq.s32.totalorder %s3431_s15, 0 }
   0xd   : > { %p3732_p4 = por %p50_p2, %p49_p1  ;;  %s39_s20 = ssub.s32 %s3663_s13, %s7072_s17 }
   0xe   : > { %p107_p6 = scmp.eq.s32.totalorder %s3431_s15, 1  ;;  %p40_p7 = scmp.eq.s32.totalorder %s39_s20, 0 }
   0xf   : > { %p3738_p8 = por %p56_p5, %p55_p3  ;;  %p113_p10 = scmp.eq.s32.totalorder %s3432_s16, 1 }
  0x10   : > { %p3742_p9 = por %p107_p6, %p49_p1  ;;  %p3434_p12 = scmp.ge.s32.totalorder %s3667_s14, 2 }
  0x11   : > { %s3747_s23 = scalar_select %p40_p7, %s3655_s11, %s42_s18  }
  0x12   : > { %p3749_p11 = por %p113_p10, %p55_p3  ;;  %p3472_p13 = scmp.lt.s32.totalorder %s3667_s14, 2 }
  0x13   : > { %s3756_s25 = sand.u32 1, %s3655_s11   ;;  %s3451_s27 = sshll.u32 %s3663_s13, 16 }
  0x14   : > { %s3435_s26 = sshll.u32 %s3756_s25, 12  ;;  %s144_s30 = scalar_lea.hbm %s7057_s0, %s3451_s27 }
  0x15   : > { %s137_s3 = scalar_lea.vmem [#allocation2], %s3435_s26  ;;  %p3769_p0 = pnand %p3472_p13, %p3732_p4 }
  0x16   : > { %s145_s4 = sshll.u32 %s137_s3, 4  ;;  %p3441_p1 = scmp.ge.s32.totalorder %s3667_s14, 1  ;;  %s146_s4 = int_to_ptr.vmem [resolvable:$true] %s145_s4 }
  0x17   : > { %s134_s6 = scalar_lea.sflag [#allocation3], %s3756_s25  ;;  %p3529_p2 = pneg %p3769_p0 }
  0x18   : > { %s3540_s7 = scalar_lea.vmem %s146_s4, 65536  ;;  %s3669_s8 = smov [#allocation2]  }
  0x19   : > { %p3541_p3 = scmp.ne.s32.totalorder %s146_s4, %s3540_s7  ;;  %s3545_s15 = sshll.u32 %s3669_s8, 4  ;;  %s3546_s15 = int_to_ptr.vmem [resolvable:$false] %s3545_s15 }
  0x1a   : > { %s3547_s16 = scalar_lea.vmem %s3546_s15, 131072  ;;  %p3548_p4 = scmp.lt.s32.totalorder %s146_s4, %s3546_s15 }
  0x1b   : > { %p3543_p5 = pnand %p3541_p3, %p3529_p2  ;;  %p3549_p7 = scmp.lt.s32.totalorder %s3547_s16, %s3540_s7 }
  0x1d   : > { %p3544_p6 = pneg %p3543_p5  ;;  %p3550_p10 = por %p3549_p7, %p3548_p4 }
  0x1f   : > { %p3551_p13 = pnand %p3550_p10, %p3544_p6 }
  0x21   : > { %3554 = shalt.err (!%p3551_p13)
}
  0x22   : > { %s3670_s18 = smov 128   ;;  %s3671_s19 = smov 8  }
  0x23   : > { %3464 = dma.hbm_to_vmem [thread:$0]  (!%p3769_p0), %s144_s30, 65536, %s146_s4, %s134_s6, %s3670_s18, %s3670_s18, %s3671_s19  }
  0x24   : > { %p175_p3 = scmp.lt.s32.totalorder %s3667_s14, 3  ;;  %s166_s29 = scalar_lea.hbm %s7058_s1, %s3451_s27 }
  0x25   : > { %s159_s7 = scalar_lea.vmem [#allocation5], %s3435_s26  ;;  %s156_s15 = scalar_lea.sflag [#allocation6], %s3756_s25 }
  0x26   : > { %p3790_p5 = pnand %p3441_p1, %p175_p3  ;;  %s167_s8 = sshll.u32 %s159_s7, 4  ;;  %s168_s8 = int_to_ptr.vmem [resolvable:$true] %s167_s8 }
  0x27   : > { %s3568_s16 = scalar_lea.vmem %s168_s8, 65536  ;;  %s3672_s30 = smov [#allocation5]  }
  0x28   : > { %p3569_p6 = scmp.ne.s32.totalorder %s168_s8, %s3568_s16  ;;  %s3573_s4 = sshll.u32 %s3672_s30, 4  ;;  %s3574_s4 = int_to_ptr.vmem [resolvable:$false] %s3573_s4 }
  0x29   : > { %s3575_s27 = scalar_lea.vmem %s3574_s4, 131072  ;;  %p3576_p10 = scmp.lt.s32.totalorder %s168_s8, %s3574_s4 }
  0x2a   : > { %p3571_p4 = pnand %p3569_p6, %p3529_p2  ;;  %p3577_p1 = scmp.lt.s32.totalorder %s3575_s27, %s3568_s16 }
  0x2c   : > { %p3572_p7 = pneg %p3571_p4  ;;  %p3578_p13 = por %p3577_p1, %p3576_p10 }
  0x2e   : > { %p3579_p3 = pnand %p3578_p13, %p3572_p7 }
  0x30   : > { %3582 = shalt.err (!%p3579_p3)
}
  0x31   : > { %3467 = dma.hbm_to_vmem [thread:$0]  (!%p3769_p0), %s166_s29, 65536, %s168_s8, %s156_s15, %s3670_s18, %s3670_s18, %s3671_s19  }
  0x32   : > { %179 = sbr.rel (%p3790_p5) target bundleno = 1229 (0x4cd), region = 28  ;;  %s3805_s25 = sand.u32 (!%p3790_p5), 1, %s3651_s10  }
  0x33   : > { %s3442_s26 = sshll.u32 (!%p3790_p5), %s3805_s25, 12  ;;  %s182_s6 = scalar_lea.sflag (!%p3790_p5), [#allocation3], %s3805_s25 }
  0x34   : > { %s3809_s20 = scalar_lea.vmem (!%p3790_p5), [#allocation2], %s3442_s26 }
  0x37   : > { %3634 = dma.done.wait (%p3738_p8), %s182_s6, 65536  }
  0x38   : > { %3636 = vsyncadd (%p3738_p8), %s182_s6, 4294901760  ;;  %s191_s5 = scalar_lea.sflag [#allocation6], %s3805_s25  ;;  %s3816_s18 = scalar_lea.vmem [#allocation5], %s3442_s26 }
  0x39   : > { %3638 = dma.done.wait (%p3738_p8), %s191_s5, 65536  }
  0x3a   : > { %3640 = vsyncadd (%p3738_p8), %s191_s5, 4294901760  ;;  %v231_v0 = vld [vmem:[%s3809_s20] sm:$0xff]  ;;  %v232_v1 = vld [vmem:[%s3809_s20 + $0x8] sm:$0xff]  ;;  %s3453_s21 = smul.u32 24, %s3805_s25  ;;  %s3312_s15 = scalar_lea.sflag [#allocation4], %s3805_s25 }
  0x3b   : > { %v233_v2 = vld [vmem:[%s3809_s20 + $0x10] sm:$0xff]  ;;  %v1256_v3 = vadd.f32 %v232_v1, %v231_v0  ;;  %v234_v4 = vld [vmem:[%s3809_s20 + $0x18] sm:$0xff]  ;;  %v235_v6 = vld [vmem:[%s3809_s20 + $0x20] sm:$0xff]  ;;  %s3454_s28 = smul.u32 384, %s3659_s12  ;;  %s3673_s12 = smov [#allocation7]  }
  0x3c   : > { %v236_v8 = vld [vmem:[%s3809_s20 + $0x28] sm:$0xff]  ;;  %v237_v10 = vld [vmem:[%s3809_s20 + $0x30] sm:$0xff]  ;;  %v238_v12 = vld [vmem:[%s3809_s20 + $0x38] sm:$0xff]  ;;  %s6934_s19 = scalar_lea.vmem [#allocation7], %s3453_s21  ;;  %s3587_s30 = sshll.u32 %s3673_s12, 4  ;;  %s3588_s30 = int_to_ptr.vmem [resolvable:$false] %s3587_s30 }
  0x3d   : > { %v1257_v5 = vadd.f32 %v1256_v3, %v233_v2  ;;  %v239_v14 = vld [vmem:[%s3809_s20 + $0x40] sm:$0xff]  ;;  %v240_v16 = vld [vmem:[%s3809_s20 + $0x48] sm:$0xff]  ;;  %v241_v18 = vld [vmem:[%s3809_s20 + $0x50] sm:$0xff]  ;;  %s3325_s29 = sshll.u32 %s6934_s19, 4  ;;  %s7006_s8 = scalar_lea.hbm %s7059_s2, %s3454_s28  ;;  %s7008_s29 = int_to_ptr.vmem [resolvable:$true] %s3325_s29 }
  0x3e   : > { %v242_v20 = vld [vmem:[%s3809_s20 + $0x58] sm:$0xff]  ;;  %v243_v22 = vld [vmem:[%s3809_s20 + $0x60] sm:$0xff]  ;;  %v244_v24 = vld [vmem:[%s3809_s20 + $0x68] sm:$0xff]  ;;  %s3583_s16 = scalar_lea.vmem %s7008_s29, 384  ;;  %s3589_s4 = scalar_lea.vmem %s3588_s30, 768 }
  0x3f   : > { %v1258_v7 = vadd.f32 %v1257_v5, %v234_v4  ;;  %v245_v26 = vld [vmem:[%s3809_s20 + $0x70] sm:$0xff]  ;;  %v246_v28 = vld [vmem:[%s3809_s20 + $0x78] sm:$0xff]  ;;  %v247_v30 = vld [vmem:[%s3809_s20 + $0x80] sm:$0xff]  ;;  %p3584_p8 = scmp.ne.s32.totalorder %s7008_s29, %s3583_s16  ;;  %p3590_p5 = scmp.lt.s32.totalorder %s7008_s29, %s3588_s30 }
  0x40   : > { %v248_v32 = vld [vmem:[%s3809_s20 + $0x88] sm:$0xff]  ;;  %v249_v34 = vld [vmem:[%s3809_s20 + $0x90] sm:$0xff]  ;;  %v250_v36 = vld [vmem:[%s3809_s20 + $0x98] sm:$0xff]  ;;  %p3591_p6 = scmp.lt.s32.totalorder %s3589_s4, %s3583_s16 }
  0x41   : > { %v1259_v9 = vadd.f32 %v1258_v7, %v235_v6  ;;  %v251_v38 = vld [vmem:[%s3809_s20 + $0xa0] sm:$0xff]  ;;  %v252_v40 = vld [vmem:[%s3809_s20 + $0xa8] sm:$0xff]  ;;  %v253_v42 = vld [vmem:[%s3809_s20 + $0xb0] sm:$0xff]  ;;  %p3585_p0 = pnand %p3584_p8, %p3742_p9 }
  0x42   : > { %v254_v44 = vld [vmem:[%s3809_s20 + $0xb8] sm:$0xff]  ;;  %v255_v46 = vld [vmem:[%s3809_s20 + $0xc0] sm:$0xff]  ;;  %v256_v48 = vld [vmem:[%s3809_s20 + $0xc8] sm:$0xff]  ;;  %p3592_p4 = por %p3591_p6, %p3590_p5 }
  0x43   : > { %v1260_v11 = vadd.f32 %v1259_v9, %v236_v8  ;;  %v257_v50 = vld [vmem:[%s3809_s20 + $0xd0] sm:$0xff]  ;;  %v258_v52 = vld [vmem:[%s3809_s20 + $0xd8] sm:$0xff]  ;;  %v259_v54 = vld [vmem:[%s3809_s20 + $0xe0] sm:$0xff]  ;;  %p3586_p2 = pneg %p3585_p0 }
  0x44   : > { %v260_v56 = vld [vmem:[%s3809_s20 + $0xe8] sm:$0xff]  ;;  %v261_v58 = vld [vmem:[%s3809_s20 + $0xf0] sm:$0xff]  ;;  %v262_v60 = vld [vmem:[%s3809_s20 + $0xf8] sm:$0xff] }
  0x45   : > { %v1261_v13 = vadd.f32 %v1260_v11, %v237_v10  ;;  %v263_v62 = vld [vmem:[%s3809_s20 + $0x100] sm:$0xff]  ;;  %v264_v0 = vld [vmem:[%s3809_s20 + $0x108] sm:$0xff]  ;;  %v265_v2 = vld [vmem:[%s3809_s20 + $0x110] sm:$0xff]  ;;  %p3593_p7 = pnand %p3592_p4, %p3586_p2 }
  0x46   : > { %v266_v4 = vld [vmem:[%s3809_s20 + $0x118] sm:$0xff]  ;;  %v267_v6 = vld [vmem:[%s3809_s20 + $0x120] sm:$0xff]  ;;  %v268_v8 = vld [vmem:[%s3809_s20 + $0x128] sm:$0xff] }
  0x47   : > { %v1262_v15 = vadd.f32 %v1261_v13, %v238_v12  ;;  %v269_v10 = vld [vmem:[%s3809_s20 + $0x130] sm:$0xff]  ;;  %v270_v12 = vld [vmem:[%s3809_s20 + $0x138] sm:$0xff] }
  0x49   : > { %v1263_v17 = vadd.f32 %v1262_v15, %v239_v14  ;;  %v271_v14 = vld [vmem:[%s3809_s20 + $0x140] sm:$0xff] }
  0x4b   : > { %v1264_v19 = vadd.f32 %v1263_v17, %v240_v16  ;;  %v272_v16 = vld [vmem:[%s3809_s20 + $0x148] sm:$0xff] }
  0x4d   : > { %v1265_v21 = vadd.f32 %v1264_v19, %v241_v18  ;;  %v273_v18 = vld [vmem:[%s3809_s20 + $0x150] sm:$0xff] }
  0x4f   : > { %v1266_v23 = vadd.f32 %v1265_v21, %v242_v20  ;;  %v274_v20 = vld [vmem:[%s3809_s20 + $0x158] sm:$0xff] }
  0x51   : > { %v1267_v25 = vadd.f32 %v1266_v23, %v243_v22  ;;  %v275_v22 = vld [vmem:[%s3809_s20 + $0x160] sm:$0xff] }
  0x53   : > { %v1268_v27 = vadd.f32 %v1267_v25, %v244_v24  ;;  %v276_v24 = vld [vmem:[%s3809_s20 + $0x168] sm:$0xff] }
  0x55   : > { %v1269_v29 = vadd.f32 %v1268_v27, %v245_v26  ;;  %v277_v26 = vld [vmem:[%s3809_s20 + $0x170] sm:$0xff] }
  0x57   : > { %v1270_v31 = vadd.f32 %v1269_v29, %v246_v28  ;;  %v278_v28 = vld [vmem:[%s3809_s20 + $0x178] sm:$0xff] }
  0x59   : > { %v1271_v33 = vadd.f32 %v1270_v31, %v247_v30  ;;  %v279_v30 = vld [vmem:[%s3809_s20 + $0x180] sm:$0xff] }
  0x5b   : > { %v1272_v35 = vadd.f32 %v1271_v33, %v248_v32  ;;  %v280_v32 = vld [vmem:[%s3809_s20 + $0x188] sm:$0xff] }
  0x5d   : > { %v1273_v37 = vadd.f32 %v1272_v35, %v249_v34  ;;  %v281_v34 = vld [vmem:[%s3809_s20 + $0x190] sm:$0xff] }
  0x5f   : > { %v1274_v39 = vadd.f32 %v1273_v37, %v250_v36  ;;  %v282_v36 = vld [vmem:[%s3809_s20 + $0x198] sm:$0xff] }
  0x61   : > { %v1275_v41 = vadd.f32 %v1274_v39, %v251_v38  ;;  %v283_v38 = vld [vmem:[%s3809_s20 + $0x1a0] sm:$0xff] }
  0x63   : > { %v1276_v43 = vadd.f32 %v1275_v41, %v252_v40  ;;  %v284_v40 = vld [vmem:[%s3809_s20 + $0x1a8] sm:$0xff] }
  0x65   : > { %v1277_v45 = vadd.f32 %v1276_v43, %v253_v42  ;;  %v285_v42 = vld [vmem:[%s3809_s20 + $0x1b0] sm:$0xff] }
  0x67   : > { %v1278_v47 = vadd.f32 %v1277_v45, %v254_v44  ;;  %v286_v44 = vld [vmem:[%s3809_s20 + $0x1b8] sm:$0xff] }
  0x69   : > { %v1279_v49 = vadd.f32 %v1278_v47, %v255_v46  ;;  %v287_v46 = vld [vmem:[%s3809_s20 + $0x1c0] sm:$0xff] }
  0x6b   : > { %v1280_v51 = vadd.f32 %v1279_v49, %v256_v48  ;;  %v288_v48 = vld [vmem:[%s3809_s20 + $0x1c8] sm:$0xff] }
  0x6d   : > { %v1281_v53 = vadd.f32 %v1280_v51, %v257_v50  ;;  %v289_v50 = vld [vmem:[%s3809_s20 + $0x1d0] sm:$0xff] }
  0x6f   : > { %v1282_v55 = vadd.f32 %v1281_v53, %v258_v52  ;;  %v290_v52 = vld [vmem:[%s3809_s20 + $0x1d8] sm:$0xff] }
  0x71   : > { %v1283_v57 = vadd.f32 %v1282_v55, %v259_v54  ;;  %v291_v54 = vld [vmem:[%s3809_s20 + $0x1e0] sm:$0xff] }
  0x73   : > { %v1284_v59 = vadd.f32 %v1283_v57, %v260_v56  ;;  %v292_v56 = vld [vmem:[%s3809_s20 + $0x1e8] sm:$0xff] }
  0x75   : > { %v1285_v61 = vadd.f32 %v1284_v59, %v261_v58  ;;  %v293_v58 = vld [vmem:[%s3809_s20 + $0x1f0] sm:$0xff] }
  0x77   : > { %v1286_v63 = vadd.f32 %v1285_v61, %v262_v60  ;;  %v294_v60 = vld [vmem:[%s3809_s20 + $0x1f8] sm:$0xff] }
  0x79   : > { %v1287_v1 = vadd.f32 %v1286_v63, %v263_v62  ;;  %v295_v62 = vld [vmem:[%s3809_s20 + $0x200] sm:$0xff] }
  0x7b   : > { %v1288_v3 = vadd.f32 %v1287_v1, %v264_v0  ;;  %v296_v0 = vld [vmem:[%s3809_s20 + $0x208] sm:$0xff]  ;;  %v743_v1 = vld [vmem:[%s3816_s18] sm:$0xff] }
  0x7d   : > { %v1289_v5 = vadd.f32 %v1288_v3, %v265_v2  ;;  %v744_v2 = vld [vmem:[%s3816_s18 + $0x8] sm:$0xff] }
  0x7f   : > { %v1290_v7 = vadd.f32 %v1289_v5, %v266_v4  ;;  %v1771_v4 = vadd.f32 %v744_v2, %v743_v1  ;;  %v297_v5 = vld [vmem:[%s3809_s20 + $0x210] sm:$0xff] }
  0x81   : > { %v1291_v9 = vadd.f32 %v1290_v7, %v267_v6  ;;  %v745_v6 = vld [vmem:[%s3816_s18 + $0x10] sm:$0xff] }
  0x83   : > { %v1292_v11 = vadd.f32 %v1291_v9, %v268_v8  ;;  %v1772_v8 = vadd.f32 %v1771_v4, %v745_v6  ;;  %v298_v9 = vld [vmem:[%s3809_s20 + $0x218] sm:$0xff]  ;;  %v311_v4 = vld [vmem:[%s3809_s20 + $0x280] sm:$0xff] }
  0x85   : > { %v1293_v13 = vadd.f32 %v1292_v11, %v269_v10  ;;  %v746_v10 = vld [vmem:[%s3816_s18 + $0x18] sm:$0xff] }
  0x87   : > { %v1294_v15 = vadd.f32 %v1293_v13, %v270_v12  ;;  %v1773_v12 = vadd.f32 %v1772_v8, %v746_v10  ;;  %v299_v13 = vld [vmem:[%s3809_s20 + $0x220] sm:$0xff] }
  0x89   : > { %v1295_v17 = vadd.f32 %v1294_v15, %v271_v14  ;;  %v747_v14 = vld [vmem:[%s3816_s18 + $0x20] sm:$0xff] }
  0x8b   : > { %v1296_v19 = vadd.f32 %v1295_v17, %v272_v16  ;;  %v1774_v16 = vadd.f32 %v1773_v12, %v747_v14  ;;  %v300_v17 = vld [vmem:[%s3809_s20 + $0x228] sm:$0xff] }
  0x8d   : > { %v1297_v21 = vadd.f32 %v1296_v19, %v273_v18  ;;  %v748_v18 = vld [vmem:[%s3816_s18 + $0x28] sm:$0xff] }
  0x8f   : > { %v1298_v23 = vadd.f32 %v1297_v21, %v274_v20  ;;  %v1775_v20 = vadd.f32 %v1774_v16, %v748_v18  ;;  %v301_v21 = vld [vmem:[%s3809_s20 + $0x230] sm:$0xff] }
  0x90   : > { %v313_v16 = vld [vmem:[%s3809_s20 + $0x290] sm:$0xff] }
  0x91   : > { %v1299_v25 = vadd.f32 %v1298_v23, %v275_v22  ;;  %v749_v22 = vld [vmem:[%s3816_s18 + $0x30] sm:$0xff] }
  0x92   : > { %v2292_v12 = vmul.f32 %v749_v22, %v749_v22 }
  0x93   : > { %v1300_v27 = vadd.f32 %v1299_v25, %v276_v24  ;;  %v1776_v24 = vadd.f32 %v1775_v20, %v749_v22  ;;  %v302_v25 = vld [vmem:[%s3809_s20 + $0x238] sm:$0xff] }
  0x95   : > { %v1301_v29 = vadd.f32 %v1300_v27, %v277_v26  ;;  %v750_v26 = vld [vmem:[%s3816_s18 + $0x38] sm:$0xff] }
  0x97   : > { %v1302_v31 = vadd.f32 %v1301_v29, %v278_v28  ;;  %v1777_v28 = vadd.f32 %v1776_v24, %v750_v26  ;;  %v303_v29 = vld [vmem:[%s3809_s20 + $0x240] sm:$0xff]  ;;  %v3950_v24 = vld [vmem:[%s3816_s18 + $0x98] sm:$0xff] }
  0x99   : > { %v1303_v33 = vadd.f32 %v1302_v31, %v279_v30  ;;  %v751_v30 = vld [vmem:[%s3816_s18 + $0x40] sm:$0xff] }
  0x9a   : > { %v2294_v22 = vmul.f32 %v751_v30, %v751_v30 }
  0x9b   : > { %v1304_v35 = vadd.f32 %v1303_v33, %v280_v32  ;;  %v1778_v32 = vadd.f32 %v1777_v28, %v751_v30  ;;  %v304_v33 = vld [vmem:[%s3809_s20 + $0x248] sm:$0xff] }
  0x9d   : > { %v1305_v37 = vadd.f32 %v1304_v35, %v281_v34  ;;  %v752_v34 = vld [vmem:[%s3816_s18 + $0x48] sm:$0xff] }
  0x9f   : > { %v1306_v39 = vadd.f32 %v1305_v37, %v282_v36  ;;  %v1779_v36 = vadd.f32 %v1778_v32, %v752_v34  ;;  %v305_v37 = vld [vmem:[%s3809_s20 + $0x250] sm:$0xff] }
  0xa1   : > { %v1307_v41 = vadd.f32 %v1306_v39, %v283_v38  ;;  %v753_v38 = vld [vmem:[%s3816_s18 + $0x50] sm:$0xff] }
  0xa2   : > { %v2296_v30 = vmul.f32 %v753_v38, %v753_v38 }
  0xa3   : > { %v1308_v43 = vadd.f32 %v1307_v41, %v284_v40  ;;  %v1780_v40 = vadd.f32 %v1779_v36, %v753_v38  ;;  %v306_v41 = vld [vmem:[%s3809_s20 + $0x258] sm:$0xff]  ;;  %v316_v36 = vld [vmem:[%s3809_s20 + $0x2a8] sm:$0xff] }
  0xa4   : > { %v3972_v38 = vld [vmem:[%s3816_s18 + $0xb8] sm:$0xff] }
  0xa5   : > { %v1309_v45 = vadd.f32 %v1308_v43, %v285_v42  ;;  %v3910_v42 = vld [vmem:[%s3816_s18 + $0x58] sm:$0xff] }
  0xa7   : > { %v1310_v47 = vadd.f32 %v1309_v45, %v286_v44  ;;  %v1781_v44 = vadd.f32 %v1780_v40, %v3910_v42  ;;  %v307_v45 = vld [vmem:[%s3809_s20 + $0x260] sm:$0xff] }
  0xa9   : > { %v1311_v49 = vadd.f32 %v1310_v47, %v287_v46  ;;  %v3915_v46 = vld [vmem:[%s3816_s18 + $0x60] sm:$0xff]  ;;  %v2286_v47 = vmul.f32 %v743_v1, %v743_v1 }
  0xab   : > { %v1312_v51 = vadd.f32 %v1311_v49, %v288_v48  ;;  %v2287_v48 = vmul.f32 %v744_v2, %v744_v2 }
  0xad   : > { %v1313_v53 = vadd.f32 %v1312_v51, %v289_v50  ;;  %v1782_v50 = vadd.f32 %v1781_v44, %v3915_v46  ;;  %v308_v51 = vld [vmem:[%s3809_s20 + $0x268] sm:$0xff]  ;;  %v3965_v44 = vld [vmem:[%s3816_s18 + $0xb0] sm:$0xff] }
  0xaf   : > { %v1314_v55 = vadd.f32 %v1313_v53, %v290_v52  ;;  %v3920_v52 = vld [vmem:[%s3816_s18 + $0x68] sm:$0xff]  ;;  %v2288_v53 = vmul.f32 %v745_v6, %v745_v6  ;;  %v2291_v6 = vmul.f32 %v748_v18, %v748_v18  ;;  %v2293_v18 = vmul.f32 %v750_v26, %v750_v26 }
  0xb0   : > { %v2295_v26 = vmul.f32 %v752_v34, %v752_v34  ;;  %v2297_v34 = vmul.f32 %v3910_v42, %v3910_v42  ;;  %v3979_v42 = vld [vmem:[%s3816_s18 + $0xc0] sm:$0xff] }
  0xb1   : > { %v1315_v57 = vadd.f32 %v1314_v55, %v291_v54  ;;  %v1783_v55 = vadd.f32 %v1782_v50, %v3920_v52  ;;  %v2298_v50 = vmul.f32 %v3915_v46, %v3915_v46  ;;  %v3986_v46 = vld [vmem:[%s3816_s18 + $0xc8] sm:$0xff] }
  0xb3   : > { %v1316_v59 = vadd.f32 %v1315_v57, %v292_v56  ;;  %v309_v56 = vld [vmem:[%s3809_s20 + $0x270] sm:$0xff] }
  0xb4   : > { %v3925_v57 = vld [vmem:[%s3816_s18 + $0x70] sm:$0xff] }
  0xb5   : > { %v1317_v61 = vadd.f32 %v1316_v59, %v293_v58  ;;  %v2289_v58 = vmul.f32 %v746_v10, %v746_v10  ;;  %v2798_v59 = vadd.f32 %v2287_v48, %v2286_v47  ;;  %v312_v10 = vld [vmem:[%s3809_s20 + $0x288] sm:$0xff] }
  0xb7   : > { %v1318_v63 = vadd.f32 %v1317_v61, %v294_v60  ;;  %v1784_v61 = vadd.f32 %v1783_v55, %v3925_v57  ;;  %v2799_v1 = vadd.f32 %v2798_v59, %v2288_v53  ;;  %v319_v55 = vld [vmem:[%s3809_s20 + $0x2c0] sm:$0xff] }
  0xb9   : > { %v1319_v3 = vadd.f32 %v1318_v63, %v295_v62  ;;  %v310_v62 = vld [vmem:[%s3809_s20 + $0x278] sm:$0xff] }
  0xba   : > { %v3930_v63 = vld [vmem:[%s3816_s18 + $0x78] sm:$0xff] }
  0xbb   : > { %v1320_v7 = vadd.f32 %v1319_v3, %v296_v0  ;;  %v2290_v0 = vmul.f32 %v747_v14, %v747_v14  ;;  %v1785_v3 = vadd.f32 %v1784_v61, %v3930_v63  ;;  %v320_v61 = vld [vmem:[%s3809_s20 + $0x2c8] sm:$0xff] }
  0xbd   : > { %v1321_v11 = vadd.f32 %v1320_v7, %v297_v5  ;;  %v3935_v5 = vld [vmem:[%s3816_s18 + $0x80] sm:$0xff]  ;;  %v2800_v7 = vadd.f32 %v2799_v1, %v2289_v58 }
  0xbf   : > { %v1322_v15 = vadd.f32 %v1321_v11, %v298_v9  ;;  %v1786_v9 = vadd.f32 %v1785_v3, %v3935_v5  ;;  %v3940_v11 = vld [vmem:[%s3816_s18 + $0x88] sm:$0xff]  ;;  %v321_v3 = vld [vmem:[%s3809_s20 + $0x2d0] sm:$0xff] }
  0xc1   : > { %v1323_v19 = vadd.f32 %v1322_v15, %v299_v13  ;;  %v2801_v13 = vadd.f32 %v2800_v7, %v2290_v0  ;;  %v1787_v15 = vadd.f32 %v1786_v9, %v3940_v11  ;;  %v322_v9 = vld [vmem:[%s3809_s20 + $0x2d8] sm:$0xff] }
  0xc3   : > { %v1324_v23 = vadd.f32 %v1323_v19, %v300_v17  ;;  %v3945_v17 = vld [vmem:[%s3816_s18 + $0x90] sm:$0xff]  ;;  %v2802_v19 = vadd.f32 %v2801_v13, %v2291_v6 }
  0xc5   : > { %v1325_v27 = vadd.f32 %v1324_v23, %v301_v21  ;;  %v1788_v21 = vadd.f32 %v1787_v15, %v3945_v17  ;;  %v314_v23 = vld [vmem:[%s3809_s20 + $0x298] sm:$0xff]  ;;  %v323_v15 = vld [vmem:[%s3809_s20 + $0x2e0] sm:$0xff] }
  0xc7   : > { %v1326_v31 = vadd.f32 %v1325_v27, %v302_v25  ;;  %v2803_v25 = vadd.f32 %v2802_v19, %v2292_v12  ;;  %v1789_v28 = vadd.f32 %v1788_v21, %v3950_v24  ;;  %v324_v21 = vld [vmem:[%s3809_s20 + $0x2e8] sm:$0xff] }
  0xc9   : > { %v1327_v35 = vadd.f32 %v1326_v31, %v303_v29  ;;  %v315_v29 = vld [vmem:[%s3809_s20 + $0x2a0] sm:$0xff]  ;;  %v2804_v32 = vadd.f32 %v2803_v25, %v2293_v18 }
  0xca   : > { %v3955_v31 = vld [vmem:[%s3816_s18 + $0xa0] sm:$0xff] }
  0xcb   : > { %v1328_v39 = vadd.f32 %v1327_v35, %v304_v33  ;;  %v1790_v35 = vadd.f32 %v1789_v28, %v3955_v31  ;;  %v325_v28 = vld [vmem:[%s3809_s20 + $0x2f0] sm:$0xff] }
  0xcd   : > { %v1329_v43 = vadd.f32 %v1328_v39, %v305_v37  ;;  %v3960_v37 = vld [vmem:[%s3816_s18 + $0xa8] sm:$0xff]  ;;  %v2805_v39 = vadd.f32 %v2804_v32, %v2294_v22 }
  0xcf   : > { %v1330_v49 = vadd.f32 %v1329_v43, %v306_v41  ;;  %v1791_v41 = vadd.f32 %v1790_v35, %v3960_v37  ;;  %v317_v43 = vld [vmem:[%s3809_s20 + $0x2b0] sm:$0xff]  ;;  %v326_v35 = vld [vmem:[%s3809_s20 + $0x2f8] sm:$0xff] }
  0xd1   : > { %v1331_v54 = vadd.f32 %v1330_v49, %v307_v45  ;;  %v2806_v45 = vadd.f32 %v2805_v39, %v2295_v26  ;;  %v1792_v48 = vadd.f32 %v1791_v41, %v3965_v44  ;;  %v318_v49 = vld [vmem:[%s3809_s20 + $0x2b8] sm:$0xff]  ;;  %v327_v41 = vld [vmem:[%s3809_s20 + $0x300] sm:$0xff] }
  0xd3   : > { %v1332_v60 = vadd.f32 %v1331_v54, %v308_v51  ;;  %v2807_v51 = vadd.f32 %v2806_v45, %v2296_v30  ;;  %v1793_v54 = vadd.f32 %v1792_v48, %v3972_v38  ;;  %v328_v48 = vld [vmem:[%s3809_s20 + $0x308] sm:$0xff] }
  0xd5   : > { %v1333_v2 = vadd.f32 %v1332_v60, %v309_v56  ;;  %v2299_v56 = vmul.f32 %v3920_v52, %v3920_v52  ;;  %v2808_v58 = vadd.f32 %v2807_v51, %v2297_v34  ;;  %v1794_v60 = vadd.f32 %v1793_v54, %v3979_v42  ;;  %v3993_v52 = vld [vmem:[%s3816_s18 + $0xd0] sm:$0xff] }
  0xd6   : > { %v329_v54 = vld [vmem:[%s3809_s20 + $0x310] sm:$0xff] }
  0xd7   : > { %v1334_v8 = vadd.f32 %v1333_v2, %v310_v62  ;;  %v2300_v62 = vmul.f32 %v3925_v57, %v3925_v57  ;;  %v2809_v0 = vadd.f32 %v2808_v58, %v2298_v50  ;;  %v1795_v2 = vadd.f32 %v1794_v60, %v3986_v46  ;;  %v4000_v57 = vld [vmem:[%s3816_s18 + $0xd8] sm:$0xff] }
  0xd8   : > { %v330_v60 = vld [vmem:[%s3809_s20 + $0x318] sm:$0xff] }
  0xd9   : > { %v1335_v14 = vadd.f32 %v1334_v8, %v311_v4  ;;  %v2301_v4 = vmul.f32 %v3930_v63, %v3930_v63  ;;  %v2810_v6 = vadd.f32 %v2809_v0, %v2299_v56  ;;  %v1796_v8 = vadd.f32 %v1795_v2, %v3993_v52  ;;  %v4007_v63 = vld [vmem:[%s3816_s18 + $0xe0] sm:$0xff] }
  0xda   : > { %v331_v2 = vld [vmem:[%s3809_s20 + $0x320] sm:$0xff] }
  0xdb   : > { %v1336_v20 = vadd.f32 %v1335_v14, %v312_v10  ;;  %v2302_v10 = vmul.f32 %v3935_v5, %v3935_v5  ;;  %v2811_v12 = vadd.f32 %v2810_v6, %v2300_v62  ;;  %v1797_v14 = vadd.f32 %v1796_v8, %v4000_v57  ;;  %v4014_v5 = vld [vmem:[%s3816_s18 + $0xe8] sm:$0xff] }
  0xdc   : > { %v332_v8 = vld [vmem:[%s3809_s20 + $0x328] sm:$0xff] }
  0xdd   : > { %v1337_v27 = vadd.f32 %v1336_v20, %v313_v16  ;;  %v2303_v16 = vmul.f32 %v3940_v11, %v3940_v11  ;;  %v2812_v18 = vadd.f32 %v2811_v12, %v2301_v4  ;;  %v1798_v20 = vadd.f32 %v1797_v14, %v4007_v63  ;;  %v4021_v11 = vld [vmem:[%s3816_s18 + $0xf0] sm:$0xff] }
  0xde   : > { %v333_v14 = vld [vmem:[%s3809_s20 + $0x330] sm:$0xff] }
  0xdf   : > { %v1338_v33 = vadd.f32 %v1337_v27, %v314_v23  ;;  %v2304_v23 = vmul.f32 %v3945_v17, %v3945_v17  ;;  %v2813_v22 = vadd.f32 %v2812_v18, %v2302_v10  ;;  %v1799_v27 = vadd.f32 %v1798_v20, %v4014_v5  ;;  %v4028_v17 = vld [vmem:[%s3816_s18 + $0xf8] sm:$0xff] }
  0xe0   : > { %v334_v20 = vld [vmem:[%s3809_s20 + $0x338] sm:$0xff] }
  0xe1   : > { %v1339_v40 = vadd.f32 %v1338_v33, %v315_v29  ;;  %v2305_v29 = vmul.f32 %v3950_v24, %v3950_v24  ;;  %v2814_v26 = vadd.f32 %v2813_v22, %v2303_v16  ;;  %v1800_v33 = vadd.f32 %v1799_v27, %v4021_v11  ;;  %v4035_v24 = vld [vmem:[%s3816_s18 + $0x100] sm:$0xff] }
  0xe2   : > { %v335_v27 = vld [vmem:[%s3809_s20 + $0x340] sm:$0xff] }
  0xe3   : > { %v1340_v47 = vadd.f32 %v1339_v40, %v316_v36  ;;  %v2306_v36 = vmul.f32 %v3955_v31, %v3955_v31  ;;  %v2815_v30 = vadd.f32 %v2814_v26, %v2304_v23  ;;  %v1801_v40 = vadd.f32 %v1800_v33, %v4028_v17  ;;  %v4042_v31 = vld [vmem:[%s3816_s18 + $0x108] sm:$0xff] }
  0xe4   : > { %v336_v33 = vld [vmem:[%s3809_s20 + $0x348] sm:$0xff] }
  0xe5   : > { %v1341_v53 = vadd.f32 %v1340_v47, %v317_v43  ;;  %v2307_v43 = vmul.f32 %v3960_v37, %v3960_v37  ;;  %v2816_v34 = vadd.f32 %v2815_v30, %v2305_v29  ;;  %v1802_v47 = vadd.f32 %v1801_v40, %v4035_v24  ;;  %v4049_v37 = vld [vmem:[%s3816_s18 + $0x110] sm:$0xff] }
  0xe6   : > { %v337_v40 = vld [vmem:[%s3809_s20 + $0x350] sm:$0xff] }
  0xe7   : > { %v1342_v59 = vadd.f32 %v1341_v53, %v318_v49  ;;  %v2308_v49 = vmul.f32 %v3965_v44, %v3965_v44  ;;  %v2817_v50 = vadd.f32 %v2816_v34, %v2306_v36  ;;  %v1803_v53 = vadd.f32 %v1802_v47, %v4042_v31  ;;  %v4056_v44 = vld [vmem:[%s3816_s18 + $0x118] sm:$0xff] }
  0xe8   : > { %v338_v47 = vld [vmem:[%s3809_s20 + $0x358] sm:$0xff] }
  0xe9   : > { %v1343_v1 = vadd.f32 %v1342_v59, %v319_v55  ;;  %v2309_v55 = vmul.f32 %v3972_v38, %v3972_v38  ;;  %v2818_v56 = vadd.f32 %v2817_v50, %v2307_v43  ;;  %v1804_v59 = vadd.f32 %v1803_v53, %v4049_v37  ;;  %v4063_v38 = vld [vmem:[%s3816_s18 + $0x120] sm:$0xff] }
  0xea   : > { %v339_v53 = vld [vmem:[%s3809_s20 + $0x360] sm:$0xff] }
  0xeb   : > { %v1344_v7 = vadd.f32 %v1343_v1, %v320_v61  ;;  %v2310_v61 = vmul.f32 %v3979_v42, %v3979_v42  ;;  %v2819_v62 = vadd.f32 %v2818_v56, %v2308_v49  ;;  %v1805_v1 = vadd.f32 %v1804_v59, %v4056_v44  ;;  %v4070_v42 = vld [vmem:[%s3816_s18 + $0x128] sm:$0xff] }
  0xec   : > { %v340_v59 = vld [vmem:[%s3809_s20 + $0x368] sm:$0xff] }
  0xed   : > { %v1345_v13 = vadd.f32 %v1344_v7, %v321_v3  ;;  %v2311_v3 = vmul.f32 %v3986_v46, %v3986_v46  ;;  %v2820_v4 = vadd.f32 %v2819_v62, %v2309_v55  ;;  %v1806_v7 = vadd.f32 %v1805_v1, %v4063_v38  ;;  %v4077_v46 = vld [vmem:[%s3816_s18 + $0x130] sm:$0xff] }
  0xee   : > { %v341_v1 = vld [vmem:[%s3809_s20 + $0x370] sm:$0xff] }
  0xef   : > { %v1346_v19 = vadd.f32 %v1345_v13, %v322_v9  ;;  %v2312_v9 = vmul.f32 %v3993_v52, %v3993_v52  ;;  %v2821_v10 = vadd.f32 %v2820_v4, %v2310_v61  ;;  %v1807_v13 = vadd.f32 %v1806_v7, %v4070_v42  ;;  %v4084_v52 = vld [vmem:[%s3816_s18 + $0x138] sm:$0xff] }
  0xf0   : > { %v342_v7 = vld [vmem:[%s3809_s20 + $0x378] sm:$0xff] }
  0xf1   : > { %v1347_v25 = vadd.f32 %v1346_v19, %v323_v15  ;;  %v2313_v15 = vmul.f32 %v4000_v57, %v4000_v57  ;;  %v2822_v16 = vadd.f32 %v2821_v10, %v2311_v3  ;;  %v1808_v19 = vadd.f32 %v1807_v13, %v4077_v46  ;;  %v4091_v57 = vld [vmem:[%s3816_s18 + $0x140] sm:$0xff] }
  0xf2   : > { %v343_v13 = vld [vmem:[%s3809_s20 + $0x380] sm:$0xff] }
  0xf3   : > { %v1348_v32 = vadd.f32 %v1347_v25, %v324_v21  ;;  %v2314_v21 = vmul.f32 %v4007_v63, %v4007_v63  ;;  %v2823_v23 = vadd.f32 %v2822_v16, %v2312_v9  ;;  %v1809_v25 = vadd.f32 %v1808_v19, %v4084_v52  ;;  %v4098_v63 = vld [vmem:[%s3816_s18 + $0x148] sm:$0xff] }
  0xf4   : > { %v344_v19 = vld [vmem:[%s3809_s20 + $0x388] sm:$0xff] }
  0xf5   : > { %v1349_v39 = vadd.f32 %v1348_v32, %v325_v28  ;;  %v2315_v28 = vmul.f32 %v4014_v5, %v4014_v5  ;;  %v2824_v29 = vadd.f32 %v2823_v23, %v2313_v15  ;;  %v1810_v32 = vadd.f32 %v1809_v25, %v4091_v57  ;;  %v4105_v5 = vld [vmem:[%s3816_s18 + $0x150] sm:$0xff] }
  0xf6   : > { %v345_v25 = vld [vmem:[%s3809_s20 + $0x390] sm:$0xff] }
  0xf7   : > { %v1350_v45 = vadd.f32 %v1349_v39, %v326_v35  ;;  %v2316_v35 = vmul.f32 %v4021_v11, %v4021_v11  ;;  %v2825_v36 = vadd.f32 %v2824_v29, %v2314_v21  ;;  %v1811_v39 = vadd.f32 %v1810_v32, %v4098_v63  ;;  %v4112_v11 = vld [vmem:[%s3816_s18 + $0x158] sm:$0xff] }
  0xf8   : > { %v346_v32 = vld [vmem:[%s3809_s20 + $0x398] sm:$0xff] }
  0xf9   : > { %v1351_v51 = vadd.f32 %v1350_v45, %v327_v41  ;;  %v2317_v41 = vmul.f32 %v4028_v17, %v4028_v17  ;;  %v2826_v43 = vadd.f32 %v2825_v36, %v2315_v28  ;;  %v1812_v45 = vadd.f32 %v1811_v39, %v4105_v5  ;;  %v4119_v17 = vld [vmem:[%s3816_s18 + $0x160] sm:$0xff] }
  0xfa   : > { %v347_v39 = vld [vmem:[%s3809_s20 + $0x3a0] sm:$0xff] }
  0xfb   : > { %v1352_v58 = vadd.f32 %v1351_v51, %v328_v48  ;;  %v2318_v48 = vmul.f32 %v4035_v24, %v4035_v24  ;;  %v2827_v49 = vadd.f32 %v2826_v43, %v2316_v35  ;;  %v1813_v51 = vadd.f32 %v1812_v45, %v4112_v11  ;;  %v4126_v24 = vld [vmem:[%s3816_s18 + $0x168] sm:$0xff] }
  0xfc   : > { %v348_v45 = vld [vmem:[%s3809_s20 + $0x3a8] sm:$0xff] }
  0xfd   : > { %v1353_v0 = vadd.f32 %v1352_v58, %v329_v54  ;;  %v2319_v54 = vmul.f32 %v4042_v31, %v4042_v31  ;;  %v2828_v55 = vadd.f32 %v2827_v49, %v2317_v41  ;;  %v1814_v58 = vadd.f32 %v1813_v51, %v4119_v17  ;;  %v4133_v31 = vld [vmem:[%s3816_s18 + $0x170] sm:$0xff] }
  0xfe   : > { %v349_v51 = vld [vmem:[%s3809_s20 + $0x3b0] sm:$0xff] }
  0xff   : > { %v1354_v6 = vadd.f32 %v1353_v0, %v330_v60  ;;  %v2320_v60 = vmul.f32 %v4049_v37, %v4049_v37  ;;  %v2829_v61 = vadd.f32 %v2828_v55, %v2318_v48  ;;  %v1815_v0 = vadd.f32 %v1814_v58, %v4126_v24  ;;  %v4140_v37 = vld [vmem:[%s3816_s18 + $0x178] sm:$0xff] }
 0x100   : > { %v350_v58 = vld [vmem:[%s3809_s20 + $0x3b8] sm:$0xff] }
 0x101   : > { %v1355_v12 = vadd.f32 %v1354_v6, %v331_v2  ;;  %v2321_v2 = vmul.f32 %v4056_v44, %v4056_v44  ;;  %v2830_v3 = vadd.f32 %v2829_v61, %v2319_v54  ;;  %v1816_v6 = vadd.f32 %v1815_v0, %v4133_v31  ;;  %v4147_v44 = vld [vmem:[%s3816_s18 + $0x180] sm:$0xff] }
 0x102   : > { %v351_v0 = vld [vmem:[%s3809_s20 + $0x3c0] sm:$0xff] }
 0x103   : > { %v1356_v18 = vadd.f32 %v1355_v12, %v332_v8  ;;  %v2322_v8 = vmul.f32 %v4063_v38, %v4063_v38  ;;  %v2831_v9 = vadd.f32 %v2830_v3, %v2320_v60  ;;  %v1817_v12 = vadd.f32 %v1816_v6, %v4140_v37  ;;  %v4154_v38 = vld [vmem:[%s3816_s18 + $0x188] sm:$0xff] }
 0x104   : > { %v352_v6 = vld [vmem:[%s3809_s20 + $0x3c8] sm:$0xff] }
 0x105   : > { %v1357_v22 = vadd.f32 %v1356_v18, %v333_v14  ;;  %v2323_v14 = vmul.f32 %v4070_v42, %v4070_v42  ;;  %v2832_v15 = vadd.f32 %v2831_v9, %v2321_v2  ;;  %v1818_v18 = vadd.f32 %v1817_v12, %v4147_v44  ;;  %v4161_v42 = vld [vmem:[%s3816_s18 + $0x190] sm:$0xff] }
 0x106   : > { %v353_v12 = vld [vmem:[%s3809_s20 + $0x3d0] sm:$0xff] }
 0x107   : > { %v1358_v26 = vadd.f32 %v1357_v22, %v334_v20  ;;  %v2324_v20 = vmul.f32 %v4077_v46, %v4077_v46  ;;  %v2833_v21 = vadd.f32 %v2832_v15, %v2322_v8  ;;  %v1819_v22 = vadd.f32 %v1818_v18, %v4154_v38  ;;  %v4168_v46 = vld [vmem:[%s3816_s18 + $0x198] sm:$0xff] }
 0x108   : > { %v354_v18 = vld [vmem:[%s3809_s20 + $0x3d8] sm:$0xff] }
 0x109   : > { %v1359_v30 = vadd.f32 %v1358_v26, %v335_v27  ;;  %v2325_v27 = vmul.f32 %v4084_v52, %v4084_v52  ;;  %v2834_v28 = vadd.f32 %v2833_v21, %v2323_v14  ;;  %v1820_v26 = vadd.f32 %v1819_v22, %v4161_v42  ;;  %v4175_v52 = vld [vmem:[%s3816_s18 + $0x1a0] sm:$0xff] }
 0x10a   : > { %v355_v22 = vld [vmem:[%s3809_s20 + $0x3e0] sm:$0xff] }
 0x10b   : > { %v1360_v34 = vadd.f32 %v1359_v30, %v336_v33  ;;  %v2326_v33 = vmul.f32 %v4091_v57, %v4091_v57  ;;  %v2835_v35 = vadd.f32 %v2834_v28, %v2324_v20  ;;  %v1821_v30 = vadd.f32 %v1820_v26, %v4168_v46  ;;  %v4182_v57 = vld [vmem:[%s3816_s18 + $0x1a8] sm:$0xff] }
 0x10c   : > { %v356_v26 = vld [vmem:[%s3809_s20 + $0x3e8] sm:$0xff] }
 0x10d   : > { %v1361_v50 = vadd.f32 %v1360_v34, %v337_v40  ;;  %v2327_v40 = vmul.f32 %v4098_v63, %v4098_v63  ;;  %v2836_v41 = vadd.f32 %v2835_v35, %v2325_v27  ;;  %v1822_v34 = vadd.f32 %v1821_v30, %v4175_v52  ;;  %v4189_v63 = vld [vmem:[%s3816_s18 + $0x1b0] sm:$0xff] }
 0x10e   : > { %v357_v30 = vld [vmem:[%s3809_s20 + $0x3f0] sm:$0xff] }
 0x10f   : > { %v1362_v56 = vadd.f32 %v1361_v50, %v338_v47  ;;  %v2328_v47 = vmul.f32 %v4105_v5, %v4105_v5  ;;  %v2837_v48 = vadd.f32 %v2836_v41, %v2326_v33  ;;  %v1823_v50 = vadd.f32 %v1822_v34, %v4182_v57  ;;  %v4196_v5 = vld [vmem:[%s3816_s18 + $0x1b8] sm:$0xff] }
 0x110   : > { %v358_v34 = vld [vmem:[%s3809_s20 + $0x3f8] sm:$0xff] }
 0x111   : > { %v1363_v62 = vadd.f32 %v1362_v56, %v339_v53  ;;  %v2329_v53 = vmul.f32 %v4112_v11, %v4112_v11  ;;  %v2838_v54 = vadd.f32 %v2837_v48, %v2327_v40  ;;  %v1824_v56 = vadd.f32 %v1823_v50, %v4189_v63  ;;  %v4203_v11 = vld [vmem:[%s3816_s18 + $0x1c0] sm:$0xff] }
 0x112   : > { %v359_v50 = vld [vmem:[%s3809_s20 + $0x400] sm:$0xff] }
 0x113   : > { %v1364_v4 = vadd.f32 %v1363_v62, %v340_v59  ;;  %v2330_v59 = vmul.f32 %v4119_v17, %v4119_v17  ;;  %v2839_v60 = vadd.f32 %v2838_v54, %v2328_v47  ;;  %v1825_v62 = vadd.f32 %v1824_v56, %v4196_v5  ;;  %v4210_v17 = vld [vmem:[%s3816_s18 + $0x1c8] sm:$0xff] }
 0x114   : > { %v360_v56 = vld [vmem:[%s3809_s20 + $0x408] sm:$0xff] }
 0x115   : > { %v1365_v10 = vadd.f32 %v1364_v4, %v341_v1  ;;  %v2331_v1 = vmul.f32 %v4126_v24, %v4126_v24  ;;  %v2840_v2 = vadd.f32 %v2839_v60, %v2329_v53  ;;  %v1826_v4 = vadd.f32 %v1825_v62, %v4203_v11  ;;  %v4217_v24 = vld [vmem:[%s3816_s18 + $0x1d0] sm:$0xff] }
 0x116   : > { %v361_v62 = vld [vmem:[%s3809_s20 + $0x410] sm:$0xff] }
 0x117   : > { %v1366_v16 = vadd.f32 %v1365_v10, %v342_v7  ;;  %v2332_v7 = vmul.f32 %v4133_v31, %v4133_v31  ;;  %v2841_v8 = vadd.f32 %v2840_v2, %v2330_v59  ;;  %v1827_v10 = vadd.f32 %v1826_v4, %v4210_v17  ;;  %v4224_v31 = vld [vmem:[%s3816_s18 + $0x1d8] sm:$0xff] }
 0x118   : > { %v362_v4 = vld [vmem:[%s3809_s20 + $0x418] sm:$0xff] }
 0x119   : > { %v1367_v23 = vadd.f32 %v1366_v16, %v343_v13  ;;  %v2333_v13 = vmul.f32 %v4140_v37, %v4140_v37  ;;  %v2842_v14 = vadd.f32 %v2841_v8, %v2331_v1  ;;  %v1828_v16 = vadd.f32 %v1827_v10, %v4217_v24  ;;  %v4231_v37 = vld [vmem:[%s3816_s18 + $0x1e0] sm:$0xff] }
 0x11a   : > { %v363_v10 = vld [vmem:[%s3809_s20 + $0x420] sm:$0xff] }
 0x11b   : > { %v1368_v29 = vadd.f32 %v1367_v23, %v344_v19  ;;  %v2334_v19 = vmul.f32 %v4147_v44, %v4147_v44  ;;  %v2843_v20 = vadd.f32 %v2842_v14, %v2332_v7  ;;  %v1829_v23 = vadd.f32 %v1828_v16, %v4224_v31  ;;  %v4238_v44 = vld [vmem:[%s3816_s18 + $0x1e8] sm:$0xff] }
 0x11c   : > { %v364_v16 = vld [vmem:[%s3809_s20 + $0x428] sm:$0xff] }
 0x11d   : > { %v1369_v36 = vadd.f32 %v1368_v29, %v345_v25  ;;  %v2335_v25 = vmul.f32 %v4154_v38, %v4154_v38  ;;  %v2844_v27 = vadd.f32 %v2843_v20, %v2333_v13  ;;  %v1830_v29 = vadd.f32 %v1829_v23, %v4231_v37  ;;  %v4245_v38 = vld [vmem:[%s3816_s18 + $0x1f0] sm:$0xff] }
 0x11e   : > { %v365_v23 = vld [vmem:[%s3809_s20 + $0x430] sm:$0xff] }
 0x11f   : > { %v1370_v43 = vadd.f32 %v1369_v36, %v346_v32  ;;  %v2336_v32 = vmul.f32 %v4161_v42, %v4161_v42  ;;  %v2845_v33 = vadd.f32 %v2844_v27, %v2334_v19  ;;  %v1831_v36 = vadd.f32 %v1830_v29, %v4238_v44  ;;  %v4252_v42 = vld [vmem:[%s3816_s18 + $0x1f8] sm:$0xff] }
 0x120   : > { %v366_v29 = vld [vmem:[%s3809_s20 + $0x438] sm:$0xff] }
 0x121   : > { %v1371_v49 = vadd.f32 %v1370_v43, %v347_v39  ;;  %v2337_v39 = vmul.f32 %v4168_v46, %v4168_v46  ;;  %v2846_v40 = vadd.f32 %v2845_v33, %v2335_v25  ;;  %v1832_v43 = vadd.f32 %v1831_v36, %v4245_v38  ;;  %v4259_v46 = vld [vmem:[%s3816_s18 + $0x200] sm:$0xff] }
 0x122   : > { %v367_v36 = vld [vmem:[%s3809_s20 + $0x440] sm:$0xff] }
 0x123   : > { %v1372_v55 = vadd.f32 %v1371_v49, %v348_v45  ;;  %v2338_v45 = vmul.f32 %v4175_v52, %v4175_v52  ;;  %v2847_v47 = vadd.f32 %v2846_v40, %v2336_v32  ;;  %v1833_v49 = vadd.f32 %v1832_v43, %v4252_v42  ;;  %v4266_v52 = vld [vmem:[%s3816_s18 + $0x208] sm:$0xff] }
 0x124   : > { %v368_v43 = vld [vmem:[%s3809_s20 + $0x448] sm:$0xff] }
 0x125   : > { %v1373_v61 = vadd.f32 %v1372_v55, %v349_v51  ;;  %v2339_v51 = vmul.f32 %v4182_v57, %v4182_v57  ;;  %v2848_v53 = vadd.f32 %v2847_v47, %v2337_v39  ;;  %v1834_v55 = vadd.f32 %v1833_v49, %v4259_v46  ;;  %v4273_v57 = vld [vmem:[%s3816_s18 + $0x210] sm:$0xff] }
 0x126   : > { %v369_v49 = vld [vmem:[%s3809_s20 + $0x450] sm:$0xff] }
 0x127   : > { %v1374_v3 = vadd.f32 %v1373_v61, %v350_v58  ;;  %v2340_v58 = vmul.f32 %v4189_v63, %v4189_v63  ;;  %v2849_v59 = vadd.f32 %v2848_v53, %v2338_v45  ;;  %v1835_v61 = vadd.f32 %v1834_v55, %v4266_v52  ;;  %v4280_v63 = vld [vmem:[%s3816_s18 + $0x218] sm:$0xff] }
 0x128   : > { %v370_v55 = vld [vmem:[%s3809_s20 + $0x458] sm:$0xff] }
 0x129   : > { %v1375_v9 = vadd.f32 %v1374_v3, %v351_v0  ;;  %v2341_v0 = vmul.f32 %v4196_v5, %v4196_v5  ;;  %v2850_v1 = vadd.f32 %v2849_v59, %v2339_v51  ;;  %v1836_v3 = vadd.f32 %v1835_v61, %v4273_v57  ;;  %v4287_v5 = vld [vmem:[%s3816_s18 + $0x220] sm:$0xff] }
 0x12a   : > { %v371_v61 = vld [vmem:[%s3809_s20 + $0x460] sm:$0xff] }
 0x12b   : > { %v1376_v15 = vadd.f32 %v1375_v9, %v352_v6  ;;  %v2342_v6 = vmul.f32 %v4203_v11, %v4203_v11  ;;  %v2851_v7 = vadd.f32 %v2850_v1, %v2340_v58  ;;  %v1837_v9 = vadd.f32 %v1836_v3, %v4280_v63  ;;  %v4294_v11 = vld [vmem:[%s3816_s18 + $0x228] sm:$0xff] }
 0x12c   : > { %v372_v3 = vld [vmem:[%s3809_s20 + $0x468] sm:$0xff] }
 0x12d   : > { %v1377_v21 = vadd.f32 %v1376_v15, %v353_v12  ;;  %v2343_v12 = vmul.f32 %v4210_v17, %v4210_v17  ;;  %v2852_v13 = vadd.f32 %v2851_v7, %v2341_v0  ;;  %v1838_v15 = vadd.f32 %v1837_v9, %v4287_v5  ;;  %v4301_v17 = vld [vmem:[%s3816_s18 + $0x230] sm:$0xff] }
 0x12e   : > { %v373_v9 = vld [vmem:[%s3809_s20 + $0x470] sm:$0xff] }
 0x12f   : > { %v1378_v28 = vadd.f32 %v1377_v21, %v354_v18  ;;  %v2344_v18 = vmul.f32 %v4217_v24, %v4217_v24  ;;  %v2853_v19 = vadd.f32 %v2852_v13, %v2342_v6  ;;  %v1839_v21 = vadd.f32 %v1838_v15, %v4294_v11  ;;  %v4308_v24 = vld [vmem:[%s3816_s18 + $0x238] sm:$0xff] }
 0x130   : > { %v374_v15 = vld [vmem:[%s3809_s20 + $0x478] sm:$0xff] }
 0x131   : > { %v1379_v35 = vadd.f32 %v1378_v28, %v355_v22  ;;  %v2345_v22 = vmul.f32 %v4224_v31, %v4224_v31  ;;  %v2854_v25 = vadd.f32 %v2853_v19, %v2343_v12  ;;  %v1840_v28 = vadd.f32 %v1839_v21, %v4301_v17  ;;  %v4315_v31 = vld [vmem:[%s3816_s18 + $0x240] sm:$0xff] }
 0x132   : > { %v375_v21 = vld [vmem:[%s3809_s20 + $0x480] sm:$0xff] }
 0x133   : > { %v1380_v41 = vadd.f32 %v1379_v35, %v356_v26  ;;  %v2346_v26 = vmul.f32 %v4231_v37, %v4231_v37  ;;  %v2855_v32 = vadd.f32 %v2854_v25, %v2344_v18  ;;  %v1841_v35 = vadd.f32 %v1840_v28, %v4308_v24  ;;  %v4322_v37 = vld [vmem:[%s3816_s18 + $0x248] sm:$0xff] }
 0x134   : > { %v376_v28 = vld [vmem:[%s3809_s20 + $0x488] sm:$0xff] }
 0x135   : > { %v1381_v48 = vadd.f32 %v1380_v41, %v357_v30  ;;  %v2347_v30 = vmul.f32 %v4238_v44, %v4238_v44  ;;  %v2856_v39 = vadd.f32 %v2855_v32, %v2345_v22  ;;  %v1842_v41 = vadd.f32 %v1841_v35, %v4315_v31  ;;  %v4329_v44 = vld [vmem:[%s3816_s18 + $0x250] sm:$0xff] }
 0x136   : > { %v377_v35 = vld [vmem:[%s3809_s20 + $0x490] sm:$0xff] }
 0x137   : > { %v1382_v54 = vadd.f32 %v1381_v48, %v358_v34  ;;  %v2348_v34 = vmul.f32 %v4245_v38, %v4245_v38  ;;  %v2857_v45 = vadd.f32 %v2856_v39, %v2346_v26  ;;  %v1843_v48 = vadd.f32 %v1842_v41, %v4322_v37  ;;  %v4336_v38 = vld [vmem:[%s3816_s18 + $0x258] sm:$0xff] }
 0x138   : > { %v378_v41 = vld [vmem:[%s3809_s20 + $0x498] sm:$0xff] }
 0x139   : > { %v1383_v60 = vadd.f32 %v1382_v54, %v359_v50  ;;  %v2349_v50 = vmul.f32 %v4252_v42, %v4252_v42  ;;  %v2858_v51 = vadd.f32 %v2857_v45, %v2347_v30  ;;  %v1844_v54 = vadd.f32 %v1843_v48, %v4329_v44  ;;  %v4343_v42 = vld [vmem:[%s3816_s18 + $0x260] sm:$0xff] }
 0x13a   : > { %v379_v48 = vld [vmem:[%s3809_s20 + $0x4a0] sm:$0xff] }
 0x13b   : > { %v1384_v2 = vadd.f32 %v1383_v60, %v360_v56  ;;  %v2350_v56 = vmul.f32 %v4259_v46, %v4259_v46  ;;  %v2859_v58 = vadd.f32 %v2858_v51, %v2348_v34  ;;  %v1845_v60 = vadd.f32 %v1844_v54, %v4336_v38  ;;  %v4350_v46 = vld [vmem:[%s3816_s18 + $0x268] sm:$0xff] }
 0x13c   : > { %v380_v54 = vld [vmem:[%s3809_s20 + $0x4a8] sm:$0xff] }
 0x13d   : > { %v1385_v8 = vadd.f32 %v1384_v2, %v361_v62  ;;  %v2351_v62 = vmul.f32 %v4266_v52, %v4266_v52  ;;  %v2860_v0 = vadd.f32 %v2859_v58, %v2349_v50  ;;  %v1846_v2 = vadd.f32 %v1845_v60, %v4343_v42  ;;  %v4357_v52 = vld [vmem:[%s3816_s18 + $0x270] sm:$0xff] }
 0x13e   : > { %v381_v60 = vld [vmem:[%s3809_s20 + $0x4b0] sm:$0xff] }
 0x13f   : > { %v1386_v14 = vadd.f32 %v1385_v8, %v362_v4  ;;  %v2352_v4 = vmul.f32 %v4273_v57, %v4273_v57  ;;  %v2861_v6 = vadd.f32 %v2860_v0, %v2350_v56  ;;  %v1847_v8 = vadd.f32 %v1846_v2, %v4350_v46  ;;  %v4364_v57 = vld [vmem:[%s3816_s18 + $0x278] sm:$0xff] }
 0x140   : > { %v382_v2 = vld [vmem:[%s3809_s20 + $0x4b8] sm:$0xff] }
 0x141   : > { %v1387_v20 = vadd.f32 %v1386_v14, %v363_v10  ;;  %v2353_v10 = vmul.f32 %v4280_v63, %v4280_v63  ;;  %v2862_v12 = vadd.f32 %v2861_v6, %v2351_v62  ;;  %v1848_v14 = vadd.f32 %v1847_v8, %v4357_v52  ;;  %v4371_v63 = vld [vmem:[%s3816_s18 + $0x280] sm:$0xff] }
 0x142   : > { %v383_v8 = vld [vmem:[%s3809_s20 + $0x4c0] sm:$0xff] }
 0x143   : > { %v1388_v27 = vadd.f32 %v1387_v20, %v364_v16  ;;  %v2354_v16 = vmul.f32 %v4287_v5, %v4287_v5  ;;  %v2863_v18 = vadd.f32 %v2862_v12, %v2352_v4  ;;  %v1849_v20 = vadd.f32 %v1848_v14, %v4364_v57  ;;  %v4378_v5 = vld [vmem:[%s3816_s18 + $0x288] sm:$0xff] }
 0x144   : > { %v384_v14 = vld [vmem:[%s3809_s20 + $0x4c8] sm:$0xff] }
 0x145   : > { %v1389_v33 = vadd.f32 %v1388_v27, %v365_v23  ;;  %v2355_v23 = vmul.f32 %v4294_v11, %v4294_v11  ;;  %v2864_v22 = vadd.f32 %v2863_v18, %v2353_v10  ;;  %v1850_v27 = vadd.f32 %v1849_v20, %v4371_v63  ;;  %v4385_v11 = vld [vmem:[%s3816_s18 + $0x290] sm:$0xff] }
 0x146   : > { %v385_v20 = vld [vmem:[%s3809_s20 + $0x4d0] sm:$0xff] }
 0x147   : > { %v1390_v40 = vadd.f32 %v1389_v33, %v366_v29  ;;  %v2356_v29 = vmul.f32 %v4301_v17, %v4301_v17  ;;  %v2865_v26 = vadd.f32 %v2864_v22, %v2354_v16  ;;  %v1851_v33 = vadd.f32 %v1850_v27, %v4378_v5  ;;  %v4392_v17 = vld [vmem:[%s3816_s18 + $0x298] sm:$0xff] }
 0x148   : > { %v386_v27 = vld [vmem:[%s3809_s20 + $0x4d8] sm:$0xff] }
 0x149   : > { %v1391_v47 = vadd.f32 %v1390_v40, %v367_v36  ;;  %v2357_v36 = vmul.f32 %v4308_v24, %v4308_v24  ;;  %v2866_v30 = vadd.f32 %v2865_v26, %v2355_v23  ;;  %v1852_v40 = vadd.f32 %v1851_v33, %v4385_v11  ;;  %v4399_v24 = vld [vmem:[%s3816_s18 + $0x2a0] sm:$0xff] }
 0x14a   : > { %v387_v33 = vld [vmem:[%s3809_s20 + $0x4e0] sm:$0xff] }
 0x14b   : > { %v1392_v53 = vadd.f32 %v1391_v47, %v368_v43  ;;  %v2358_v43 = vmul.f32 %v4315_v31, %v4315_v31  ;;  %v2867_v34 = vadd.f32 %v2866_v30, %v2356_v29  ;;  %v1853_v47 = vadd.f32 %v1852_v40, %v4392_v17  ;;  %v4406_v31 = vld [vmem:[%s3816_s18 + $0x2a8] sm:$0xff] }
 0x14c   : > { %v388_v40 = vld [vmem:[%s3809_s20 + $0x4e8] sm:$0xff] }
 0x14d   : > { %v1393_v59 = vadd.f32 %v1392_v53, %v369_v49  ;;  %v2359_v49 = vmul.f32 %v4322_v37, %v4322_v37  ;;  %v2868_v50 = vadd.f32 %v2867_v34, %v2357_v36  ;;  %v1854_v53 = vadd.f32 %v1853_v47, %v4399_v24  ;;  %v4413_v37 = vld [vmem:[%s3816_s18 + $0x2b0] sm:$0xff] }
 0x14e   : > { %v389_v47 = vld [vmem:[%s3809_s20 + $0x4f0] sm:$0xff] }
 0x14f   : > { %v1394_v1 = vadd.f32 %v1393_v59, %v370_v55  ;;  %v2360_v55 = vmul.f32 %v4329_v44, %v4329_v44  ;;  %v2869_v56 = vadd.f32 %v2868_v50, %v2358_v43  ;;  %v1855_v59 = vadd.f32 %v1854_v53, %v4406_v31  ;;  %v4420_v44 = vld [vmem:[%s3816_s18 + $0x2b8] sm:$0xff] }
 0x150   : > { %v390_v53 = vld [vmem:[%s3809_s20 + $0x4f8] sm:$0xff] }
 0x151   : > { %v1395_v7 = vadd.f32 %v1394_v1, %v371_v61  ;;  %v2361_v61 = vmul.f32 %v4336_v38, %v4336_v38  ;;  %v2870_v62 = vadd.f32 %v2869_v56, %v2359_v49  ;;  %v1856_v1 = vadd.f32 %v1855_v59, %v4413_v37  ;;  %v4427_v38 = vld [vmem:[%s3816_s18 + $0x2c0] sm:$0xff] }
 0x152   : > { %v391_v59 = vld [vmem:[%s3809_s20 + $0x500] sm:$0xff] }
 0x153   : > { %v1396_v13 = vadd.f32 %v1395_v7, %v372_v3  ;;  %v2362_v3 = vmul.f32 %v4343_v42, %v4343_v42  ;;  %v2871_v4 = vadd.f32 %v2870_v62, %v2360_v55  ;;  %v1857_v7 = vadd.f32 %v1856_v1, %v4420_v44  ;;  %v4434_v42 = vld [vmem:[%s3816_s18 + $0x2c8] sm:$0xff] }
 0x154   : > { %v392_v1 = vld [vmem:[%s3809_s20 + $0x508] sm:$0xff] }
 0x155   : > { %v1397_v19 = vadd.f32 %v1396_v13, %v373_v9  ;;  %v2363_v9 = vmul.f32 %v4350_v46, %v4350_v46  ;;  %v2872_v10 = vadd.f32 %v2871_v4, %v2361_v61  ;;  %v1858_v13 = vadd.f32 %v1857_v7, %v4427_v38  ;;  %v4441_v46 = vld [vmem:[%s3816_s18 + $0x2d0] sm:$0xff] }
 0x156   : > { %v393_v7 = vld [vmem:[%s3809_s20 + $0x510] sm:$0xff] }
 0x157   : > { %v1398_v25 = vadd.f32 %v1397_v19, %v374_v15  ;;  %v2364_v15 = vmul.f32 %v4357_v52, %v4357_v52  ;;  %v2873_v16 = vadd.f32 %v2872_v10, %v2362_v3  ;;  %v1859_v19 = vadd.f32 %v1858_v13, %v4434_v42  ;;  %v4448_v52 = vld [vmem:[%s3816_s18 + $0x2d8] sm:$0xff] }
 0x158   : > { %v394_v13 = vld [vmem:[%s3809_s20 + $0x518] sm:$0xff] }
 0x159   : > { %v1399_v32 = vadd.f32 %v1398_v25, %v375_v21  ;;  %v2365_v21 = vmul.f32 %v4364_v57, %v4364_v57  ;;  %v2874_v23 = vadd.f32 %v2873_v16, %v2363_v9  ;;  %v1860_v25 = vadd.f32 %v1859_v19, %v4441_v46  ;;  %v4455_v57 = vld [vmem:[%s3816_s18 + $0x2e0] sm:$0xff] }
 0x15a   : > { %v395_v19 = vld [vmem:[%s3809_s20 + $0x520] sm:$0xff] }
 0x15b   : > { %v1400_v39 = vadd.f32 %v1399_v32, %v376_v28  ;;  %v2366_v28 = vmul.f32 %v4371_v63, %v4371_v63  ;;  %v2875_v29 = vadd.f32 %v2874_v23, %v2364_v15  ;;  %v1861_v32 = vadd.f32 %v1860_v25, %v4448_v52  ;;  %v4462_v63 = vld [vmem:[%s3816_s18 + $0x2e8] sm:$0xff] }
 0x15c   : > { %v396_v25 = vld [vmem:[%s3809_s20 + $0x528] sm:$0xff] }
 0x15d   : > { %v1401_v45 = vadd.f32 %v1400_v39, %v377_v35  ;;  %v2367_v35 = vmul.f32 %v4378_v5, %v4378_v5  ;;  %v2876_v36 = vadd.f32 %v2875_v29, %v2365_v21  ;;  %v1862_v39 = vadd.f32 %v1861_v32, %v4455_v57  ;;  %v4469_v5 = vld [vmem:[%s3816_s18 + $0x2f0] sm:$0xff] }
 0x15e   : > { %v397_v32 = vld [vmem:[%s3809_s20 + $0x530] sm:$0xff] }
 0x15f   : > { %v1402_v51 = vadd.f32 %v1401_v45, %v378_v41  ;;  %v2368_v41 = vmul.f32 %v4385_v11, %v4385_v11  ;;  %v2877_v43 = vadd.f32 %v2876_v36, %v2366_v28  ;;  %v1863_v45 = vadd.f32 %v1862_v39, %v4462_v63  ;;  %v4476_v11 = vld [vmem:[%s3816_s18 + $0x2f8] sm:$0xff] }
 0x160   : > { %v398_v39 = vld [vmem:[%s3809_s20 + $0x538] sm:$0xff] }
 0x161   : > { %v1403_v58 = vadd.f32 %v1402_v51, %v379_v48  ;;  %v2369_v48 = vmul.f32 %v4392_v17, %v4392_v17  ;;  %v2878_v49 = vadd.f32 %v2877_v43, %v2367_v35  ;;  %v1864_v51 = vadd.f32 %v1863_v45, %v4469_v5  ;;  %v4483_v17 = vld [vmem:[%s3816_s18 + $0x300] sm:$0xff] }
 0x162   : > { %v399_v45 = vld [vmem:[%s3809_s20 + $0x540] sm:$0xff] }
 0x163   : > { %v1404_v0 = vadd.f32 %v1403_v58, %v380_v54  ;;  %v2370_v54 = vmul.f32 %v4399_v24, %v4399_v24  ;;  %v2879_v55 = vadd.f32 %v2878_v49, %v2368_v41  ;;  %v1865_v58 = vadd.f32 %v1864_v51, %v4476_v11  ;;  %v4490_v24 = vld [vmem:[%s3816_s18 + $0x308] sm:$0xff] }
 0x164   : > { %v400_v51 = vld [vmem:[%s3809_s20 + $0x548] sm:$0xff] }
 0x165   : > { %v1405_v6 = vadd.f32 %v1404_v0, %v381_v60  ;;  %v2371_v60 = vmul.f32 %v4406_v31, %v4406_v31  ;;  %v2880_v61 = vadd.f32 %v2879_v55, %v2369_v48  ;;  %v1866_v0 = vadd.f32 %v1865_v58, %v4483_v17  ;;  %v4497_v31 = vld [vmem:[%s3816_s18 + $0x310] sm:$0xff] }
 0x166   : > { %v401_v58 = vld [vmem:[%s3809_s20 + $0x550] sm:$0xff] }
 0x167   : > { %v1406_v12 = vadd.f32 %v1405_v6, %v382_v2  ;;  %v2372_v2 = vmul.f32 %v4413_v37, %v4413_v37  ;;  %v2881_v3 = vadd.f32 %v2880_v61, %v2370_v54  ;;  %v1867_v6 = vadd.f32 %v1866_v0, %v4490_v24  ;;  %v4504_v37 = vld [vmem:[%s3816_s18 + $0x318] sm:$0xff] }
 0x168   : > { %v402_v0 = vld [vmem:[%s3809_s20 + $0x558] sm:$0xff] }
 0x169   : > { %v1407_v18 = vadd.f32 %v1406_v12, %v383_v8  ;;  %v2373_v8 = vmul.f32 %v4420_v44, %v4420_v44  ;;  %v2882_v9 = vadd.f32 %v2881_v3, %v2371_v60  ;;  %v1868_v12 = vadd.f32 %v1867_v6, %v4497_v31  ;;  %v4511_v44 = vld [vmem:[%s3816_s18 + $0x320] sm:$0xff] }
 0x16a   : > { %v403_v6 = vld [vmem:[%s3809_s20 + $0x560] sm:$0xff] }
 0x16b   : > { %v1408_v22 = vadd.f32 %v1407_v18, %v384_v14  ;;  %v2374_v14 = vmul.f32 %v4427_v38, %v4427_v38  ;;  %v2883_v15 = vadd.f32 %v2882_v9, %v2372_v2  ;;  %v1869_v18 = vadd.f32 %v1868_v12, %v4504_v37  ;;  %v4518_v38 = vld [vmem:[%s3816_s18 + $0x328] sm:$0xff] }
 0x16c   : > { %v404_v12 = vld [vmem:[%s3809_s20 + $0x568] sm:$0xff] }
 0x16d   : > { %v1409_v26 = vadd.f32 %v1408_v22, %v385_v20  ;;  %v2375_v20 = vmul.f32 %v4434_v42, %v4434_v42  ;;  %v2884_v21 = vadd.f32 %v2883_v15, %v2373_v8  ;;  %v1870_v22 = vadd.f32 %v1869_v18, %v4511_v44  ;;  %v4525_v42 = vld [vmem:[%s3816_s18 + $0x330] sm:$0xff] }
 0x16e   : > { %v405_v18 = vld [vmem:[%s3809_s20 + $0x570] sm:$0xff] }
 0x16f   : > { %v1410_v30 = vadd.f32 %v1409_v26, %v386_v27  ;;  %v2376_v27 = vmul.f32 %v4441_v46, %v4441_v46  ;;  %v2885_v28 = vadd.f32 %v2884_v21, %v2374_v14  ;;  %v1871_v26 = vadd.f32 %v1870_v22, %v4518_v38  ;;  %v4532_v46 = vld [vmem:[%s3816_s18 + $0x338] sm:$0xff] }
 0x170   : > { %v406_v22 = vld [vmem:[%s3809_s20 + $0x578] sm:$0xff] }
 0x171   : > { %v1411_v34 = vadd.f32 %v1410_v30, %v387_v33  ;;  %v2377_v33 = vmul.f32 %v4448_v52, %v4448_v52  ;;  %v2886_v35 = vadd.f32 %v2885_v28, %v2375_v20  ;;  %v1872_v30 = vadd.f32 %v1871_v26, %v4525_v42  ;;  %v4539_v52 = vld [vmem:[%s3816_s18 + $0x340] sm:$0xff] }
 0x172   : > { %v407_v26 = vld [vmem:[%s3809_s20 + $0x580] sm:$0xff] }
 0x173   : > { %v1412_v50 = vadd.f32 %v1411_v34, %v388_v40  ;;  %v2378_v40 = vmul.f32 %v4455_v57, %v4455_v57  ;;  %v2887_v41 = vadd.f32 %v2886_v35, %v2376_v27  ;;  %v1873_v34 = vadd.f32 %v1872_v30, %v4532_v46  ;;  %v4546_v57 = vld [vmem:[%s3816_s18 + $0x348] sm:$0xff] }
 0x174   : > { %v408_v30 = vld [vmem:[%s3809_s20 + $0x588] sm:$0xff] }
 0x175   : > { %v1413_v56 = vadd.f32 %v1412_v50, %v389_v47  ;;  %v2379_v47 = vmul.f32 %v4462_v63, %v4462_v63  ;;  %v2888_v48 = vadd.f32 %v2887_v41, %v2377_v33  ;;  %v1874_v50 = vadd.f32 %v1873_v34, %v4539_v52  ;;  %v4553_v63 = vld [vmem:[%s3816_s18 + $0x350] sm:$0xff] }
 0x176   : > { %v409_v34 = vld [vmem:[%s3809_s20 + $0x590] sm:$0xff] }
 0x177   : > { %v1414_v62 = vadd.f32 %v1413_v56, %v390_v53  ;;  %v2380_v53 = vmul.f32 %v4469_v5, %v4469_v5  ;;  %v2889_v54 = vadd.f32 %v2888_v48, %v2378_v40  ;;  %v1875_v56 = vadd.f32 %v1874_v50, %v4546_v57  ;;  %v4560_v5 = vld [vmem:[%s3816_s18 + $0x358] sm:$0xff] }
 0x178   : > { %v410_v50 = vld [vmem:[%s3809_s20 + $0x598] sm:$0xff] }
 0x179   : > { %v1415_v4 = vadd.f32 %v1414_v62, %v391_v59  ;;  %v2381_v59 = vmul.f32 %v4476_v11, %v4476_v11  ;;  %v2890_v60 = vadd.f32 %v2889_v54, %v2379_v47  ;;  %v1876_v62 = vadd.f32 %v1875_v56, %v4553_v63  ;;  %v4567_v11 = vld [vmem:[%s3816_s18 + $0x360] sm:$0xff] }
 0x17a   : > { %v411_v56 = vld [vmem:[%s3809_s20 + $0x5a0] sm:$0xff] }
 0x17b   : > { %v1416_v10 = vadd.f32 %v1415_v4, %v392_v1  ;;  %v2382_v1 = vmul.f32 %v4483_v17, %v4483_v17  ;;  %v2891_v2 = vadd.f32 %v2890_v60, %v2380_v53  ;;  %v1877_v4 = vadd.f32 %v1876_v62, %v4560_v5  ;;  %v4574_v17 = vld [vmem:[%s3816_s18 + $0x368] sm:$0xff] }
 0x17c   : > { %v412_v62 = vld [vmem:[%s3809_s20 + $0x5a8] sm:$0xff] }
 0x17d   : > { %v1417_v16 = vadd.f32 %v1416_v10, %v393_v7  ;;  %v2383_v7 = vmul.f32 %v4490_v24, %v4490_v24  ;;  %v2892_v8 = vadd.f32 %v2891_v2, %v2381_v59  ;;  %v1878_v10 = vadd.f32 %v1877_v4, %v4567_v11  ;;  %v4581_v24 = vld [vmem:[%s3816_s18 + $0x370] sm:$0xff] }
 0x17e   : > { %v413_v4 = vld [vmem:[%s3809_s20 + $0x5b0] sm:$0xff] }
 0x17f   : > { %v1418_v23 = vadd.f32 %v1417_v16, %v394_v13  ;;  %v2384_v13 = vmul.f32 %v4497_v31, %v4497_v31  ;;  %v2893_v14 = vadd.f32 %v2892_v8, %v2382_v1  ;;  %v1879_v16 = vadd.f32 %v1878_v10, %v4574_v17  ;;  %v4588_v31 = vld [vmem:[%s3816_s18 + $0x378] sm:$0xff] }
 0x180   : > { %v414_v10 = vld [vmem:[%s3809_s20 + $0x5b8] sm:$0xff] }
 0x181   : > { %v1419_v29 = vadd.f32 %v1418_v23, %v395_v19  ;;  %v2385_v19 = vmul.f32 %v4504_v37, %v4504_v37  ;;  %v2894_v20 = vadd.f32 %v2893_v14, %v2383_v7  ;;  %v1880_v23 = vadd.f32 %v1879_v16, %v4581_v24  ;;  %v4595_v37 = vld [vmem:[%s3816_s18 + $0x380] sm:$0xff] }
 0x182   : > { %v415_v16 = vld [vmem:[%s3809_s20 + $0x5c0] sm:$0xff] }
 0x183   : > { %v1420_v36 = vadd.f32 %v1419_v29, %v396_v25  ;;  %v2386_v25 = vmul.f32 %v4511_v44, %v4511_v44  ;;  %v2895_v27 = vadd.f32 %v2894_v20, %v2384_v13  ;;  %v1881_v29 = vadd.f32 %v1880_v23, %v4588_v31  ;;  %v4602_v44 = vld [vmem:[%s3816_s18 + $0x388] sm:$0xff] }
 0x184   : > { %v416_v23 = vld [vmem:[%s3809_s20 + $0x5c8] sm:$0xff] }
 0x185   : > { %v1421_v43 = vadd.f32 %v1420_v36, %v397_v32  ;;  %v2387_v32 = vmul.f32 %v4518_v38, %v4518_v38  ;;  %v2896_v33 = vadd.f32 %v2895_v27, %v2385_v19  ;;  %v1882_v36 = vadd.f32 %v1881_v29, %v4595_v37  ;;  %v4609_v38 = vld [vmem:[%s3816_s18 + $0x390] sm:$0xff] }
 0x186   : > { %v417_v29 = vld [vmem:[%s3809_s20 + $0x5d0] sm:$0xff] }
 0x187   : > { %v1422_v49 = vadd.f32 %v1421_v43, %v398_v39  ;;  %v2388_v39 = vmul.f32 %v4525_v42, %v4525_v42  ;;  %v2897_v40 = vadd.f32 %v2896_v33, %v2386_v25  ;;  %v1883_v43 = vadd.f32 %v1882_v36, %v4602_v44  ;;  %v4616_v42 = vld [vmem:[%s3816_s18 + $0x398] sm:$0xff] }
 0x188   : > { %v418_v36 = vld [vmem:[%s3809_s20 + $0x5d8] sm:$0xff] }
 0x189   : > { %v1423_v55 = vadd.f32 %v1422_v49, %v399_v45  ;;  %v2389_v45 = vmul.f32 %v4532_v46, %v4532_v46  ;;  %v2898_v47 = vadd.f32 %v2897_v40, %v2387_v32  ;;  %v1884_v49 = vadd.f32 %v1883_v43, %v4609_v38  ;;  %v4623_v46 = vld [vmem:[%s3816_s18 + $0x3a0] sm:$0xff] }
 0x18a   : > { %v419_v43 = vld [vmem:[%s3809_s20 + $0x5e0] sm:$0xff] }
 0x18b   : > { %v1424_v61 = vadd.f32 %v1423_v55, %v400_v51  ;;  %v2390_v51 = vmul.f32 %v4539_v52, %v4539_v52  ;;  %v2899_v53 = vadd.f32 %v2898_v47, %v2388_v39  ;;  %v1885_v55 = vadd.f32 %v1884_v49, %v4616_v42  ;;  %v4630_v52 = vld [vmem:[%s3816_s18 + $0x3a8] sm:$0xff] }
 0x18c   : > { %v420_v49 = vld [vmem:[%s3809_s20 + $0x5e8] sm:$0xff] }
 0x18d   : > { %v1425_v3 = vadd.f32 %v1424_v61, %v401_v58  ;;  %v2391_v58 = vmul.f32 %v4546_v57, %v4546_v57  ;;  %v2900_v59 = vadd.f32 %v2899_v53, %v2389_v45  ;;  %v1886_v61 = vadd.f32 %v1885_v55, %v4623_v46  ;;  %v4637_v57 = vld [vmem:[%s3816_s18 + $0x3b0] sm:$0xff] }
 0x18e   : > { %v421_v55 = vld [vmem:[%s3809_s20 + $0x5f0] sm:$0xff] }
 0x18f   : > { %v1426_v9 = vadd.f32 %v1425_v3, %v402_v0  ;;  %v2392_v0 = vmul.f32 %v4553_v63, %v4553_v63  ;;  %v2901_v1 = vadd.f32 %v2900_v59, %v2390_v51  ;;  %v1887_v3 = vadd.f32 %v1886_v61, %v4630_v52  ;;  %v4644_v63 = vld [vmem:[%s3816_s18 + $0x3b8] sm:$0xff] }
 0x190   : > { %v422_v61 = vld [vmem:[%s3809_s20 + $0x5f8] sm:$0xff] }
 0x191   : > { %v1427_v15 = vadd.f32 %v1426_v9, %v403_v6  ;;  %v2393_v6 = vmul.f32 %v4560_v5, %v4560_v5  ;;  %v2902_v7 = vadd.f32 %v2901_v1, %v2391_v58  ;;  %v1888_v9 = vadd.f32 %v1887_v3, %v4637_v57  ;;  %v4651_v5 = vld [vmem:[%s3816_s18 + $0x3c0] sm:$0xff] }
 0x192   : > { %v423_v3 = vld [vmem:[%s3809_s20 + $0x600] sm:$0xff] }
 0x193   : > { %v1428_v21 = vadd.f32 %v1427_v15, %v404_v12  ;;  %v2394_v12 = vmul.f32 %v4567_v11, %v4567_v11  ;;  %v2903_v13 = vadd.f32 %v2902_v7, %v2392_v0  ;;  %v1889_v15 = vadd.f32 %v1888_v9, %v4644_v63  ;;  %v4658_v11 = vld [vmem:[%s3816_s18 + $0x3c8] sm:$0xff] }
 0x194   : > { %v424_v9 = vld [vmem:[%s3809_s20 + $0x608] sm:$0xff] }
 0x195   : > { %v1429_v28 = vadd.f32 %v1428_v21, %v405_v18  ;;  %v2395_v18 = vmul.f32 %v4574_v17, %v4574_v17  ;;  %v2904_v19 = vadd.f32 %v2903_v13, %v2393_v6  ;;  %v1890_v21 = vadd.f32 %v1889_v15, %v4651_v5  ;;  %v4665_v17 = vld [vmem:[%s3816_s18 + $0x3d0] sm:$0xff] }
 0x196   : > { %v425_v15 = vld [vmem:[%s3809_s20 + $0x610] sm:$0xff] }
 0x197   : > { %v1430_v35 = vadd.f32 %v1429_v28, %v406_v22  ;;  %v2396_v22 = vmul.f32 %v4581_v24, %v4581_v24  ;;  %v2905_v25 = vadd.f32 %v2904_v19, %v2394_v12  ;;  %v1891_v28 = vadd.f32 %v1890_v21, %v4658_v11  ;;  %v4672_v24 = vld [vmem:[%s3816_s18 + $0x3d8] sm:$0xff] }
 0x198   : > { %v426_v21 = vld [vmem:[%s3809_s20 + $0x618] sm:$0xff] }
 0x199   : > { %v1431_v41 = vadd.f32 %v1430_v35, %v407_v26  ;;  %v2397_v26 = vmul.f32 %v4588_v31, %v4588_v31  ;;  %v2906_v32 = vadd.f32 %v2905_v25, %v2395_v18  ;;  %v1892_v35 = vadd.f32 %v1891_v28, %v4665_v17  ;;  %v4679_v31 = vld [vmem:[%s3816_s18 + $0x3e0] sm:$0xff] }
 0x19a   : > { %v427_v28 = vld [vmem:[%s3809_s20 + $0x620] sm:$0xff] }
 0x19b   : > { %v1432_v48 = vadd.f32 %v1431_v41, %v408_v30  ;;  %v2398_v30 = vmul.f32 %v4595_v37, %v4595_v37  ;;  %v2907_v39 = vadd.f32 %v2906_v32, %v2396_v22  ;;  %v1893_v41 = vadd.f32 %v1892_v35, %v4672_v24  ;;  %v4686_v37 = vld [vmem:[%s3816_s18 + $0x3e8] sm:$0xff] }
 0x19c   : > { %v428_v35 = vld [vmem:[%s3809_s20 + $0x628] sm:$0xff] }
 0x19d   : > { %v1433_v54 = vadd.f32 %v1432_v48, %v409_v34  ;;  %v2399_v34 = vmul.f32 %v4602_v44, %v4602_v44  ;;  %v2908_v45 = vadd.f32 %v2907_v39, %v2397_v26  ;;  %v1894_v48 = vadd.f32 %v1893_v41, %v4679_v31  ;;  %v4693_v44 = vld [vmem:[%s3816_s18 + $0x3f0] sm:$0xff] }
 0x19e   : > { %v429_v41 = vld [vmem:[%s3809_s20 + $0x630] sm:$0xff] }
 0x19f   : > { %v1434_v60 = vadd.f32 %v1433_v54, %v410_v50  ;;  %v2400_v50 = vmul.f32 %v4609_v38, %v4609_v38  ;;  %v2909_v51 = vadd.f32 %v2908_v45, %v2398_v30  ;;  %v1895_v54 = vadd.f32 %v1894_v48, %v4686_v37  ;;  %v4700_v38 = vld [vmem:[%s3816_s18 + $0x3f8] sm:$0xff] }
 0x1a0   : > { %v430_v48 = vld [vmem:[%s3809_s20 + $0x638] sm:$0xff] }
 0x1a1   : > { %v1435_v2 = vadd.f32 %v1434_v60, %v411_v56  ;;  %v2401_v56 = vmul.f32 %v4616_v42, %v4616_v42  ;;  %v2910_v58 = vadd.f32 %v2909_v51, %v2399_v34  ;;  %v1896_v60 = vadd.f32 %v1895_v54, %v4693_v44  ;;  %v4707_v42 = vld [vmem:[%s3816_s18 + $0x400] sm:$0xff] }
 0x1a2   : > { %v431_v54 = vld [vmem:[%s3809_s20 + $0x640] sm:$0xff] }
 0x1a3   : > { %v1436_v8 = vadd.f32 %v1435_v2, %v412_v62  ;;  %v2402_v62 = vmul.f32 %v4623_v46, %v4623_v46  ;;  %v2911_v0 = vadd.f32 %v2910_v58, %v2400_v50  ;;  %v1897_v2 = vadd.f32 %v1896_v60, %v4700_v38  ;;  %v4714_v46 = vld [vmem:[%s3816_s18 + $0x408] sm:$0xff] }
 0x1a4   : > { %v432_v60 = vld [vmem:[%s3809_s20 + $0x648] sm:$0xff] }
 0x1a5   : > { %v1437_v14 = vadd.f32 %v1436_v8, %v413_v4  ;;  %v2403_v4 = vmul.f32 %v4630_v52, %v4630_v52  ;;  %v2912_v6 = vadd.f32 %v2911_v0, %v2401_v56  ;;  %v1898_v8 = vadd.f32 %v1897_v2, %v4707_v42  ;;  %v4721_v52 = vld [vmem:[%s3816_s18 + $0x410] sm:$0xff] }
 0x1a6   : > { %v433_v2 = vld [vmem:[%s3809_s20 + $0x650] sm:$0xff] }
 0x1a7   : > { %v1438_v20 = vadd.f32 %v1437_v14, %v414_v10  ;;  %v2404_v10 = vmul.f32 %v4637_v57, %v4637_v57  ;;  %v2913_v12 = vadd.f32 %v2912_v6, %v2402_v62  ;;  %v1899_v14 = vadd.f32 %v1898_v8, %v4714_v46  ;;  %v4728_v57 = vld [vmem:[%s3816_s18 + $0x418] sm:$0xff] }
 0x1a8   : > { %v434_v8 = vld [vmem:[%s3809_s20 + $0x658] sm:$0xff] }
 0x1a9   : > { %v1439_v27 = vadd.f32 %v1438_v20, %v415_v16  ;;  %v2405_v16 = vmul.f32 %v4644_v63, %v4644_v63  ;;  %v2914_v18 = vadd.f32 %v2913_v12, %v2403_v4  ;;  %v1900_v20 = vadd.f32 %v1899_v14, %v4721_v52  ;;  %v4735_v63 = vld [vmem:[%s3816_s18 + $0x420] sm:$0xff] }
 0x1aa   : > { %v435_v14 = vld [vmem:[%s3809_s20 + $0x660] sm:$0xff] }
 0x1ab   : > { %v1440_v33 = vadd.f32 %v1439_v27, %v416_v23  ;;  %v2406_v23 = vmul.f32 %v4651_v5, %v4651_v5  ;;  %v2915_v22 = vadd.f32 %v2914_v18, %v2404_v10  ;;  %v1901_v27 = vadd.f32 %v1900_v20, %v4728_v57  ;;  %v4742_v5 = vld [vmem:[%s3816_s18 + $0x428] sm:$0xff] }
 0x1ac   : > { %v436_v20 = vld [vmem:[%s3809_s20 + $0x668] sm:$0xff] }
 0x1ad   : > { %v1441_v40 = vadd.f32 %v1440_v33, %v417_v29  ;;  %v2407_v29 = vmul.f32 %v4658_v11, %v4658_v11  ;;  %v2916_v26 = vadd.f32 %v2915_v22, %v2405_v16  ;;  %v1902_v33 = vadd.f32 %v1901_v27, %v4735_v63  ;;  %v4749_v11 = vld [vmem:[%s3816_s18 + $0x430] sm:$0xff] }
 0x1ae   : > { %v437_v27 = vld [vmem:[%s3809_s20 + $0x670] sm:$0xff] }
 0x1af   : > { %v1442_v47 = vadd.f32 %v1441_v40, %v418_v36  ;;  %v2408_v36 = vmul.f32 %v4665_v17, %v4665_v17  ;;  %v2917_v30 = vadd.f32 %v2916_v26, %v2406_v23  ;;  %v1903_v40 = vadd.f32 %v1902_v33, %v4742_v5  ;;  %v4756_v17 = vld [vmem:[%s3816_s18 + $0x438] sm:$0xff] }
 0x1b0   : > { %v438_v33 = vld [vmem:[%s3809_s20 + $0x678] sm:$0xff] }
 0x1b1   : > { %v1443_v53 = vadd.f32 %v1442_v47, %v419_v43  ;;  %v2409_v43 = vmul.f32 %v4672_v24, %v4672_v24  ;;  %v2918_v34 = vadd.f32 %v2917_v30, %v2407_v29  ;;  %v1904_v47 = vadd.f32 %v1903_v40, %v4749_v11  ;;  %v4763_v24 = vld [vmem:[%s3816_s18 + $0x440] sm:$0xff] }
 0x1b2   : > { %v439_v40 = vld [vmem:[%s3809_s20 + $0x680] sm:$0xff] }
 0x1b3   : > { %v1444_v59 = vadd.f32 %v1443_v53, %v420_v49  ;;  %v2410_v49 = vmul.f32 %v4679_v31, %v4679_v31  ;;  %v2919_v50 = vadd.f32 %v2918_v34, %v2408_v36  ;;  %v1905_v53 = vadd.f32 %v1904_v47, %v4756_v17  ;;  %v4770_v31 = vld [vmem:[%s3816_s18 + $0x448] sm:$0xff] }
 0x1b4   : > { %v440_v47 = vld [vmem:[%s3809_s20 + $0x688] sm:$0xff] }
 0x1b5   : > { %v1445_v1 = vadd.f32 %v1444_v59, %v421_v55  ;;  %v2411_v55 = vmul.f32 %v4686_v37, %v4686_v37  ;;  %v2920_v56 = vadd.f32 %v2919_v50, %v2409_v43  ;;  %v1906_v59 = vadd.f32 %v1905_v53, %v4763_v24  ;;  %v4777_v37 = vld [vmem:[%s3816_s18 + $0x450] sm:$0xff] }
 0x1b6   : > { %v441_v53 = vld [vmem:[%s3809_s20 + $0x690] sm:$0xff] }
 0x1b7   : > { %v1446_v7 = vadd.f32 %v1445_v1, %v422_v61  ;;  %v2412_v61 = vmul.f32 %v4693_v44, %v4693_v44  ;;  %v2921_v62 = vadd.f32 %v2920_v56, %v2410_v49  ;;  %v1907_v1 = vadd.f32 %v1906_v59, %v4770_v31  ;;  %v4784_v44 = vld [vmem:[%s3816_s18 + $0x458] sm:$0xff] }
 0x1b8   : > { %v442_v59 = vld [vmem:[%s3809_s20 + $0x698] sm:$0xff] }
 0x1b9   : > { %v1447_v13 = vadd.f32 %v1446_v7, %v423_v3  ;;  %v2413_v3 = vmul.f32 %v4700_v38, %v4700_v38  ;;  %v2922_v4 = vadd.f32 %v2921_v62, %v2411_v55  ;;  %v1908_v7 = vadd.f32 %v1907_v1, %v4777_v37  ;;  %v4791_v38 = vld [vmem:[%s3816_s18 + $0x460] sm:$0xff] }
 0x1ba   : > { %v443_v1 = vld [vmem:[%s3809_s20 + $0x6a0] sm:$0xff] }
 0x1bb   : > { %v1448_v19 = vadd.f32 %v1447_v13, %v424_v9  ;;  %v2414_v9 = vmul.f32 %v4707_v42, %v4707_v42  ;;  %v2923_v10 = vadd.f32 %v2922_v4, %v2412_v61  ;;  %v1909_v13 = vadd.f32 %v1908_v7, %v4784_v44  ;;  %v4798_v42 = vld [vmem:[%s3816_s18 + $0x468] sm:$0xff] }
 0x1bc   : > { %v444_v7 = vld [vmem:[%s3809_s20 + $0x6a8] sm:$0xff] }
 0x1bd   : > { %v1449_v25 = vadd.f32 %v1448_v19, %v425_v15  ;;  %v2415_v15 = vmul.f32 %v4714_v46, %v4714_v46  ;;  %v2924_v16 = vadd.f32 %v2923_v10, %v2413_v3  ;;  %v1910_v19 = vadd.f32 %v1909_v13, %v4791_v38  ;;  %v4805_v46 = vld [vmem:[%s3816_s18 + $0x470] sm:$0xff] }
 0x1be   : > { %v445_v13 = vld [vmem:[%s3809_s20 + $0x6b0] sm:$0xff] }
 0x1bf   : > { %v1450_v32 = vadd.f32 %v1449_v25, %v426_v21  ;;  %v2416_v21 = vmul.f32 %v4721_v52, %v4721_v52  ;;  %v2925_v23 = vadd.f32 %v2924_v16, %v2414_v9  ;;  %v1911_v25 = vadd.f32 %v1910_v19, %v4798_v42  ;;  %v4812_v52 = vld [vmem:[%s3816_s18 + $0x478] sm:$0xff] }
 0x1c0   : > { %v446_v19 = vld [vmem:[%s3809_s20 + $0x6b8] sm:$0xff] }
 0x1c1   : > { %v1451_v39 = vadd.f32 %v1450_v32, %v427_v28  ;;  %v2417_v28 = vmul.f32 %v4728_v57, %v4728_v57  ;;  %v2926_v29 = vadd.f32 %v2925_v23, %v2415_v15  ;;  %v1912_v32 = vadd.f32 %v1911_v25, %v4805_v46  ;;  %v4819_v57 = vld [vmem:[%s3816_s18 + $0x480] sm:$0xff] }
 0x1c2   : > { %v447_v25 = vld [vmem:[%s3809_s20 + $0x6c0] sm:$0xff] }
 0x1c3   : > { %v1452_v45 = vadd.f32 %v1451_v39, %v428_v35  ;;  %v2418_v35 = vmul.f32 %v4735_v63, %v4735_v63  ;;  %v2927_v36 = vadd.f32 %v2926_v29, %v2416_v21  ;;  %v1913_v39 = vadd.f32 %v1912_v32, %v4812_v52  ;;  %v4826_v63 = vld [vmem:[%s3816_s18 + $0x488] sm:$0xff] }
 0x1c4   : > { %v448_v32 = vld [vmem:[%s3809_s20 + $0x6c8] sm:$0xff] }
 0x1c5   : > { %v1453_v51 = vadd.f32 %v1452_v45, %v429_v41  ;;  %v2419_v41 = vmul.f32 %v4742_v5, %v4742_v5  ;;  %v2928_v43 = vadd.f32 %v2927_v36, %v2417_v28  ;;  %v1914_v45 = vadd.f32 %v1913_v39, %v4819_v57  ;;  %v4833_v5 = vld [vmem:[%s3816_s18 + $0x490] sm:$0xff] }
 0x1c6   : > { %v449_v39 = vld [vmem:[%s3809_s20 + $0x6d0] sm:$0xff] }
 0x1c7   : > { %v1454_v58 = vadd.f32 %v1453_v51, %v430_v48  ;;  %v2420_v48 = vmul.f32 %v4749_v11, %v4749_v11  ;;  %v2929_v49 = vadd.f32 %v2928_v43, %v2418_v35  ;;  %v1915_v51 = vadd.f32 %v1914_v45, %v4826_v63  ;;  %v4840_v11 = vld [vmem:[%s3816_s18 + $0x498] sm:$0xff] }
 0x1c8   : > { %v450_v45 = vld [vmem:[%s3809_s20 + $0x6d8] sm:$0xff] }
 0x1c9   : > { %v1455_v0 = vadd.f32 %v1454_v58, %v431_v54  ;;  %v2421_v54 = vmul.f32 %v4756_v17, %v4756_v17  ;;  %v2930_v55 = vadd.f32 %v2929_v49, %v2419_v41  ;;  %v1916_v58 = vadd.f32 %v1915_v51, %v4833_v5  ;;  %v4847_v17 = vld [vmem:[%s3816_s18 + $0x4a0] sm:$0xff] }
 0x1ca   : > { %v451_v51 = vld [vmem:[%s3809_s20 + $0x6e0] sm:$0xff] }
 0x1cb   : > { %v1456_v6 = vadd.f32 %v1455_v0, %v432_v60  ;;  %v2422_v60 = vmul.f32 %v4763_v24, %v4763_v24  ;;  %v2931_v61 = vadd.f32 %v2930_v55, %v2420_v48  ;;  %v1917_v0 = vadd.f32 %v1916_v58, %v4840_v11  ;;  %v4854_v24 = vld [vmem:[%s3816_s18 + $0x4a8] sm:$0xff] }
 0x1cc   : > { %v452_v58 = vld [vmem:[%s3809_s20 + $0x6e8] sm:$0xff] }
 0x1cd   : > { %v1457_v12 = vadd.f32 %v1456_v6, %v433_v2  ;;  %v2423_v2 = vmul.f32 %v4770_v31, %v4770_v31  ;;  %v2932_v3 = vadd.f32 %v2931_v61, %v2421_v54  ;;  %v1918_v6 = vadd.f32 %v1917_v0, %v4847_v17  ;;  %v4861_v31 = vld [vmem:[%s3816_s18 + $0x4b0] sm:$0xff] }
 0x1ce   : > { %v453_v0 = vld [vmem:[%s3809_s20 + $0x6f0] sm:$0xff] }
 0x1cf   : > { %v1458_v18 = vadd.f32 %v1457_v12, %v434_v8  ;;  %v2424_v8 = vmul.f32 %v4777_v37, %v4777_v37  ;;  %v2933_v9 = vadd.f32 %v2932_v3, %v2422_v60  ;;  %v1919_v12 = vadd.f32 %v1918_v6, %v4854_v24  ;;  %v4868_v37 = vld [vmem:[%s3816_s18 + $0x4b8] sm:$0xff] }
 0x1d0   : > { %v454_v6 = vld [vmem:[%s3809_s20 + $0x6f8] sm:$0xff] }
 0x1d1   : > { %v1459_v22 = vadd.f32 %v1458_v18, %v435_v14  ;;  %v2425_v14 = vmul.f32 %v4784_v44, %v4784_v44  ;;  %v2934_v15 = vadd.f32 %v2933_v9, %v2423_v2  ;;  %v1920_v18 = vadd.f32 %v1919_v12, %v4861_v31  ;;  %v4875_v44 = vld [vmem:[%s3816_s18 + $0x4c0] sm:$0xff] }
 0x1d2   : > { %v455_v12 = vld [vmem:[%s3809_s20 + $0x700] sm:$0xff] }
 0x1d3   : > { %v1460_v26 = vadd.f32 %v1459_v22, %v436_v20  ;;  %v2426_v20 = vmul.f32 %v4791_v38, %v4791_v38  ;;  %v2935_v21 = vadd.f32 %v2934_v15, %v2424_v8  ;;  %v1921_v22 = vadd.f32 %v1920_v18, %v4868_v37  ;;  %v4882_v38 = vld [vmem:[%s3816_s18 + $0x4c8] sm:$0xff] }
 0x1d4   : > { %v456_v18 = vld [vmem:[%s3809_s20 + $0x708] sm:$0xff] }
 0x1d5   : > { %v1461_v30 = vadd.f32 %v1460_v26, %v437_v27  ;;  %v2427_v27 = vmul.f32 %v4798_v42, %v4798_v42  ;;  %v2936_v28 = vadd.f32 %v2935_v21, %v2425_v14  ;;  %v1922_v26 = vadd.f32 %v1921_v22, %v4875_v44  ;;  %v4889_v42 = vld [vmem:[%s3816_s18 + $0x4d0] sm:$0xff] }
 0x1d6   : > { %v457_v22 = vld [vmem:[%s3809_s20 + $0x710] sm:$0xff] }
 0x1d7   : > { %v1462_v34 = vadd.f32 %v1461_v30, %v438_v33  ;;  %v2428_v33 = vmul.f32 %v4805_v46, %v4805_v46  ;;  %v2937_v35 = vadd.f32 %v2936_v28, %v2426_v20  ;;  %v1923_v30 = vadd.f32 %v1922_v26, %v4882_v38  ;;  %v4896_v46 = vld [vmem:[%s3816_s18 + $0x4d8] sm:$0xff] }
 0x1d8   : > { %v458_v26 = vld [vmem:[%s3809_s20 + $0x718] sm:$0xff] }
 0x1d9   : > { %v1463_v50 = vadd.f32 %v1462_v34, %v439_v40  ;;  %v2429_v40 = vmul.f32 %v4812_v52, %v4812_v52  ;;  %v2938_v41 = vadd.f32 %v2937_v35, %v2427_v27  ;;  %v1924_v34 = vadd.f32 %v1923_v30, %v4889_v42  ;;  %v4903_v52 = vld [vmem:[%s3816_s18 + $0x4e0] sm:$0xff] }
 0x1da   : > { %v459_v30 = vld [vmem:[%s3809_s20 + $0x720] sm:$0xff] }
 0x1db   : > { %v1464_v56 = vadd.f32 %v1463_v50, %v440_v47  ;;  %v2430_v47 = vmul.f32 %v4819_v57, %v4819_v57  ;;  %v2939_v48 = vadd.f32 %v2938_v41, %v2428_v33  ;;  %v1925_v50 = vadd.f32 %v1924_v34, %v4896_v46  ;;  %v4910_v57 = vld [vmem:[%s3816_s18 + $0x4e8] sm:$0xff] }
 0x1dc   : > { %v460_v34 = vld [vmem:[%s3809_s20 + $0x728] sm:$0xff] }
 0x1dd   : > { %v1465_v62 = vadd.f32 %v1464_v56, %v441_v53  ;;  %v2431_v53 = vmul.f32 %v4826_v63, %v4826_v63  ;;  %v2940_v54 = vadd.f32 %v2939_v48, %v2429_v40  ;;  %v1926_v56 = vadd.f32 %v1925_v50, %v4903_v52  ;;  %v4917_v63 = vld [vmem:[%s3816_s18 + $0x4f0] sm:$0xff] }
 0x1de   : > { %v461_v50 = vld [vmem:[%s3809_s20 + $0x730] sm:$0xff] }
 0x1df   : > { %v1466_v4 = vadd.f32 %v1465_v62, %v442_v59  ;;  %v2432_v59 = vmul.f32 %v4833_v5, %v4833_v5  ;;  %v2941_v60 = vadd.f32 %v2940_v54, %v2430_v47  ;;  %v1927_v62 = vadd.f32 %v1926_v56, %v4910_v57  ;;  %v4924_v5 = vld [vmem:[%s3816_s18 + $0x4f8] sm:$0xff] }
 0x1e0   : > { %v462_v56 = vld [vmem:[%s3809_s20 + $0x738] sm:$0xff] }
 0x1e1   : > { %v1467_v10 = vadd.f32 %v1466_v4, %v443_v1  ;;  %v2433_v1 = vmul.f32 %v4840_v11, %v4840_v11  ;;  %v2942_v2 = vadd.f32 %v2941_v60, %v2431_v53  ;;  %v1928_v4 = vadd.f32 %v1927_v62, %v4917_v63  ;;  %v4931_v11 = vld [vmem:[%s3816_s18 + $0x500] sm:$0xff] }
 0x1e2   : > { %v463_v62 = vld [vmem:[%s3809_s20 + $0x740] sm:$0xff] }
 0x1e3   : > { %v1468_v16 = vadd.f32 %v1467_v10, %v444_v7  ;;  %v2434_v7 = vmul.f32 %v4847_v17, %v4847_v17  ;;  %v2943_v8 = vadd.f32 %v2942_v2, %v2432_v59  ;;  %v1929_v10 = vadd.f32 %v1928_v4, %v4924_v5  ;;  %v4938_v17 = vld [vmem:[%s3816_s18 + $0x508] sm:$0xff] }
 0x1e4   : > { %v464_v4 = vld [vmem:[%s3809_s20 + $0x748] sm:$0xff] }
 0x1e5   : > { %v1469_v23 = vadd.f32 %v1468_v16, %v445_v13  ;;  %v2435_v13 = vmul.f32 %v4854_v24, %v4854_v24  ;;  %v2944_v14 = vadd.f32 %v2943_v8, %v2433_v1  ;;  %v1930_v16 = vadd.f32 %v1929_v10, %v4931_v11  ;;  %v4945_v24 = vld [vmem:[%s3816_s18 + $0x510] sm:$0xff] }
 0x1e6   : > { %v465_v10 = vld [vmem:[%s3809_s20 + $0x750] sm:$0xff] }
 0x1e7   : > { %v1470_v29 = vadd.f32 %v1469_v23, %v446_v19  ;;  %v2436_v19 = vmul.f32 %v4861_v31, %v4861_v31  ;;  %v2945_v20 = vadd.f32 %v2944_v14, %v2434_v7  ;;  %v1931_v23 = vadd.f32 %v1930_v16, %v4938_v17  ;;  %v4952_v31 = vld [vmem:[%s3816_s18 + $0x518] sm:$0xff] }
 0x1e8   : > { %v466_v16 = vld [vmem:[%s3809_s20 + $0x758] sm:$0xff] }
 0x1e9   : > { %v1471_v36 = vadd.f32 %v1470_v29, %v447_v25  ;;  %v2437_v25 = vmul.f32 %v4868_v37, %v4868_v37  ;;  %v2946_v27 = vadd.f32 %v2945_v20, %v2435_v13  ;;  %v1932_v29 = vadd.f32 %v1931_v23, %v4945_v24  ;;  %v4959_v37 = vld [vmem:[%s3816_s18 + $0x520] sm:$0xff] }
 0x1ea   : > { %v467_v23 = vld [vmem:[%s3809_s20 + $0x760] sm:$0xff] }
 0x1eb   : > { %v1472_v43 = vadd.f32 %v1471_v36, %v448_v32  ;;  %v2438_v32 = vmul.f32 %v4875_v44, %v4875_v44  ;;  %v2947_v33 = vadd.f32 %v2946_v27, %v2436_v19  ;;  %v1933_v36 = vadd.f32 %v1932_v29, %v4952_v31  ;;  %v4966_v44 = vld [vmem:[%s3816_s18 + $0x528] sm:$0xff] }
 0x1ec   : > { %v468_v29 = vld [vmem:[%s3809_s20 + $0x768] sm:$0xff] }
 0x1ed   : > { %v1473_v49 = vadd.f32 %v1472_v43, %v449_v39  ;;  %v2439_v39 = vmul.f32 %v4882_v38, %v4882_v38  ;;  %v2948_v40 = vadd.f32 %v2947_v33, %v2437_v25  ;;  %v1934_v43 = vadd.f32 %v1933_v36, %v4959_v37  ;;  %v4973_v38 = vld [vmem:[%s3816_s18 + $0x530] sm:$0xff] }
 0x1ee   : > { %v469_v36 = vld [vmem:[%s3809_s20 + $0x770] sm:$0xff] }
 0x1ef   : > { %v1474_v55 = vadd.f32 %v1473_v49, %v450_v45  ;;  %v2440_v45 = vmul.f32 %v4889_v42, %v4889_v42  ;;  %v2949_v47 = vadd.f32 %v2948_v40, %v2438_v32  ;;  %v1935_v49 = vadd.f32 %v1934_v43, %v4966_v44  ;;  %v4980_v42 = vld [vmem:[%s3816_s18 + $0x538] sm:$0xff] }
 0x1f0   : > { %v470_v43 = vld [vmem:[%s3809_s20 + $0x778] sm:$0xff] }
 0x1f1   : > { %v1475_v61 = vadd.f32 %v1474_v55, %v451_v51  ;;  %v2441_v51 = vmul.f32 %v4896_v46, %v4896_v46  ;;  %v2950_v53 = vadd.f32 %v2949_v47, %v2439_v39  ;;  %v1936_v55 = vadd.f32 %v1935_v49, %v4973_v38  ;;  %v4987_v46 = vld [vmem:[%s3816_s18 + $0x540] sm:$0xff] }
 0x1f2   : > { %v471_v49 = vld [vmem:[%s3809_s20 + $0x780] sm:$0xff] }
 0x1f3   : > { %v1476_v3 = vadd.f32 %v1475_v61, %v452_v58  ;;  %v2442_v58 = vmul.f32 %v4903_v52, %v4903_v52  ;;  %v2951_v59 = vadd.f32 %v2950_v53, %v2440_v45  ;;  %v1937_v61 = vadd.f32 %v1936_v55, %v4980_v42  ;;  %v4994_v52 = vld [vmem:[%s3816_s18 + $0x548] sm:$0xff] }
 0x1f4   : > { %v472_v55 = vld [vmem:[%s3809_s20 + $0x788] sm:$0xff] }
 0x1f5   : > { %v1477_v9 = vadd.f32 %v1476_v3, %v453_v0  ;;  %v2443_v0 = vmul.f32 %v4910_v57, %v4910_v57  ;;  %v2952_v1 = vadd.f32 %v2951_v59, %v2441_v51  ;;  %v1938_v3 = vadd.f32 %v1937_v61, %v4987_v46  ;;  %v5001_v57 = vld [vmem:[%s3816_s18 + $0x550] sm:$0xff] }
 0x1f6   : > { %v473_v61 = vld [vmem:[%s3809_s20 + $0x790] sm:$0xff] }
 0x1f7   : > { %v1478_v15 = vadd.f32 %v1477_v9, %v454_v6  ;;  %v2444_v6 = vmul.f32 %v4917_v63, %v4917_v63  ;;  %v2953_v7 = vadd.f32 %v2952_v1, %v2442_v58  ;;  %v1939_v9 = vadd.f32 %v1938_v3, %v4994_v52  ;;  %v5008_v63 = vld [vmem:[%s3816_s18 + $0x558] sm:$0xff] }
 0x1f8   : > { %v474_v3 = vld [vmem:[%s3809_s20 + $0x798] sm:$0xff] }
 0x1f9   : > { %v1479_v21 = vadd.f32 %v1478_v15, %v455_v12  ;;  %v2445_v12 = vmul.f32 %v4924_v5, %v4924_v5  ;;  %v2954_v13 = vadd.f32 %v2953_v7, %v2443_v0  ;;  %v1940_v15 = vadd.f32 %v1939_v9, %v5001_v57  ;;  %v5015_v5 = vld [vmem:[%s3816_s18 + $0x560] sm:$0xff] }
 0x1fa   : > { %v475_v9 = vld [vmem:[%s3809_s20 + $0x7a0] sm:$0xff] }
 0x1fb   : > { %v1480_v28 = vadd.f32 %v1479_v21, %v456_v18  ;;  %v2446_v18 = vmul.f32 %v4931_v11, %v4931_v11  ;;  %v2955_v19 = vadd.f32 %v2954_v13, %v2444_v6  ;;  %v1941_v21 = vadd.f32 %v1940_v15, %v5008_v63  ;;  %v5022_v11 = vld [vmem:[%s3816_s18 + $0x568] sm:$0xff] }
 0x1fc   : > { %v476_v15 = vld [vmem:[%s3809_s20 + $0x7a8] sm:$0xff] }
 0x1fd   : > { %v1481_v35 = vadd.f32 %v1480_v28, %v457_v22  ;;  %v2447_v22 = vmul.f32 %v4938_v17, %v4938_v17  ;;  %v2956_v25 = vadd.f32 %v2955_v19, %v2445_v12  ;;  %v1942_v28 = vadd.f32 %v1941_v21, %v5015_v5  ;;  %v5029_v17 = vld [vmem:[%s3816_s18 + $0x570] sm:$0xff] }
 0x1fe   : > { %v477_v21 = vld [vmem:[%s3809_s20 + $0x7b0] sm:$0xff] }
 0x1ff   : > { %v1482_v41 = vadd.f32 %v1481_v35, %v458_v26  ;;  %v2448_v26 = vmul.f32 %v4945_v24, %v4945_v24  ;;  %v2957_v32 = vadd.f32 %v2956_v25, %v2446_v18  ;;  %v1943_v35 = vadd.f32 %v1942_v28, %v5022_v11  ;;  %v5036_v24 = vld [vmem:[%s3816_s18 + $0x578] sm:$0xff] }
 0x200   : > { %v478_v28 = vld [vmem:[%s3809_s20 + $0x7b8] sm:$0xff] }
 0x201   : > { %v1483_v48 = vadd.f32 %v1482_v41, %v459_v30  ;;  %v2449_v30 = vmul.f32 %v4952_v31, %v4952_v31  ;;  %v2958_v39 = vadd.f32 %v2957_v32, %v2447_v22  ;;  %v1944_v41 = vadd.f32 %v1943_v35, %v5029_v17  ;;  %v5043_v31 = vld [vmem:[%s3816_s18 + $0x580] sm:$0xff] }
 0x202   : > { %v479_v35 = vld [vmem:[%s3809_s20 + $0x7c0] sm:$0xff] }
 0x203   : > { %v1484_v54 = vadd.f32 %v1483_v48, %v460_v34  ;;  %v2450_v34 = vmul.f32 %v4959_v37, %v4959_v37  ;;  %v2959_v45 = vadd.f32 %v2958_v39, %v2448_v26  ;;  %v1945_v48 = vadd.f32 %v1944_v41, %v5036_v24  ;;  %v5050_v37 = vld [vmem:[%s3816_s18 + $0x588] sm:$0xff] }
 0x204   : > { %v480_v41 = vld [vmem:[%s3809_s20 + $0x7c8] sm:$0xff] }
 0x205   : > { %v1485_v60 = vadd.f32 %v1484_v54, %v461_v50  ;;  %v2451_v50 = vmul.f32 %v4966_v44, %v4966_v44  ;;  %v2960_v51 = vadd.f32 %v2959_v45, %v2449_v30  ;;  %v1946_v54 = vadd.f32 %v1945_v48, %v5043_v31  ;;  %v5057_v44 = vld [vmem:[%s3816_s18 + $0x590] sm:$0xff] }
 0x206   : > { %v481_v48 = vld [vmem:[%s3809_s20 + $0x7d0] sm:$0xff] }
 0x207   : > { %v1486_v2 = vadd.f32 %v1485_v60, %v462_v56  ;;  %v2452_v56 = vmul.f32 %v4973_v38, %v4973_v38  ;;  %v2961_v58 = vadd.f32 %v2960_v51, %v2450_v34  ;;  %v1947_v60 = vadd.f32 %v1946_v54, %v5050_v37  ;;  %v5064_v38 = vld [vmem:[%s3816_s18 + $0x598] sm:$0xff] }
 0x208   : > { %v482_v54 = vld [vmem:[%s3809_s20 + $0x7d8] sm:$0xff] }
 0x209   : > { %v1487_v8 = vadd.f32 %v1486_v2, %v463_v62  ;;  %v2453_v62 = vmul.f32 %v4980_v42, %v4980_v42  ;;  %v2962_v0 = vadd.f32 %v2961_v58, %v2451_v50  ;;  %v1948_v2 = vadd.f32 %v1947_v60, %v5057_v44  ;;  %v5071_v42 = vld [vmem:[%s3816_s18 + $0x5a0] sm:$0xff] }
 0x20a   : > { %v483_v60 = vld [vmem:[%s3809_s20 + $0x7e0] sm:$0xff] }
 0x20b   : > { %v1488_v14 = vadd.f32 %v1487_v8, %v464_v4  ;;  %v2454_v4 = vmul.f32 %v4987_v46, %v4987_v46  ;;  %v2963_v6 = vadd.f32 %v2962_v0, %v2452_v56  ;;  %v1949_v8 = vadd.f32 %v1948_v2, %v5064_v38  ;;  %v5078_v46 = vld [vmem:[%s3816_s18 + $0x5a8] sm:$0xff] }
 0x20c   : > { %v484_v2 = vld [vmem:[%s3809_s20 + $0x7e8] sm:$0xff] }
 0x20d   : > { %v1489_v20 = vadd.f32 %v1488_v14, %v465_v10  ;;  %v2455_v10 = vmul.f32 %v4994_v52, %v4994_v52  ;;  %v2964_v12 = vadd.f32 %v2963_v6, %v2453_v62  ;;  %v1950_v14 = vadd.f32 %v1949_v8, %v5071_v42  ;;  %v5085_v52 = vld [vmem:[%s3816_s18 + $0x5b0] sm:$0xff] }
 0x20e   : > { %v485_v8 = vld [vmem:[%s3809_s20 + $0x7f0] sm:$0xff] }
 0x20f   : > { %v1490_v27 = vadd.f32 %v1489_v20, %v466_v16  ;;  %v2456_v16 = vmul.f32 %v5001_v57, %v5001_v57  ;;  %v2965_v18 = vadd.f32 %v2964_v12, %v2454_v4  ;;  %v1951_v20 = vadd.f32 %v1950_v14, %v5078_v46  ;;  %v5092_v57 = vld [vmem:[%s3816_s18 + $0x5b8] sm:$0xff] }
 0x210   : > { %v486_v14 = vld [vmem:[%s3809_s20 + $0x7f8] sm:$0xff] }
 0x211   : > { %v1491_v33 = vadd.f32 %v1490_v27, %v467_v23  ;;  %v2457_v23 = vmul.f32 %v5008_v63, %v5008_v63  ;;  %v2966_v22 = vadd.f32 %v2965_v18, %v2455_v10  ;;  %v1952_v27 = vadd.f32 %v1951_v20, %v5085_v52  ;;  %v5099_v63 = vld [vmem:[%s3816_s18 + $0x5c0] sm:$0xff] }
 0x212   : > { %v487_v20 = vld [vmem:[%s3809_s20 + $0x800] sm:$0xff] }
 0x213   : > { %v1492_v40 = vadd.f32 %v1491_v33, %v468_v29  ;;  %v2458_v29 = vmul.f32 %v5015_v5, %v5015_v5  ;;  %v2967_v26 = vadd.f32 %v2966_v22, %v2456_v16  ;;  %v1953_v33 = vadd.f32 %v1952_v27, %v5092_v57  ;;  %v5106_v5 = vld [vmem:[%s3816_s18 + $0x5c8] sm:$0xff] }
 0x214   : > { %v488_v27 = vld [vmem:[%s3809_s20 + $0x808] sm:$0xff] }
 0x215   : > { %v1493_v47 = vadd.f32 %v1492_v40, %v469_v36  ;;  %v2459_v36 = vmul.f32 %v5022_v11, %v5022_v11  ;;  %v2968_v30 = vadd.f32 %v2967_v26, %v2457_v23  ;;  %v1954_v40 = vadd.f32 %v1953_v33, %v5099_v63  ;;  %v5113_v11 = vld [vmem:[%s3816_s18 + $0x5d0] sm:$0xff] }
 0x216   : > { %v489_v33 = vld [vmem:[%s3809_s20 + $0x810] sm:$0xff] }
 0x217   : > { %v1494_v53 = vadd.f32 %v1493_v47, %v470_v43  ;;  %v2460_v43 = vmul.f32 %v5029_v17, %v5029_v17  ;;  %v2969_v34 = vadd.f32 %v2968_v30, %v2458_v29  ;;  %v1955_v47 = vadd.f32 %v1954_v40, %v5106_v5  ;;  %v5120_v17 = vld [vmem:[%s3816_s18 + $0x5d8] sm:$0xff] }
 0x218   : > { %v490_v40 = vld [vmem:[%s3809_s20 + $0x818] sm:$0xff] }
 0x219   : > { %v1495_v59 = vadd.f32 %v1494_v53, %v471_v49  ;;  %v2461_v49 = vmul.f32 %v5036_v24, %v5036_v24  ;;  %v2970_v50 = vadd.f32 %v2969_v34, %v2459_v36  ;;  %v1956_v53 = vadd.f32 %v1955_v47, %v5113_v11  ;;  %v5127_v24 = vld [vmem:[%s3816_s18 + $0x5e0] sm:$0xff] }
 0x21a   : > { %v491_v47 = vld [vmem:[%s3809_s20 + $0x820] sm:$0xff] }
 0x21b   : > { %v1496_v1 = vadd.f32 %v1495_v59, %v472_v55  ;;  %v2462_v55 = vmul.f32 %v5043_v31, %v5043_v31  ;;  %v2971_v56 = vadd.f32 %v2970_v50, %v2460_v43  ;;  %v1957_v59 = vadd.f32 %v1956_v53, %v5120_v17  ;;  %v5134_v31 = vld [vmem:[%s3816_s18 + $0x5e8] sm:$0xff] }
 0x21c   : > { %v492_v53 = vld [vmem:[%s3809_s20 + $0x828] sm:$0xff] }
 0x21d   : > { %v1497_v7 = vadd.f32 %v1496_v1, %v473_v61  ;;  %v2463_v61 = vmul.f32 %v5050_v37, %v5050_v37  ;;  %v2972_v62 = vadd.f32 %v2971_v56, %v2461_v49  ;;  %v1958_v1 = vadd.f32 %v1957_v59, %v5127_v24  ;;  %v5141_v37 = vld [vmem:[%s3816_s18 + $0x5f0] sm:$0xff] }
 0x21e   : > { %v493_v59 = vld [vmem:[%s3809_s20 + $0x830] sm:$0xff] }
 0x21f   : > { %v1498_v13 = vadd.f32 %v1497_v7, %v474_v3  ;;  %v2464_v3 = vmul.f32 %v5057_v44, %v5057_v44  ;;  %v2973_v4 = vadd.f32 %v2972_v62, %v2462_v55  ;;  %v1959_v7 = vadd.f32 %v1958_v1, %v5134_v31  ;;  %v5148_v44 = vld [vmem:[%s3816_s18 + $0x5f8] sm:$0xff] }
 0x220   : > { %v494_v1 = vld [vmem:[%s3809_s20 + $0x838] sm:$0xff] }
 0x221   : > { %v1499_v19 = vadd.f32 %v1498_v13, %v475_v9  ;;  %v2465_v9 = vmul.f32 %v5064_v38, %v5064_v38  ;;  %v2974_v10 = vadd.f32 %v2973_v4, %v2463_v61  ;;  %v1960_v13 = vadd.f32 %v1959_v7, %v5141_v37  ;;  %v5155_v38 = vld [vmem:[%s3816_s18 + $0x600] sm:$0xff] }
 0x222   : > { %v495_v7 = vld [vmem:[%s3809_s20 + $0x840] sm:$0xff] }
 0x223   : > { %v1500_v25 = vadd.f32 %v1499_v19, %v476_v15  ;;  %v2466_v15 = vmul.f32 %v5071_v42, %v5071_v42  ;;  %v2975_v16 = vadd.f32 %v2974_v10, %v2464_v3  ;;  %v1961_v19 = vadd.f32 %v1960_v13, %v5148_v44  ;;  %v5162_v42 = vld [vmem:[%s3816_s18 + $0x608] sm:$0xff] }
 0x224   : > { %v496_v13 = vld [vmem:[%s3809_s20 + $0x848] sm:$0xff] }
 0x225   : > { %v1501_v32 = vadd.f32 %v1500_v25, %v477_v21  ;;  %v2467_v21 = vmul.f32 %v5078_v46, %v5078_v46  ;;  %v2976_v23 = vadd.f32 %v2975_v16, %v2465_v9  ;;  %v1962_v25 = vadd.f32 %v1961_v19, %v5155_v38  ;;  %v5169_v46 = vld [vmem:[%s3816_s18 + $0x610] sm:$0xff] }
 0x226   : > { %v497_v19 = vld [vmem:[%s3809_s20 + $0x850] sm:$0xff] }
 0x227   : > { %v1502_v39 = vadd.f32 %v1501_v32, %v478_v28  ;;  %v2468_v28 = vmul.f32 %v5085_v52, %v5085_v52  ;;  %v2977_v29 = vadd.f32 %v2976_v23, %v2466_v15  ;;  %v1963_v32 = vadd.f32 %v1962_v25, %v5162_v42  ;;  %v5176_v52 = vld [vmem:[%s3816_s18 + $0x618] sm:$0xff] }
 0x228   : > { %v498_v25 = vld [vmem:[%s3809_s20 + $0x858] sm:$0xff] }
 0x229   : > { %v1503_v45 = vadd.f32 %v1502_v39, %v479_v35  ;;  %v2469_v35 = vmul.f32 %v5092_v57, %v5092_v57  ;;  %v2978_v36 = vadd.f32 %v2977_v29, %v2467_v21  ;;  %v1964_v39 = vadd.f32 %v1963_v32, %v5169_v46  ;;  %v5183_v57 = vld [vmem:[%s3816_s18 + $0x620] sm:$0xff] }
 0x22a   : > { %v499_v32 = vld [vmem:[%s3809_s20 + $0x860] sm:$0xff] }
 0x22b   : > { %v1504_v51 = vadd.f32 %v1503_v45, %v480_v41  ;;  %v2470_v41 = vmul.f32 %v5099_v63, %v5099_v63  ;;  %v2979_v43 = vadd.f32 %v2978_v36, %v2468_v28  ;;  %v1965_v45 = vadd.f32 %v1964_v39, %v5176_v52  ;;  %v5190_v63 = vld [vmem:[%s3816_s18 + $0x628] sm:$0xff] }
 0x22c   : > { %v500_v39 = vld [vmem:[%s3809_s20 + $0x868] sm:$0xff] }
 0x22d   : > { %v1505_v58 = vadd.f32 %v1504_v51, %v481_v48  ;;  %v2471_v48 = vmul.f32 %v5106_v5, %v5106_v5  ;;  %v2980_v49 = vadd.f32 %v2979_v43, %v2469_v35  ;;  %v1966_v51 = vadd.f32 %v1965_v45, %v5183_v57  ;;  %v5197_v5 = vld [vmem:[%s3816_s18 + $0x630] sm:$0xff] }
 0x22e   : > { %v501_v45 = vld [vmem:[%s3809_s20 + $0x870] sm:$0xff] }
 0x22f   : > { %v1506_v0 = vadd.f32 %v1505_v58, %v482_v54  ;;  %v2472_v54 = vmul.f32 %v5113_v11, %v5113_v11  ;;  %v2981_v55 = vadd.f32 %v2980_v49, %v2470_v41  ;;  %v1967_v58 = vadd.f32 %v1966_v51, %v5190_v63  ;;  %v5204_v11 = vld [vmem:[%s3816_s18 + $0x638] sm:$0xff] }
 0x230   : > { %v502_v51 = vld [vmem:[%s3809_s20 + $0x878] sm:$0xff] }
 0x231   : > { %v1507_v6 = vadd.f32 %v1506_v0, %v483_v60  ;;  %v2473_v60 = vmul.f32 %v5120_v17, %v5120_v17  ;;  %v2982_v61 = vadd.f32 %v2981_v55, %v2471_v48  ;;  %v1968_v0 = vadd.f32 %v1967_v58, %v5197_v5  ;;  %v5211_v17 = vld [vmem:[%s3816_s18 + $0x640] sm:$0xff] }
 0x232   : > { %v503_v58 = vld [vmem:[%s3809_s20 + $0x880] sm:$0xff] }
 0x233   : > { %v1508_v12 = vadd.f32 %v1507_v6, %v484_v2  ;;  %v2474_v2 = vmul.f32 %v5127_v24, %v5127_v24  ;;  %v2983_v3 = vadd.f32 %v2982_v61, %v2472_v54  ;;  %v1969_v6 = vadd.f32 %v1968_v0, %v5204_v11  ;;  %v5218_v24 = vld [vmem:[%s3816_s18 + $0x648] sm:$0xff] }
 0x234   : > { %v504_v0 = vld [vmem:[%s3809_s20 + $0x888] sm:$0xff] }
 0x235   : > { %v1509_v18 = vadd.f32 %v1508_v12, %v485_v8  ;;  %v2475_v8 = vmul.f32 %v5134_v31, %v5134_v31  ;;  %v2984_v9 = vadd.f32 %v2983_v3, %v2473_v60  ;;  %v1970_v12 = vadd.f32 %v1969_v6, %v5211_v17  ;;  %v5225_v31 = vld [vmem:[%s3816_s18 + $0x650] sm:$0xff] }
 0x236   : > { %v505_v6 = vld [vmem:[%s3809_s20 + $0x890] sm:$0xff] }
 0x237   : > { %v1510_v22 = vadd.f32 %v1509_v18, %v486_v14  ;;  %v2476_v14 = vmul.f32 %v5141_v37, %v5141_v37  ;;  %v2985_v15 = vadd.f32 %v2984_v9, %v2474_v2  ;;  %v1971_v18 = vadd.f32 %v1970_v12, %v5218_v24  ;;  %v5232_v37 = vld [vmem:[%s3816_s18 + $0x658] sm:$0xff] }
 0x238   : > { %v506_v12 = vld [vmem:[%s3809_s20 + $0x898] sm:$0xff] }
 0x239   : > { %v1511_v26 = vadd.f32 %v1510_v22, %v487_v20  ;;  %v2477_v20 = vmul.f32 %v5148_v44, %v5148_v44  ;;  %v2986_v21 = vadd.f32 %v2985_v15, %v2475_v8  ;;  %v1972_v22 = vadd.f32 %v1971_v18, %v5225_v31  ;;  %v5239_v44 = vld [vmem:[%s3816_s18 + $0x660] sm:$0xff] }
 0x23a   : > { %v507_v18 = vld [vmem:[%s3809_s20 + $0x8a0] sm:$0xff] }
 0x23b   : > { %v1512_v30 = vadd.f32 %v1511_v26, %v488_v27  ;;  %v2478_v27 = vmul.f32 %v5155_v38, %v5155_v38  ;;  %v2987_v28 = vadd.f32 %v2986_v21, %v2476_v14  ;;  %v1973_v26 = vadd.f32 %v1972_v22, %v5232_v37  ;;  %v5246_v38 = vld [vmem:[%s3816_s18 + $0x668] sm:$0xff] }
 0x23c   : > { %v508_v22 = vld [vmem:[%s3809_s20 + $0x8a8] sm:$0xff] }
 0x23d   : > { %v1513_v34 = vadd.f32 %v1512_v30, %v489_v33  ;;  %v2479_v33 = vmul.f32 %v5162_v42, %v5162_v42  ;;  %v2988_v35 = vadd.f32 %v2987_v28, %v2477_v20  ;;  %v1974_v30 = vadd.f32 %v1973_v26, %v5239_v44  ;;  %v5253_v42 = vld [vmem:[%s3816_s18 + $0x670] sm:$0xff] }
 0x23e   : > { %v509_v26 = vld [vmem:[%s3809_s20 + $0x8b0] sm:$0xff] }
 0x23f   : > { %v1514_v50 = vadd.f32 %v1513_v34, %v490_v40  ;;  %v2480_v40 = vmul.f32 %v5169_v46, %v5169_v46  ;;  %v2989_v41 = vadd.f32 %v2988_v35, %v2478_v27  ;;  %v1975_v34 = vadd.f32 %v1974_v30, %v5246_v38  ;;  %v5260_v46 = vld [vmem:[%s3816_s18 + $0x678] sm:$0xff] }
 0x240   : > { %v510_v30 = vld [vmem:[%s3809_s20 + $0x8b8] sm:$0xff] }
 0x241   : > { %v1515_v56 = vadd.f32 %v1514_v50, %v491_v47  ;;  %v2481_v47 = vmul.f32 %v5176_v52, %v5176_v52  ;;  %v2990_v48 = vadd.f32 %v2989_v41, %v2479_v33  ;;  %v1976_v50 = vadd.f32 %v1975_v34, %v5253_v42  ;;  %v5267_v52 = vld [vmem:[%s3816_s18 + $0x680] sm:$0xff] }
 0x242   : > { %v511_v34 = vld [vmem:[%s3809_s20 + $0x8c0] sm:$0xff] }
 0x243   : > { %v1516_v62 = vadd.f32 %v1515_v56, %v492_v53  ;;  %v2482_v53 = vmul.f32 %v5183_v57, %v5183_v57  ;;  %v2991_v54 = vadd.f32 %v2990_v48, %v2480_v40  ;;  %v1977_v56 = vadd.f32 %v1976_v50, %v5260_v46  ;;  %v5274_v57 = vld [vmem:[%s3816_s18 + $0x688] sm:$0xff] }
 0x244   : > { %v512_v50 = vld [vmem:[%s3809_s20 + $0x8c8] sm:$0xff] }
 0x245   : > { %v1517_v4 = vadd.f32 %v1516_v62, %v493_v59  ;;  %v2483_v59 = vmul.f32 %v5190_v63, %v5190_v63  ;;  %v2992_v60 = vadd.f32 %v2991_v54, %v2481_v47  ;;  %v1978_v62 = vadd.f32 %v1977_v56, %v5267_v52  ;;  %v5281_v63 = vld [vmem:[%s3816_s18 + $0x690] sm:$0xff] }
 0x246   : > { %v513_v56 = vld [vmem:[%s3809_s20 + $0x8d0] sm:$0xff] }
 0x247   : > { %v1518_v10 = vadd.f32 %v1517_v4, %v494_v1  ;;  %v2484_v1 = vmul.f32 %v5197_v5, %v5197_v5  ;;  %v2993_v2 = vadd.f32 %v2992_v60, %v2482_v53  ;;  %v1979_v4 = vadd.f32 %v1978_v62, %v5274_v57  ;;  %v5288_v5 = vld [vmem:[%s3816_s18 + $0x698] sm:$0xff] }
 0x248   : > { %v514_v62 = vld [vmem:[%s3809_s20 + $0x8d8] sm:$0xff] }
 0x249   : > { %v1519_v16 = vadd.f32 %v1518_v10, %v495_v7  ;;  %v2485_v7 = vmul.f32 %v5204_v11, %v5204_v11  ;;  %v2994_v8 = vadd.f32 %v2993_v2, %v2483_v59  ;;  %v1980_v10 = vadd.f32 %v1979_v4, %v5281_v63  ;;  %v5295_v11 = vld [vmem:[%s3816_s18 + $0x6a0] sm:$0xff] }
 0x24a   : > { %v515_v4 = vld [vmem:[%s3809_s20 + $0x8e0] sm:$0xff] }
 0x24b   : > { %v1520_v23 = vadd.f32 %v1519_v16, %v496_v13  ;;  %v2486_v13 = vmul.f32 %v5211_v17, %v5211_v17  ;;  %v2995_v14 = vadd.f32 %v2994_v8, %v2484_v1  ;;  %v1981_v16 = vadd.f32 %v1980_v10, %v5288_v5  ;;  %v5302_v17 = vld [vmem:[%s3816_s18 + $0x6a8] sm:$0xff] }
 0x24c   : > { %v516_v10 = vld [vmem:[%s3809_s20 + $0x8e8] sm:$0xff] }
 0x24d   : > { %v1521_v29 = vadd.f32 %v1520_v23, %v497_v19  ;;  %v2487_v19 = vmul.f32 %v5218_v24, %v5218_v24  ;;  %v2996_v20 = vadd.f32 %v2995_v14, %v2485_v7  ;;  %v1982_v23 = vadd.f32 %v1981_v16, %v5295_v11  ;;  %v5309_v24 = vld [vmem:[%s3816_s18 + $0x6b0] sm:$0xff] }
 0x24e   : > { %v517_v16 = vld [vmem:[%s3809_s20 + $0x8f0] sm:$0xff] }
 0x24f   : > { %v1522_v36 = vadd.f32 %v1521_v29, %v498_v25  ;;  %v2488_v25 = vmul.f32 %v5225_v31, %v5225_v31  ;;  %v2997_v27 = vadd.f32 %v2996_v20, %v2486_v13  ;;  %v1983_v29 = vadd.f32 %v1982_v23, %v5302_v17  ;;  %v5316_v31 = vld [vmem:[%s3816_s18 + $0x6b8] sm:$0xff] }
 0x250   : > { %v518_v23 = vld [vmem:[%s3809_s20 + $0x8f8] sm:$0xff] }
 0x251   : > { %v1523_v43 = vadd.f32 %v1522_v36, %v499_v32  ;;  %v2489_v32 = vmul.f32 %v5232_v37, %v5232_v37  ;;  %v2998_v33 = vadd.f32 %v2997_v27, %v2487_v19  ;;  %v1984_v36 = vadd.f32 %v1983_v29, %v5309_v24  ;;  %v5323_v37 = vld [vmem:[%s3816_s18 + $0x6c0] sm:$0xff] }
 0x252   : > { %v519_v29 = vld [vmem:[%s3809_s20 + $0x900] sm:$0xff] }
 0x253   : > { %v1524_v49 = vadd.f32 %v1523_v43, %v500_v39  ;;  %v2490_v39 = vmul.f32 %v5239_v44, %v5239_v44  ;;  %v2999_v40 = vadd.f32 %v2998_v33, %v2488_v25  ;;  %v1985_v43 = vadd.f32 %v1984_v36, %v5316_v31  ;;  %v5330_v44 = vld [vmem:[%s3816_s18 + $0x6c8] sm:$0xff] }
 0x254   : > { %v520_v36 = vld [vmem:[%s3809_s20 + $0x908] sm:$0xff] }
 0x255   : > { %v1525_v55 = vadd.f32 %v1524_v49, %v501_v45  ;;  %v2491_v45 = vmul.f32 %v5246_v38, %v5246_v38  ;;  %v3000_v47 = vadd.f32 %v2999_v40, %v2489_v32  ;;  %v1986_v49 = vadd.f32 %v1985_v43, %v5323_v37  ;;  %v5337_v38 = vld [vmem:[%s3816_s18 + $0x6d0] sm:$0xff] }
 0x256   : > { %v521_v43 = vld [vmem:[%s3809_s20 + $0x910] sm:$0xff] }
 0x257   : > { %v1526_v61 = vadd.f32 %v1525_v55, %v502_v51  ;;  %v2492_v51 = vmul.f32 %v5253_v42, %v5253_v42  ;;  %v3001_v53 = vadd.f32 %v3000_v47, %v2490_v39  ;;  %v1987_v55 = vadd.f32 %v1986_v49, %v5330_v44  ;;  %v5344_v42 = vld [vmem:[%s3816_s18 + $0x6d8] sm:$0xff] }
 0x258   : > { %v522_v49 = vld [vmem:[%s3809_s20 + $0x918] sm:$0xff] }
 0x259   : > { %v1527_v3 = vadd.f32 %v1526_v61, %v503_v58  ;;  %v2493_v58 = vmul.f32 %v5260_v46, %v5260_v46  ;;  %v3002_v59 = vadd.f32 %v3001_v53, %v2491_v45  ;;  %v1988_v61 = vadd.f32 %v1987_v55, %v5337_v38  ;;  %v5351_v46 = vld [vmem:[%s3816_s18 + $0x6e0] sm:$0xff] }
 0x25a   : > { %v523_v55 = vld [vmem:[%s3809_s20 + $0x920] sm:$0xff] }
 0x25b   : > { %v1528_v9 = vadd.f32 %v1527_v3, %v504_v0  ;;  %v2494_v0 = vmul.f32 %v5267_v52, %v5267_v52  ;;  %v3003_v1 = vadd.f32 %v3002_v59, %v2492_v51  ;;  %v1989_v3 = vadd.f32 %v1988_v61, %v5344_v42  ;;  %v5358_v52 = vld [vmem:[%s3816_s18 + $0x6e8] sm:$0xff] }
 0x25c   : > { %v524_v61 = vld [vmem:[%s3809_s20 + $0x928] sm:$0xff] }
 0x25d   : > { %v1529_v15 = vadd.f32 %v1528_v9, %v505_v6  ;;  %v2495_v6 = vmul.f32 %v5274_v57, %v5274_v57  ;;  %v3004_v7 = vadd.f32 %v3003_v1, %v2493_v58  ;;  %v1990_v9 = vadd.f32 %v1989_v3, %v5351_v46  ;;  %v5365_v57 = vld [vmem:[%s3816_s18 + $0x6f0] sm:$0xff] }
 0x25e   : > { %v525_v3 = vld [vmem:[%s3809_s20 + $0x930] sm:$0xff] }
 0x25f   : > { %v1530_v21 = vadd.f32 %v1529_v15, %v506_v12  ;;  %v2496_v12 = vmul.f32 %v5281_v63, %v5281_v63  ;;  %v3005_v13 = vadd.f32 %v3004_v7, %v2494_v0  ;;  %v1991_v15 = vadd.f32 %v1990_v9, %v5358_v52  ;;  %v5372_v63 = vld [vmem:[%s3816_s18 + $0x6f8] sm:$0xff] }
 0x260   : > { %v526_v9 = vld [vmem:[%s3809_s20 + $0x938] sm:$0xff] }
 0x261   : > { %v1531_v28 = vadd.f32 %v1530_v21, %v507_v18  ;;  %v2497_v18 = vmul.f32 %v5288_v5, %v5288_v5  ;;  %v3006_v19 = vadd.f32 %v3005_v13, %v2495_v6  ;;  %v1992_v21 = vadd.f32 %v1991_v15, %v5365_v57  ;;  %v5379_v5 = vld [vmem:[%s3816_s18 + $0x700] sm:$0xff] }
 0x262   : > { %v527_v15 = vld [vmem:[%s3809_s20 + $0x940] sm:$0xff] }
 0x263   : > { %v1532_v35 = vadd.f32 %v1531_v28, %v508_v22  ;;  %v2498_v22 = vmul.f32 %v5295_v11, %v5295_v11  ;;  %v3007_v25 = vadd.f32 %v3006_v19, %v2496_v12  ;;  %v1993_v28 = vadd.f32 %v1992_v21, %v5372_v63  ;;  %v5386_v11 = vld [vmem:[%s3816_s18 + $0x708] sm:$0xff] }
 0x264   : > { %v528_v21 = vld [vmem:[%s3809_s20 + $0x948] sm:$0xff] }
 0x265   : > { %v1533_v41 = vadd.f32 %v1532_v35, %v509_v26  ;;  %v2499_v26 = vmul.f32 %v5302_v17, %v5302_v17  ;;  %v3008_v32 = vadd.f32 %v3007_v25, %v2497_v18  ;;  %v1994_v35 = vadd.f32 %v1993_v28, %v5379_v5  ;;  %v5393_v17 = vld [vmem:[%s3816_s18 + $0x710] sm:$0xff] }
 0x266   : > { %v529_v28 = vld [vmem:[%s3809_s20 + $0x950] sm:$0xff] }
 0x267   : > { %v1534_v48 = vadd.f32 %v1533_v41, %v510_v30  ;;  %v2500_v30 = vmul.f32 %v5309_v24, %v5309_v24  ;;  %v3009_v39 = vadd.f32 %v3008_v32, %v2498_v22  ;;  %v1995_v41 = vadd.f32 %v1994_v35, %v5386_v11  ;;  %v5400_v24 = vld [vmem:[%s3816_s18 + $0x718] sm:$0xff] }
 0x268   : > { %v530_v35 = vld [vmem:[%s3809_s20 + $0x958] sm:$0xff] }
 0x269   : > { %v1535_v54 = vadd.f32 %v1534_v48, %v511_v34  ;;  %v2501_v34 = vmul.f32 %v5316_v31, %v5316_v31  ;;  %v3010_v45 = vadd.f32 %v3009_v39, %v2499_v26  ;;  %v1996_v48 = vadd.f32 %v1995_v41, %v5393_v17  ;;  %v5407_v31 = vld [vmem:[%s3816_s18 + $0x720] sm:$0xff] }
 0x26a   : > { %v531_v41 = vld [vmem:[%s3809_s20 + $0x960] sm:$0xff] }
 0x26b   : > { %v1536_v60 = vadd.f32 %v1535_v54, %v512_v50  ;;  %v2502_v50 = vmul.f32 %v5323_v37, %v5323_v37  ;;  %v3011_v51 = vadd.f32 %v3010_v45, %v2500_v30  ;;  %v1997_v54 = vadd.f32 %v1996_v48, %v5400_v24  ;;  %v5414_v37 = vld [vmem:[%s3816_s18 + $0x728] sm:$0xff] }
 0x26c   : > { %v532_v48 = vld [vmem:[%s3809_s20 + $0x968] sm:$0xff] }
 0x26d   : > { %v1537_v2 = vadd.f32 %v1536_v60, %v513_v56  ;;  %v2503_v56 = vmul.f32 %v5330_v44, %v5330_v44  ;;  %v3012_v58 = vadd.f32 %v3011_v51, %v2501_v34  ;;  %v1998_v60 = vadd.f32 %v1997_v54, %v5407_v31  ;;  %v5421_v44 = vld [vmem:[%s3816_s18 + $0x730] sm:$0xff] }
 0x26e   : > { %v533_v54 = vld [vmem:[%s3809_s20 + $0x970] sm:$0xff] }
 0x26f   : > { %v1538_v8 = vadd.f32 %v1537_v2, %v514_v62  ;;  %v2504_v62 = vmul.f32 %v5337_v38, %v5337_v38  ;;  %v3013_v0 = vadd.f32 %v3012_v58, %v2502_v50  ;;  %v1999_v2 = vadd.f32 %v1998_v60, %v5414_v37  ;;  %v5428_v38 = vld [vmem:[%s3816_s18 + $0x738] sm:$0xff] }
 0x270   : > { %v534_v60 = vld [vmem:[%s3809_s20 + $0x978] sm:$0xff] }
 0x271   : > { %v1539_v14 = vadd.f32 %v1538_v8, %v515_v4  ;;  %v2505_v4 = vmul.f32 %v5344_v42, %v5344_v42  ;;  %v3014_v6 = vadd.f32 %v3013_v0, %v2503_v56  ;;  %v2000_v8 = vadd.f32 %v1999_v2, %v5421_v44  ;;  %v5435_v42 = vld [vmem:[%s3816_s18 + $0x740] sm:$0xff] }
 0x272   : > { %v535_v2 = vld [vmem:[%s3809_s20 + $0x980] sm:$0xff] }
 0x273   : > { %v1540_v20 = vadd.f32 %v1539_v14, %v516_v10  ;;  %v2506_v10 = vmul.f32 %v5351_v46, %v5351_v46  ;;  %v3015_v12 = vadd.f32 %v3014_v6, %v2504_v62  ;;  %v2001_v14 = vadd.f32 %v2000_v8, %v5428_v38  ;;  %v5442_v46 = vld [vmem:[%s3816_s18 + $0x748] sm:$0xff] }
 0x274   : > { %v536_v8 = vld [vmem:[%s3809_s20 + $0x988] sm:$0xff] }
 0x275   : > { %v1541_v27 = vadd.f32 %v1540_v20, %v517_v16  ;;  %v2507_v16 = vmul.f32 %v5358_v52, %v5358_v52  ;;  %v3016_v18 = vadd.f32 %v3015_v12, %v2505_v4  ;;  %v2002_v20 = vadd.f32 %v2001_v14, %v5435_v42  ;;  %v5449_v52 = vld [vmem:[%s3816_s18 + $0x750] sm:$0xff] }
 0x276   : > { %v537_v14 = vld [vmem:[%s3809_s20 + $0x990] sm:$0xff] }
 0x277   : > { %v1542_v33 = vadd.f32 %v1541_v27, %v518_v23  ;;  %v2508_v23 = vmul.f32 %v5365_v57, %v5365_v57  ;;  %v3017_v22 = vadd.f32 %v3016_v18, %v2506_v10  ;;  %v2003_v27 = vadd.f32 %v2002_v20, %v5442_v46  ;;  %v5456_v57 = vld [vmem:[%s3816_s18 + $0x758] sm:$0xff] }
 0x278   : > { %v538_v20 = vld [vmem:[%s3809_s20 + $0x998] sm:$0xff] }
 0x279   : > { %v1543_v40 = vadd.f32 %v1542_v33, %v519_v29  ;;  %v2509_v29 = vmul.f32 %v5372_v63, %v5372_v63  ;;  %v3018_v26 = vadd.f32 %v3017_v22, %v2507_v16  ;;  %v2004_v33 = vadd.f32 %v2003_v27, %v5449_v52  ;;  %v5463_v63 = vld [vmem:[%s3816_s18 + $0x760] sm:$0xff] }
 0x27a   : > { %v539_v27 = vld [vmem:[%s3809_s20 + $0x9a0] sm:$0xff] }
 0x27b   : > { %v1544_v47 = vadd.f32 %v1543_v40, %v520_v36  ;;  %v2510_v36 = vmul.f32 %v5379_v5, %v5379_v5  ;;  %v3019_v30 = vadd.f32 %v3018_v26, %v2508_v23  ;;  %v2005_v40 = vadd.f32 %v2004_v33, %v5456_v57  ;;  %v5470_v5 = vld [vmem:[%s3816_s18 + $0x768] sm:$0xff] }
 0x27c   : > { %v540_v33 = vld [vmem:[%s3809_s20 + $0x9a8] sm:$0xff] }
 0x27d   : > { %v1545_v53 = vadd.f32 %v1544_v47, %v521_v43  ;;  %v2511_v43 = vmul.f32 %v5386_v11, %v5386_v11  ;;  %v3020_v34 = vadd.f32 %v3019_v30, %v2509_v29  ;;  %v2006_v47 = vadd.f32 %v2005_v40, %v5463_v63  ;;  %v5477_v11 = vld [vmem:[%s3816_s18 + $0x770] sm:$0xff] }
 0x27e   : > { %v541_v40 = vld [vmem:[%s3809_s20 + $0x9b0] sm:$0xff] }
 0x27f   : > { %v1546_v59 = vadd.f32 %v1545_v53, %v522_v49  ;;  %v2512_v49 = vmul.f32 %v5393_v17, %v5393_v17  ;;  %v3021_v50 = vadd.f32 %v3020_v34, %v2510_v36  ;;  %v2007_v53 = vadd.f32 %v2006_v47, %v5470_v5  ;;  %v5484_v17 = vld [vmem:[%s3816_s18 + $0x778] sm:$0xff] }
 0x280   : > { %v542_v47 = vld [vmem:[%s3809_s20 + $0x9b8] sm:$0xff] }
 0x281   : > { %v1547_v1 = vadd.f32 %v1546_v59, %v523_v55  ;;  %v2513_v55 = vmul.f32 %v5400_v24, %v5400_v24  ;;  %v3022_v56 = vadd.f32 %v3021_v50, %v2511_v43  ;;  %v2008_v59 = vadd.f32 %v2007_v53, %v5477_v11  ;;  %v5491_v24 = vld [vmem:[%s3816_s18 + $0x780] sm:$0xff] }
 0x282   : > { %v543_v53 = vld [vmem:[%s3809_s20 + $0x9c0] sm:$0xff] }
 0x283   : > { %v1548_v7 = vadd.f32 %v1547_v1, %v524_v61  ;;  %v2514_v61 = vmul.f32 %v5407_v31, %v5407_v31  ;;  %v3023_v62 = vadd.f32 %v3022_v56, %v2512_v49  ;;  %v2009_v1 = vadd.f32 %v2008_v59, %v5484_v17  ;;  %v5498_v31 = vld [vmem:[%s3816_s18 + $0x788] sm:$0xff] }
 0x284   : > { %v544_v59 = vld [vmem:[%s3809_s20 + $0x9c8] sm:$0xff] }
 0x285   : > { %v1549_v13 = vadd.f32 %v1548_v7, %v525_v3  ;;  %v2515_v3 = vmul.f32 %v5414_v37, %v5414_v37  ;;  %v3024_v4 = vadd.f32 %v3023_v62, %v2513_v55  ;;  %v2010_v7 = vadd.f32 %v2009_v1, %v5491_v24  ;;  %v5505_v37 = vld [vmem:[%s3816_s18 + $0x790] sm:$0xff] }
 0x286   : > { %v545_v1 = vld [vmem:[%s3809_s20 + $0x9d0] sm:$0xff] }
 0x287   : > { %v1550_v19 = vadd.f32 %v1549_v13, %v526_v9  ;;  %v2516_v9 = vmul.f32 %v5421_v44, %v5421_v44  ;;  %v3025_v10 = vadd.f32 %v3024_v4, %v2514_v61  ;;  %v2011_v13 = vadd.f32 %v2010_v7, %v5498_v31  ;;  %v5512_v44 = vld [vmem:[%s3816_s18 + $0x798] sm:$0xff] }
 0x288   : > { %v546_v7 = vld [vmem:[%s3809_s20 + $0x9d8] sm:$0xff] }
 0x289   : > { %v1551_v25 = vadd.f32 %v1550_v19, %v527_v15  ;;  %v2517_v15 = vmul.f32 %v5428_v38, %v5428_v38  ;;  %v3026_v16 = vadd.f32 %v3025_v10, %v2515_v3  ;;  %v2012_v19 = vadd.f32 %v2011_v13, %v5505_v37  ;;  %v5519_v38 = vld [vmem:[%s3816_s18 + $0x7a0] sm:$0xff] }
 0x28a   : > { %v547_v13 = vld [vmem:[%s3809_s20 + $0x9e0] sm:$0xff] }
 0x28b   : > { %v1552_v32 = vadd.f32 %v1551_v25, %v528_v21  ;;  %v2518_v21 = vmul.f32 %v5435_v42, %v5435_v42  ;;  %v3027_v23 = vadd.f32 %v3026_v16, %v2516_v9  ;;  %v2013_v25 = vadd.f32 %v2012_v19, %v5512_v44  ;;  %v5526_v42 = vld [vmem:[%s3816_s18 + $0x7a8] sm:$0xff] }
 0x28c   : > { %v548_v19 = vld [vmem:[%s3809_s20 + $0x9e8] sm:$0xff] }
 0x28d   : > { %v1553_v39 = vadd.f32 %v1552_v32, %v529_v28  ;;  %v2519_v28 = vmul.f32 %v5442_v46, %v5442_v46  ;;  %v3028_v29 = vadd.f32 %v3027_v23, %v2517_v15  ;;  %v2014_v32 = vadd.f32 %v2013_v25, %v5519_v38  ;;  %v5533_v46 = vld [vmem:[%s3816_s18 + $0x7b0] sm:$0xff] }
 0x28e   : > { %v549_v25 = vld [vmem:[%s3809_s20 + $0x9f0] sm:$0xff] }
 0x28f   : > { %v1554_v45 = vadd.f32 %v1553_v39, %v530_v35  ;;  %v2520_v35 = vmul.f32 %v5449_v52, %v5449_v52  ;;  %v3029_v36 = vadd.f32 %v3028_v29, %v2518_v21  ;;  %v2015_v39 = vadd.f32 %v2014_v32, %v5526_v42  ;;  %v5540_v52 = vld [vmem:[%s3816_s18 + $0x7b8] sm:$0xff] }
 0x290   : > { %v550_v32 = vld [vmem:[%s3809_s20 + $0x9f8] sm:$0xff] }
 0x291   : > { %v1555_v51 = vadd.f32 %v1554_v45, %v531_v41  ;;  %v2521_v41 = vmul.f32 %v5456_v57, %v5456_v57  ;;  %v3030_v43 = vadd.f32 %v3029_v36, %v2519_v28  ;;  %v2016_v45 = vadd.f32 %v2015_v39, %v5533_v46  ;;  %v5547_v57 = vld [vmem:[%s3816_s18 + $0x7c0] sm:$0xff] }
 0x292   : > { %v551_v39 = vld [vmem:[%s3809_s20 + $0xa00] sm:$0xff] }
 0x293   : > { %v1556_v58 = vadd.f32 %v1555_v51, %v532_v48  ;;  %v2522_v48 = vmul.f32 %v5463_v63, %v5463_v63  ;;  %v3031_v49 = vadd.f32 %v3030_v43, %v2520_v35  ;;  %v2017_v51 = vadd.f32 %v2016_v45, %v5540_v52  ;;  %v5554_v63 = vld [vmem:[%s3816_s18 + $0x7c8] sm:$0xff] }
 0x294   : > { %v552_v45 = vld [vmem:[%s3809_s20 + $0xa08] sm:$0xff] }
 0x295   : > { %v1557_v0 = vadd.f32 %v1556_v58, %v533_v54  ;;  %v2523_v54 = vmul.f32 %v5470_v5, %v5470_v5  ;;  %v3032_v55 = vadd.f32 %v3031_v49, %v2521_v41  ;;  %v2018_v58 = vadd.f32 %v2017_v51, %v5547_v57  ;;  %v5561_v5 = vld [vmem:[%s3816_s18 + $0x7d0] sm:$0xff] }
 0x296   : > { %v553_v51 = vld [vmem:[%s3809_s20 + $0xa10] sm:$0xff] }
 0x297   : > { %v1558_v6 = vadd.f32 %v1557_v0, %v534_v60  ;;  %v2524_v60 = vmul.f32 %v5477_v11, %v5477_v11  ;;  %v3033_v61 = vadd.f32 %v3032_v55, %v2522_v48  ;;  %v2019_v0 = vadd.f32 %v2018_v58, %v5554_v63  ;;  %v5568_v11 = vld [vmem:[%s3816_s18 + $0x7d8] sm:$0xff] }
 0x298   : > { %v554_v58 = vld [vmem:[%s3809_s20 + $0xa18] sm:$0xff] }
 0x299   : > { %v1559_v12 = vadd.f32 %v1558_v6, %v535_v2  ;;  %v2525_v2 = vmul.f32 %v5484_v17, %v5484_v17  ;;  %v3034_v3 = vadd.f32 %v3033_v61, %v2523_v54  ;;  %v2020_v6 = vadd.f32 %v2019_v0, %v5561_v5  ;;  %v5575_v17 = vld [vmem:[%s3816_s18 + $0x7e0] sm:$0xff] }
 0x29a   : > { %v555_v0 = vld [vmem:[%s3809_s20 + $0xa20] sm:$0xff] }
 0x29b   : > { %v1560_v18 = vadd.f32 %v1559_v12, %v536_v8  ;;  %v2526_v8 = vmul.f32 %v5491_v24, %v5491_v24  ;;  %v3035_v9 = vadd.f32 %v3034_v3, %v2524_v60  ;;  %v2021_v12 = vadd.f32 %v2020_v6, %v5568_v11  ;;  %v5582_v24 = vld [vmem:[%s3816_s18 + $0x7e8] sm:$0xff] }
 0x29c   : > { %v556_v6 = vld [vmem:[%s3809_s20 + $0xa28] sm:$0xff] }
 0x29d   : > { %v1561_v22 = vadd.f32 %v1560_v18, %v537_v14  ;;  %v2527_v14 = vmul.f32 %v5498_v31, %v5498_v31  ;;  %v3036_v15 = vadd.f32 %v3035_v9, %v2525_v2  ;;  %v2022_v18 = vadd.f32 %v2021_v12, %v5575_v17  ;;  %v5589_v31 = vld [vmem:[%s3816_s18 + $0x7f0] sm:$0xff] }
 0x29e   : > { %v557_v12 = vld [vmem:[%s3809_s20 + $0xa30] sm:$0xff] }
 0x29f   : > { %v1562_v26 = vadd.f32 %v1561_v22, %v538_v20  ;;  %v2528_v20 = vmul.f32 %v5505_v37, %v5505_v37  ;;  %v3037_v21 = vadd.f32 %v3036_v15, %v2526_v8  ;;  %v2023_v22 = vadd.f32 %v2022_v18, %v5582_v24  ;;  %v5596_v37 = vld [vmem:[%s3816_s18 + $0x7f8] sm:$0xff] }
 0x2a0   : > { %v558_v18 = vld [vmem:[%s3809_s20 + $0xa38] sm:$0xff] }
 0x2a1   : > { %v1563_v30 = vadd.f32 %v1562_v26, %v539_v27  ;;  %v2529_v27 = vmul.f32 %v5512_v44, %v5512_v44  ;;  %v3038_v28 = vadd.f32 %v3037_v21, %v2527_v14  ;;  %v2024_v26 = vadd.f32 %v2023_v22, %v5589_v31  ;;  %v5603_v44 = vld [vmem:[%s3816_s18 + $0x800] sm:$0xff] }
 0x2a2   : > { %v559_v22 = vld [vmem:[%s3809_s20 + $0xa40] sm:$0xff] }
 0x2a3   : > { %v1564_v34 = vadd.f32 %v1563_v30, %v540_v33  ;;  %v2530_v33 = vmul.f32 %v5519_v38, %v5519_v38  ;;  %v3039_v35 = vadd.f32 %v3038_v28, %v2528_v20  ;;  %v2025_v30 = vadd.f32 %v2024_v26, %v5596_v37  ;;  %v5610_v38 = vld [vmem:[%s3816_s18 + $0x808] sm:$0xff] }
 0x2a4   : > { %v560_v26 = vld [vmem:[%s3809_s20 + $0xa48] sm:$0xff] }
 0x2a5   : > { %v1565_v50 = vadd.f32 %v1564_v34, %v541_v40  ;;  %v2531_v40 = vmul.f32 %v5526_v42, %v5526_v42  ;;  %v3040_v41 = vadd.f32 %v3039_v35, %v2529_v27  ;;  %v2026_v34 = vadd.f32 %v2025_v30, %v5603_v44  ;;  %v5617_v42 = vld [vmem:[%s3816_s18 + $0x810] sm:$0xff] }
 0x2a6   : > { %v561_v30 = vld [vmem:[%s3809_s20 + $0xa50] sm:$0xff] }
 0x2a7   : > { %v1566_v56 = vadd.f32 %v1565_v50, %v542_v47  ;;  %v2532_v47 = vmul.f32 %v5533_v46, %v5533_v46  ;;  %v3041_v48 = vadd.f32 %v3040_v41, %v2530_v33  ;;  %v2027_v50 = vadd.f32 %v2026_v34, %v5610_v38  ;;  %v5624_v46 = vld [vmem:[%s3816_s18 + $0x818] sm:$0xff] }
 0x2a8   : > { %v562_v34 = vld [vmem:[%s3809_s20 + $0xa58] sm:$0xff] }
 0x2a9   : > { %v1567_v62 = vadd.f32 %v1566_v56, %v543_v53  ;;  %v2533_v53 = vmul.f32 %v5540_v52, %v5540_v52  ;;  %v3042_v54 = vadd.f32 %v3041_v48, %v2531_v40  ;;  %v2028_v56 = vadd.f32 %v2027_v50, %v5617_v42  ;;  %v5631_v52 = vld [vmem:[%s3816_s18 + $0x820] sm:$0xff] }
 0x2aa   : > { %v563_v50 = vld [vmem:[%s3809_s20 + $0xa60] sm:$0xff] }
 0x2ab   : > { %v1568_v4 = vadd.f32 %v1567_v62, %v544_v59  ;;  %v2534_v59 = vmul.f32 %v5547_v57, %v5547_v57  ;;  %v3043_v60 = vadd.f32 %v3042_v54, %v2532_v47  ;;  %v2029_v62 = vadd.f32 %v2028_v56, %v5624_v46  ;;  %v5638_v57 = vld [vmem:[%s3816_s18 + $0x828] sm:$0xff] }
 0x2ac   : > { %v564_v56 = vld [vmem:[%s3809_s20 + $0xa68] sm:$0xff] }
 0x2ad   : > { %v1569_v10 = vadd.f32 %v1568_v4, %v545_v1  ;;  %v2535_v1 = vmul.f32 %v5554_v63, %v5554_v63  ;;  %v3044_v2 = vadd.f32 %v3043_v60, %v2533_v53  ;;  %v2030_v4 = vadd.f32 %v2029_v62, %v5631_v52  ;;  %v5645_v63 = vld [vmem:[%s3816_s18 + $0x830] sm:$0xff] }
 0x2ae   : > { %v565_v62 = vld [vmem:[%s3809_s20 + $0xa70] sm:$0xff] }
 0x2af   : > { %v1570_v16 = vadd.f32 %v1569_v10, %v546_v7  ;;  %v2536_v7 = vmul.f32 %v5561_v5, %v5561_v5  ;;  %v3045_v8 = vadd.f32 %v3044_v2, %v2534_v59  ;;  %v2031_v10 = vadd.f32 %v2030_v4, %v5638_v57  ;;  %v5652_v5 = vld [vmem:[%s3816_s18 + $0x838] sm:$0xff] }
 0x2b0   : > { %v566_v4 = vld [vmem:[%s3809_s20 + $0xa78] sm:$0xff] }
 0x2b1   : > { %v1571_v23 = vadd.f32 %v1570_v16, %v547_v13  ;;  %v2537_v13 = vmul.f32 %v5568_v11, %v5568_v11  ;;  %v3046_v14 = vadd.f32 %v3045_v8, %v2535_v1  ;;  %v2032_v16 = vadd.f32 %v2031_v10, %v5645_v63  ;;  %v5659_v11 = vld [vmem:[%s3816_s18 + $0x840] sm:$0xff] }
 0x2b2   : > { %v567_v10 = vld [vmem:[%s3809_s20 + $0xa80] sm:$0xff] }
 0x2b3   : > { %v1572_v29 = vadd.f32 %v1571_v23, %v548_v19  ;;  %v2538_v19 = vmul.f32 %v5575_v17, %v5575_v17  ;;  %v3047_v20 = vadd.f32 %v3046_v14, %v2536_v7  ;;  %v2033_v23 = vadd.f32 %v2032_v16, %v5652_v5  ;;  %v5666_v17 = vld [vmem:[%s3816_s18 + $0x848] sm:$0xff] }
 0x2b4   : > { %v568_v16 = vld [vmem:[%s3809_s20 + $0xa88] sm:$0xff] }
 0x2b5   : > { %v1573_v36 = vadd.f32 %v1572_v29, %v549_v25  ;;  %v2539_v25 = vmul.f32 %v5582_v24, %v5582_v24  ;;  %v3048_v27 = vadd.f32 %v3047_v20, %v2537_v13  ;;  %v2034_v29 = vadd.f32 %v2033_v23, %v5659_v11  ;;  %v5673_v24 = vld [vmem:[%s3816_s18 + $0x850] sm:$0xff] }
 0x2b6   : > { %v569_v23 = vld [vmem:[%s3809_s20 + $0xa90] sm:$0xff] }
 0x2b7   : > { %v1574_v43 = vadd.f32 %v1573_v36, %v550_v32  ;;  %v2540_v32 = vmul.f32 %v5589_v31, %v5589_v31  ;;  %v3049_v33 = vadd.f32 %v3048_v27, %v2538_v19  ;;  %v2035_v36 = vadd.f32 %v2034_v29, %v5666_v17  ;;  %v5680_v31 = vld [vmem:[%s3816_s18 + $0x858] sm:$0xff] }
 0x2b8   : > { %v570_v29 = vld [vmem:[%s3809_s20 + $0xa98] sm:$0xff] }
 0x2b9   : > { %v1575_v49 = vadd.f32 %v1574_v43, %v551_v39  ;;  %v2541_v39 = vmul.f32 %v5596_v37, %v5596_v37  ;;  %v3050_v40 = vadd.f32 %v3049_v33, %v2539_v25  ;;  %v2036_v43 = vadd.f32 %v2035_v36, %v5673_v24  ;;  %v5687_v37 = vld [vmem:[%s3816_s18 + $0x860] sm:$0xff] }
 0x2ba   : > { %v571_v36 = vld [vmem:[%s3809_s20 + $0xaa0] sm:$0xff] }
 0x2bb   : > { %v1576_v55 = vadd.f32 %v1575_v49, %v552_v45  ;;  %v2542_v45 = vmul.f32 %v5603_v44, %v5603_v44  ;;  %v3051_v47 = vadd.f32 %v3050_v40, %v2540_v32  ;;  %v2037_v49 = vadd.f32 %v2036_v43, %v5680_v31  ;;  %v5694_v44 = vld [vmem:[%s3816_s18 + $0x868] sm:$0xff] }
 0x2bc   : > { %v572_v43 = vld [vmem:[%s3809_s20 + $0xaa8] sm:$0xff] }
 0x2bd   : > { %v1577_v61 = vadd.f32 %v1576_v55, %v553_v51  ;;  %v2543_v51 = vmul.f32 %v5610_v38, %v5610_v38  ;;  %v3052_v53 = vadd.f32 %v3051_v47, %v2541_v39  ;;  %v2038_v55 = vadd.f32 %v2037_v49, %v5687_v37  ;;  %v5701_v38 = vld [vmem:[%s3816_s18 + $0x870] sm:$0xff] }
 0x2be   : > { %v573_v49 = vld [vmem:[%s3809_s20 + $0xab0] sm:$0xff] }
 0x2bf   : > { %v1578_v3 = vadd.f32 %v1577_v61, %v554_v58  ;;  %v2544_v58 = vmul.f32 %v5617_v42, %v5617_v42  ;;  %v3053_v59 = vadd.f32 %v3052_v53, %v2542_v45  ;;  %v2039_v61 = vadd.f32 %v2038_v55, %v5694_v44  ;;  %v5708_v42 = vld [vmem:[%s3816_s18 + $0x878] sm:$0xff] }
 0x2c0   : > { %v574_v55 = vld [vmem:[%s3809_s20 + $0xab8] sm:$0xff] }
 0x2c1   : > { %v1579_v9 = vadd.f32 %v1578_v3, %v555_v0  ;;  %v2545_v0 = vmul.f32 %v5624_v46, %v5624_v46  ;;  %v3054_v1 = vadd.f32 %v3053_v59, %v2543_v51  ;;  %v2040_v3 = vadd.f32 %v2039_v61, %v5701_v38  ;;  %v5715_v46 = vld [vmem:[%s3816_s18 + $0x880] sm:$0xff] }
 0x2c2   : > { %v575_v61 = vld [vmem:[%s3809_s20 + $0xac0] sm:$0xff] }
 0x2c3   : > { %v1580_v15 = vadd.f32 %v1579_v9, %v556_v6  ;;  %v2546_v6 = vmul.f32 %v5631_v52, %v5631_v52  ;;  %v3055_v7 = vadd.f32 %v3054_v1, %v2544_v58  ;;  %v2041_v9 = vadd.f32 %v2040_v3, %v5708_v42  ;;  %v5722_v52 = vld [vmem:[%s3816_s18 + $0x888] sm:$0xff] }
 0x2c4   : > { %v576_v3 = vld [vmem:[%s3809_s20 + $0xac8] sm:$0xff] }
 0x2c5   : > { %v1581_v21 = vadd.f32 %v1580_v15, %v557_v12  ;;  %v2547_v12 = vmul.f32 %v5638_v57, %v5638_v57  ;;  %v3056_v13 = vadd.f32 %v3055_v7, %v2545_v0  ;;  %v2042_v15 = vadd.f32 %v2041_v9, %v5715_v46  ;;  %v5729_v57 = vld [vmem:[%s3816_s18 + $0x890] sm:$0xff] }
 0x2c6   : > { %v577_v9 = vld [vmem:[%s3809_s20 + $0xad0] sm:$0xff] }
 0x2c7   : > { %v1582_v28 = vadd.f32 %v1581_v21, %v558_v18  ;;  %v2548_v18 = vmul.f32 %v5645_v63, %v5645_v63  ;;  %v3057_v19 = vadd.f32 %v3056_v13, %v2546_v6  ;;  %v2043_v21 = vadd.f32 %v2042_v15, %v5722_v52  ;;  %v5736_v63 = vld [vmem:[%s3816_s18 + $0x898] sm:$0xff] }
 0x2c8   : > { %v578_v15 = vld [vmem:[%s3809_s20 + $0xad8] sm:$0xff] }
 0x2c9   : > { %v1583_v35 = vadd.f32 %v1582_v28, %v559_v22  ;;  %v2549_v22 = vmul.f32 %v5652_v5, %v5652_v5  ;;  %v3058_v25 = vadd.f32 %v3057_v19, %v2547_v12  ;;  %v2044_v28 = vadd.f32 %v2043_v21, %v5729_v57  ;;  %v5743_v5 = vld [vmem:[%s3816_s18 + $0x8a0] sm:$0xff] }
 0x2ca   : > { %v579_v21 = vld [vmem:[%s3809_s20 + $0xae0] sm:$0xff] }
 0x2cb   : > { %v1584_v41 = vadd.f32 %v1583_v35, %v560_v26  ;;  %v2550_v26 = vmul.f32 %v5659_v11, %v5659_v11  ;;  %v3059_v32 = vadd.f32 %v3058_v25, %v2548_v18  ;;  %v2045_v35 = vadd.f32 %v2044_v28, %v5736_v63  ;;  %v5750_v11 = vld [vmem:[%s3816_s18 + $0x8a8] sm:$0xff] }
 0x2cc   : > { %v580_v28 = vld [vmem:[%s3809_s20 + $0xae8] sm:$0xff] }
 0x2cd   : > { %v1585_v48 = vadd.f32 %v1584_v41, %v561_v30  ;;  %v2551_v30 = vmul.f32 %v5666_v17, %v5666_v17  ;;  %v3060_v39 = vadd.f32 %v3059_v32, %v2549_v22  ;;  %v2046_v41 = vadd.f32 %v2045_v35, %v5743_v5  ;;  %v5757_v17 = vld [vmem:[%s3816_s18 + $0x8b0] sm:$0xff] }
 0x2ce   : > { %v581_v35 = vld [vmem:[%s3809_s20 + $0xaf0] sm:$0xff] }
 0x2cf   : > { %v1586_v54 = vadd.f32 %v1585_v48, %v562_v34  ;;  %v2552_v34 = vmul.f32 %v5673_v24, %v5673_v24  ;;  %v3061_v45 = vadd.f32 %v3060_v39, %v2550_v26  ;;  %v2047_v48 = vadd.f32 %v2046_v41, %v5750_v11  ;;  %v5764_v24 = vld [vmem:[%s3816_s18 + $0x8b8] sm:$0xff] }
 0x2d0   : > { %v582_v41 = vld [vmem:[%s3809_s20 + $0xaf8] sm:$0xff] }
 0x2d1   : > { %v1587_v60 = vadd.f32 %v1586_v54, %v563_v50  ;;  %v2553_v50 = vmul.f32 %v5680_v31, %v5680_v31  ;;  %v3062_v51 = vadd.f32 %v3061_v45, %v2551_v30  ;;  %v2048_v54 = vadd.f32 %v2047_v48, %v5757_v17  ;;  %v5771_v31 = vld [vmem:[%s3816_s18 + $0x8c0] sm:$0xff] }
 0x2d2   : > { %v583_v48 = vld [vmem:[%s3809_s20 + $0xb00] sm:$0xff] }
 0x2d3   : > { %v1588_v2 = vadd.f32 %v1587_v60, %v564_v56  ;;  %v2554_v56 = vmul.f32 %v5687_v37, %v5687_v37  ;;  %v3063_v58 = vadd.f32 %v3062_v51, %v2552_v34  ;;  %v2049_v60 = vadd.f32 %v2048_v54, %v5764_v24  ;;  %v5778_v37 = vld [vmem:[%s3816_s18 + $0x8c8] sm:$0xff] }
 0x2d4   : > { %v584_v54 = vld [vmem:[%s3809_s20 + $0xb08] sm:$0xff] }
 0x2d5   : > { %v1589_v8 = vadd.f32 %v1588_v2, %v565_v62  ;;  %v2555_v62 = vmul.f32 %v5694_v44, %v5694_v44  ;;  %v3064_v0 = vadd.f32 %v3063_v58, %v2553_v50  ;;  %v2050_v2 = vadd.f32 %v2049_v60, %v5771_v31  ;;  %v5785_v44 = vld [vmem:[%s3816_s18 + $0x8d0] sm:$0xff] }
 0x2d6   : > { %v585_v60 = vld [vmem:[%s3809_s20 + $0xb10] sm:$0xff] }
 0x2d7   : > { %v1590_v14 = vadd.f32 %v1589_v8, %v566_v4  ;;  %v2556_v4 = vmul.f32 %v5701_v38, %v5701_v38  ;;  %v3065_v6 = vadd.f32 %v3064_v0, %v2554_v56  ;;  %v2051_v8 = vadd.f32 %v2050_v2, %v5778_v37  ;;  %v5792_v38 = vld [vmem:[%s3816_s18 + $0x8d8] sm:$0xff] }
 0x2d8   : > { %v586_v2 = vld [vmem:[%s3809_s20 + $0xb18] sm:$0xff] }
 0x2d9   : > { %v1591_v20 = vadd.f32 %v1590_v14, %v567_v10  ;;  %v2557_v10 = vmul.f32 %v5708_v42, %v5708_v42  ;;  %v3066_v12 = vadd.f32 %v3065_v6, %v2555_v62  ;;  %v2052_v14 = vadd.f32 %v2051_v8, %v5785_v44  ;;  %v5799_v42 = vld [vmem:[%s3816_s18 + $0x8e0] sm:$0xff] }
 0x2da   : > { %v587_v8 = vld [vmem:[%s3809_s20 + $0xb20] sm:$0xff] }
 0x2db   : > { %v1592_v27 = vadd.f32 %v1591_v20, %v568_v16  ;;  %v2558_v16 = vmul.f32 %v5715_v46, %v5715_v46  ;;  %v3067_v18 = vadd.f32 %v3066_v12, %v2556_v4  ;;  %v2053_v20 = vadd.f32 %v2052_v14, %v5792_v38  ;;  %v5806_v46 = vld [vmem:[%s3816_s18 + $0x8e8] sm:$0xff] }
 0x2dc   : > { %v588_v14 = vld [vmem:[%s3809_s20 + $0xb28] sm:$0xff] }
 0x2dd   : > { %v1593_v33 = vadd.f32 %v1592_v27, %v569_v23  ;;  %v2559_v23 = vmul.f32 %v5722_v52, %v5722_v52  ;;  %v3068_v22 = vadd.f32 %v3067_v18, %v2557_v10  ;;  %v2054_v27 = vadd.f32 %v2053_v20, %v5799_v42  ;;  %v5813_v52 = vld [vmem:[%s3816_s18 + $0x8f0] sm:$0xff] }
 0x2de   : > { %v589_v20 = vld [vmem:[%s3809_s20 + $0xb30] sm:$0xff] }
 0x2df   : > { %v1594_v40 = vadd.f32 %v1593_v33, %v570_v29  ;;  %v2560_v29 = vmul.f32 %v5729_v57, %v5729_v57  ;;  %v3069_v26 = vadd.f32 %v3068_v22, %v2558_v16  ;;  %v2055_v33 = vadd.f32 %v2054_v27, %v5806_v46  ;;  %v5820_v57 = vld [vmem:[%s3816_s18 + $0x8f8] sm:$0xff] }
 0x2e0   : > { %v590_v27 = vld [vmem:[%s3809_s20 + $0xb38] sm:$0xff] }
 0x2e1   : > { %v1595_v47 = vadd.f32 %v1594_v40, %v571_v36  ;;  %v2561_v36 = vmul.f32 %v5736_v63, %v5736_v63  ;;  %v3070_v30 = vadd.f32 %v3069_v26, %v2559_v23  ;;  %v2056_v40 = vadd.f32 %v2055_v33, %v5813_v52  ;;  %v5827_v63 = vld [vmem:[%s3816_s18 + $0x900] sm:$0xff] }
 0x2e2   : > { %v591_v33 = vld [vmem:[%s3809_s20 + $0xb40] sm:$0xff] }
 0x2e3   : > { %v1596_v53 = vadd.f32 %v1595_v47, %v572_v43  ;;  %v2562_v43 = vmul.f32 %v5743_v5, %v5743_v5  ;;  %v3071_v34 = vadd.f32 %v3070_v30, %v2560_v29  ;;  %v2057_v47 = vadd.f32 %v2056_v40, %v5820_v57  ;;  %v5834_v5 = vld [vmem:[%s3816_s18 + $0x908] sm:$0xff] }
 0x2e4   : > { %v592_v40 = vld [vmem:[%s3809_s20 + $0xb48] sm:$0xff] }
 0x2e5   : > { %v1597_v59 = vadd.f32 %v1596_v53, %v573_v49  ;;  %v2563_v49 = vmul.f32 %v5750_v11, %v5750_v11  ;;  %v3072_v50 = vadd.f32 %v3071_v34, %v2561_v36  ;;  %v2058_v53 = vadd.f32 %v2057_v47, %v5827_v63  ;;  %v5841_v11 = vld [vmem:[%s3816_s18 + $0x910] sm:$0xff] }
 0x2e6   : > { %v593_v47 = vld [vmem:[%s3809_s20 + $0xb50] sm:$0xff] }
 0x2e7   : > { %v1598_v1 = vadd.f32 %v1597_v59, %v574_v55  ;;  %v2564_v55 = vmul.f32 %v5757_v17, %v5757_v17  ;;  %v3073_v56 = vadd.f32 %v3072_v50, %v2562_v43  ;;  %v2059_v59 = vadd.f32 %v2058_v53, %v5834_v5  ;;  %v5848_v17 = vld [vmem:[%s3816_s18 + $0x918] sm:$0xff] }
 0x2e8   : > { %v594_v53 = vld [vmem:[%s3809_s20 + $0xb58] sm:$0xff] }
 0x2e9   : > { %v1599_v7 = vadd.f32 %v1598_v1, %v575_v61  ;;  %v2565_v61 = vmul.f32 %v5764_v24, %v5764_v24  ;;  %v3074_v62 = vadd.f32 %v3073_v56, %v2563_v49  ;;  %v2060_v1 = vadd.f32 %v2059_v59, %v5841_v11  ;;  %v5855_v24 = vld [vmem:[%s3816_s18 + $0x920] sm:$0xff] }
 0x2ea   : > { %v595_v59 = vld [vmem:[%s3809_s20 + $0xb60] sm:$0xff] }
 0x2eb   : > { %v1600_v13 = vadd.f32 %v1599_v7, %v576_v3  ;;  %v2566_v3 = vmul.f32 %v5771_v31, %v5771_v31  ;;  %v3075_v4 = vadd.f32 %v3074_v62, %v2564_v55  ;;  %v2061_v7 = vadd.f32 %v2060_v1, %v5848_v17  ;;  %v5862_v31 = vld [vmem:[%s3816_s18 + $0x928] sm:$0xff] }
 0x2ec   : > { %v596_v1 = vld [vmem:[%s3809_s20 + $0xb68] sm:$0xff] }
 0x2ed   : > { %v1601_v19 = vadd.f32 %v1600_v13, %v577_v9  ;;  %v2567_v9 = vmul.f32 %v5778_v37, %v5778_v37  ;;  %v3076_v10 = vadd.f32 %v3075_v4, %v2565_v61  ;;  %v2062_v13 = vadd.f32 %v2061_v7, %v5855_v24  ;;  %v5869_v37 = vld [vmem:[%s3816_s18 + $0x930] sm:$0xff] }
 0x2ee   : > { %v597_v7 = vld [vmem:[%s3809_s20 + $0xb70] sm:$0xff] }
 0x2ef   : > { %v1602_v25 = vadd.f32 %v1601_v19, %v578_v15  ;;  %v2568_v15 = vmul.f32 %v5785_v44, %v5785_v44  ;;  %v3077_v16 = vadd.f32 %v3076_v10, %v2566_v3  ;;  %v2063_v19 = vadd.f32 %v2062_v13, %v5862_v31  ;;  %v5876_v44 = vld [vmem:[%s3816_s18 + $0x938] sm:$0xff] }
 0x2f0   : > { %v598_v13 = vld [vmem:[%s3809_s20 + $0xb78] sm:$0xff] }
 0x2f1   : > { %v1603_v32 = vadd.f32 %v1602_v25, %v579_v21  ;;  %v2569_v21 = vmul.f32 %v5792_v38, %v5792_v38  ;;  %v3078_v23 = vadd.f32 %v3077_v16, %v2567_v9  ;;  %v2064_v25 = vadd.f32 %v2063_v19, %v5869_v37  ;;  %v5883_v38 = vld [vmem:[%s3816_s18 + $0x940] sm:$0xff] }
 0x2f2   : > { %v599_v19 = vld [vmem:[%s3809_s20 + $0xb80] sm:$0xff] }
 0x2f3   : > { %v1604_v39 = vadd.f32 %v1603_v32, %v580_v28  ;;  %v2570_v28 = vmul.f32 %v5799_v42, %v5799_v42  ;;  %v3079_v29 = vadd.f32 %v3078_v23, %v2568_v15  ;;  %v2065_v32 = vadd.f32 %v2064_v25, %v5876_v44  ;;  %v5890_v42 = vld [vmem:[%s3816_s18 + $0x948] sm:$0xff] }
 0x2f4   : > { %v600_v25 = vld [vmem:[%s3809_s20 + $0xb88] sm:$0xff] }
 0x2f5   : > { %v1605_v45 = vadd.f32 %v1604_v39, %v581_v35  ;;  %v2571_v35 = vmul.f32 %v5806_v46, %v5806_v46  ;;  %v3080_v36 = vadd.f32 %v3079_v29, %v2569_v21  ;;  %v2066_v39 = vadd.f32 %v2065_v32, %v5883_v38  ;;  %v5897_v46 = vld [vmem:[%s3816_s18 + $0x950] sm:$0xff] }
 0x2f6   : > { %v601_v32 = vld [vmem:[%s3809_s20 + $0xb90] sm:$0xff] }
 0x2f7   : > { %v1606_v51 = vadd.f32 %v1605_v45, %v582_v41  ;;  %v2572_v41 = vmul.f32 %v5813_v52, %v5813_v52  ;;  %v3081_v43 = vadd.f32 %v3080_v36, %v2570_v28  ;;  %v2067_v45 = vadd.f32 %v2066_v39, %v5890_v42  ;;  %v5904_v52 = vld [vmem:[%s3816_s18 + $0x958] sm:$0xff] }
 0x2f8   : > { %v602_v39 = vld [vmem:[%s3809_s20 + $0xb98] sm:$0xff] }
 0x2f9   : > { %v1607_v58 = vadd.f32 %v1606_v51, %v583_v48  ;;  %v2573_v48 = vmul.f32 %v5820_v57, %v5820_v57  ;;  %v3082_v49 = vadd.f32 %v3081_v43, %v2571_v35  ;;  %v2068_v51 = vadd.f32 %v2067_v45, %v5897_v46  ;;  %v5911_v57 = vld [vmem:[%s3816_s18 + $0x960] sm:$0xff] }
 0x2fa   : > { %v603_v45 = vld [vmem:[%s3809_s20 + $0xba0] sm:$0xff] }
 0x2fb   : > { %v1608_v0 = vadd.f32 %v1607_v58, %v584_v54  ;;  %v2574_v54 = vmul.f32 %v5827_v63, %v5827_v63  ;;  %v3083_v55 = vadd.f32 %v3082_v49, %v2572_v41  ;;  %v2069_v58 = vadd.f32 %v2068_v51, %v5904_v52  ;;  %v5918_v63 = vld [vmem:[%s3816_s18 + $0x968] sm:$0xff] }
 0x2fc   : > { %v604_v51 = vld [vmem:[%s3809_s20 + $0xba8] sm:$0xff] }
 0x2fd   : > { %v1609_v6 = vadd.f32 %v1608_v0, %v585_v60  ;;  %v2575_v60 = vmul.f32 %v5834_v5, %v5834_v5  ;;  %v3084_v61 = vadd.f32 %v3083_v55, %v2573_v48  ;;  %v2070_v0 = vadd.f32 %v2069_v58, %v5911_v57  ;;  %v5925_v5 = vld [vmem:[%s3816_s18 + $0x970] sm:$0xff] }
 0x2fe   : > { %v605_v58 = vld [vmem:[%s3809_s20 + $0xbb0] sm:$0xff] }
 0x2ff   : > { %v1610_v12 = vadd.f32 %v1609_v6, %v586_v2  ;;  %v2576_v2 = vmul.f32 %v5841_v11, %v5841_v11  ;;  %v3085_v3 = vadd.f32 %v3084_v61, %v2574_v54  ;;  %v2071_v6 = vadd.f32 %v2070_v0, %v5918_v63  ;;  %v5932_v11 = vld [vmem:[%s3816_s18 + $0x978] sm:$0xff] }
 0x300   : > { %v606_v0 = vld [vmem:[%s3809_s20 + $0xbb8] sm:$0xff] }
 0x301   : > { %v1611_v18 = vadd.f32 %v1610_v12, %v587_v8  ;;  %v2577_v8 = vmul.f32 %v5848_v17, %v5848_v17  ;;  %v3086_v9 = vadd.f32 %v3085_v3, %v2575_v60  ;;  %v2072_v12 = vadd.f32 %v2071_v6, %v5925_v5  ;;  %v5939_v17 = vld [vmem:[%s3816_s18 + $0x980] sm:$0xff] }
 0x302   : > { %v607_v6 = vld [vmem:[%s3809_s20 + $0xbc0] sm:$0xff] }
 0x303   : > { %v1612_v22 = vadd.f32 %v1611_v18, %v588_v14  ;;  %v2578_v14 = vmul.f32 %v5855_v24, %v5855_v24  ;;  %v3087_v15 = vadd.f32 %v3086_v9, %v2576_v2  ;;  %v2073_v18 = vadd.f32 %v2072_v12, %v5932_v11  ;;  %v5946_v24 = vld [vmem:[%s3816_s18 + $0x988] sm:$0xff] }
 0x304   : > { %v608_v12 = vld [vmem:[%s3809_s20 + $0xbc8] sm:$0xff] }
 0x305   : > { %v1613_v26 = vadd.f32 %v1612_v22, %v589_v20  ;;  %v2579_v20 = vmul.f32 %v5862_v31, %v5862_v31  ;;  %v3088_v21 = vadd.f32 %v3087_v15, %v2577_v8  ;;  %v2074_v22 = vadd.f32 %v2073_v18, %v5939_v17  ;;  %v5953_v31 = vld [vmem:[%s3816_s18 + $0x990] sm:$0xff] }
 0x306   : > { %v609_v18 = vld [vmem:[%s3809_s20 + $0xbd0] sm:$0xff] }
 0x307   : > { %v1614_v30 = vadd.f32 %v1613_v26, %v590_v27  ;;  %v2580_v27 = vmul.f32 %v5869_v37, %v5869_v37  ;;  %v3089_v28 = vadd.f32 %v3088_v21, %v2578_v14  ;;  %v2075_v26 = vadd.f32 %v2074_v22, %v5946_v24  ;;  %v5960_v37 = vld [vmem:[%s3816_s18 + $0x998] sm:$0xff] }
 0x308   : > { %v610_v22 = vld [vmem:[%s3809_s20 + $0xbd8] sm:$0xff] }
 0x309   : > { %v1615_v34 = vadd.f32 %v1614_v30, %v591_v33  ;;  %v2581_v33 = vmul.f32 %v5876_v44, %v5876_v44  ;;  %v3090_v35 = vadd.f32 %v3089_v28, %v2579_v20  ;;  %v2076_v30 = vadd.f32 %v2075_v26, %v5953_v31  ;;  %v5967_v44 = vld [vmem:[%s3816_s18 + $0x9a0] sm:$0xff] }
 0x30a   : > { %v611_v26 = vld [vmem:[%s3809_s20 + $0xbe0] sm:$0xff] }
 0x30b   : > { %v1616_v50 = vadd.f32 %v1615_v34, %v592_v40  ;;  %v2582_v40 = vmul.f32 %v5883_v38, %v5883_v38  ;;  %v3091_v41 = vadd.f32 %v3090_v35, %v2580_v27  ;;  %v2077_v34 = vadd.f32 %v2076_v30, %v5960_v37  ;;  %v5974_v38 = vld [vmem:[%s3816_s18 + $0x9a8] sm:$0xff] }
 0x30c   : > { %v612_v30 = vld [vmem:[%s3809_s20 + $0xbe8] sm:$0xff] }
 0x30d   : > { %v1617_v56 = vadd.f32 %v1616_v50, %v593_v47  ;;  %v2583_v47 = vmul.f32 %v5890_v42, %v5890_v42  ;;  %v3092_v48 = vadd.f32 %v3091_v41, %v2581_v33  ;;  %v2078_v50 = vadd.f32 %v2077_v34, %v5967_v44  ;;  %v5981_v42 = vld [vmem:[%s3816_s18 + $0x9b0] sm:$0xff] }
 0x30e   : > { %v613_v34 = vld [vmem:[%s3809_s20 + $0xbf0] sm:$0xff] }
 0x30f   : > { %v1618_v62 = vadd.f32 %v1617_v56, %v594_v53  ;;  %v2584_v53 = vmul.f32 %v5897_v46, %v5897_v46  ;;  %v3093_v54 = vadd.f32 %v3092_v48, %v2582_v40  ;;  %v2079_v56 = vadd.f32 %v2078_v50, %v5974_v38  ;;  %v5988_v46 = vld [vmem:[%s3816_s18 + $0x9b8] sm:$0xff] }
 0x310   : > { %v614_v50 = vld [vmem:[%s3809_s20 + $0xbf8] sm:$0xff] }
 0x311   : > { %v1619_v4 = vadd.f32 %v1618_v62, %v595_v59  ;;  %v2585_v59 = vmul.f32 %v5904_v52, %v5904_v52  ;;  %v3094_v60 = vadd.f32 %v3093_v54, %v2583_v47  ;;  %v2080_v62 = vadd.f32 %v2079_v56, %v5981_v42  ;;  %v5995_v52 = vld [vmem:[%s3816_s18 + $0x9c0] sm:$0xff] }
 0x312   : > { %v615_v56 = vld [vmem:[%s3809_s20 + $0xc00] sm:$0xff] }
 0x313   : > { %v1620_v10 = vadd.f32 %v1619_v4, %v596_v1  ;;  %v2586_v1 = vmul.f32 %v5911_v57, %v5911_v57  ;;  %v3095_v2 = vadd.f32 %v3094_v60, %v2584_v53  ;;  %v2081_v4 = vadd.f32 %v2080_v62, %v5988_v46  ;;  %v6002_v57 = vld [vmem:[%s3816_s18 + $0x9c8] sm:$0xff] }
 0x314   : > { %v616_v62 = vld [vmem:[%s3809_s20 + $0xc08] sm:$0xff] }
 0x315   : > { %v1621_v16 = vadd.f32 %v1620_v10, %v597_v7  ;;  %v2587_v7 = vmul.f32 %v5918_v63, %v5918_v63  ;;  %v3096_v8 = vadd.f32 %v3095_v2, %v2585_v59  ;;  %v2082_v10 = vadd.f32 %v2081_v4, %v5995_v52  ;;  %v6009_v63 = vld [vmem:[%s3816_s18 + $0x9d0] sm:$0xff] }
 0x316   : > { %v617_v4 = vld [vmem:[%s3809_s20 + $0xc10] sm:$0xff] }
 0x317   : > { %v1622_v23 = vadd.f32 %v1621_v16, %v598_v13  ;;  %v2588_v13 = vmul.f32 %v5925_v5, %v5925_v5  ;;  %v3097_v14 = vadd.f32 %v3096_v8, %v2586_v1  ;;  %v2083_v16 = vadd.f32 %v2082_v10, %v6002_v57  ;;  %v6016_v5 = vld [vmem:[%s3816_s18 + $0x9d8] sm:$0xff] }
 0x318   : > { %v618_v10 = vld [vmem:[%s3809_s20 + $0xc18] sm:$0xff] }
 0x319   : > { %v1623_v29 = vadd.f32 %v1622_v23, %v599_v19  ;;  %v2589_v19 = vmul.f32 %v5932_v11, %v5932_v11  ;;  %v3098_v20 = vadd.f32 %v3097_v14, %v2587_v7  ;;  %v2084_v23 = vadd.f32 %v2083_v16, %v6009_v63  ;;  %v6023_v11 = vld [vmem:[%s3816_s18 + $0x9e0] sm:$0xff] }
 0x31a   : > { %v619_v16 = vld [vmem:[%s3809_s20 + $0xc20] sm:$0xff] }
 0x31b   : > { %v1624_v36 = vadd.f32 %v1623_v29, %v600_v25  ;;  %v2590_v25 = vmul.f32 %v5939_v17, %v5939_v17  ;;  %v3099_v27 = vadd.f32 %v3098_v20, %v2588_v13  ;;  %v2085_v29 = vadd.f32 %v2084_v23, %v6016_v5  ;;  %v6030_v17 = vld [vmem:[%s3816_s18 + $0x9e8] sm:$0xff] }
 0x31c   : > { %v620_v23 = vld [vmem:[%s3809_s20 + $0xc28] sm:$0xff] }
 0x31d   : > { %v1625_v43 = vadd.f32 %v1624_v36, %v601_v32  ;;  %v2591_v32 = vmul.f32 %v5946_v24, %v5946_v24  ;;  %v3100_v33 = vadd.f32 %v3099_v27, %v2589_v19  ;;  %v2086_v36 = vadd.f32 %v2085_v29, %v6023_v11  ;;  %v6037_v24 = vld [vmem:[%s3816_s18 + $0x9f0] sm:$0xff] }
 0x31e   : > { %v621_v29 = vld [vmem:[%s3809_s20 + $0xc30] sm:$0xff] }
 0x31f   : > { %v1626_v49 = vadd.f32 %v1625_v43, %v602_v39  ;;  %v2592_v39 = vmul.f32 %v5953_v31, %v5953_v31  ;;  %v3101_v40 = vadd.f32 %v3100_v33, %v2590_v25  ;;  %v2087_v43 = vadd.f32 %v2086_v36, %v6030_v17  ;;  %v6044_v31 = vld [vmem:[%s3816_s18 + $0x9f8] sm:$0xff] }
 0x320   : > { %v622_v36 = vld [vmem:[%s3809_s20 + $0xc38] sm:$0xff] }
 0x321   : > { %v1627_v55 = vadd.f32 %v1626_v49, %v603_v45  ;;  %v2593_v45 = vmul.f32 %v5960_v37, %v5960_v37  ;;  %v3102_v47 = vadd.f32 %v3101_v40, %v2591_v32  ;;  %v2088_v49 = vadd.f32 %v2087_v43, %v6037_v24  ;;  %v6051_v37 = vld [vmem:[%s3816_s18 + $0xa00] sm:$0xff] }
 0x322   : > { %v623_v43 = vld [vmem:[%s3809_s20 + $0xc40] sm:$0xff] }
 0x323   : > { %v1628_v61 = vadd.f32 %v1627_v55, %v604_v51  ;;  %v2594_v51 = vmul.f32 %v5967_v44, %v5967_v44  ;;  %v3103_v53 = vadd.f32 %v3102_v47, %v2592_v39  ;;  %v2089_v55 = vadd.f32 %v2088_v49, %v6044_v31  ;;  %v6058_v44 = vld [vmem:[%s3816_s18 + $0xa08] sm:$0xff] }
 0x324   : > { %v624_v49 = vld [vmem:[%s3809_s20 + $0xc48] sm:$0xff] }
 0x325   : > { %v1629_v3 = vadd.f32 %v1628_v61, %v605_v58  ;;  %v2595_v58 = vmul.f32 %v5974_v38, %v5974_v38  ;;  %v3104_v59 = vadd.f32 %v3103_v53, %v2593_v45  ;;  %v2090_v61 = vadd.f32 %v2089_v55, %v6051_v37  ;;  %v6065_v38 = vld [vmem:[%s3816_s18 + $0xa10] sm:$0xff] }
 0x326   : > { %v625_v55 = vld [vmem:[%s3809_s20 + $0xc50] sm:$0xff] }
 0x327   : > { %v1630_v9 = vadd.f32 %v1629_v3, %v606_v0  ;;  %v2596_v0 = vmul.f32 %v5981_v42, %v5981_v42  ;;  %v3105_v1 = vadd.f32 %v3104_v59, %v2594_v51  ;;  %v2091_v3 = vadd.f32 %v2090_v61, %v6058_v44  ;;  %v6072_v42 = vld [vmem:[%s3816_s18 + $0xa18] sm:$0xff] }
 0x328   : > { %v626_v61 = vld [vmem:[%s3809_s20 + $0xc58] sm:$0xff] }
 0x329   : > { %v1631_v15 = vadd.f32 %v1630_v9, %v607_v6  ;;  %v2597_v6 = vmul.f32 %v5988_v46, %v5988_v46  ;;  %v3106_v7 = vadd.f32 %v3105_v1, %v2595_v58  ;;  %v2092_v9 = vadd.f32 %v2091_v3, %v6065_v38  ;;  %v6079_v46 = vld [vmem:[%s3816_s18 + $0xa20] sm:$0xff] }
 0x32a   : > { %v627_v3 = vld [vmem:[%s3809_s20 + $0xc60] sm:$0xff] }
 0x32b   : > { %v1632_v21 = vadd.f32 %v1631_v15, %v608_v12  ;;  %v2598_v12 = vmul.f32 %v5995_v52, %v5995_v52  ;;  %v3107_v13 = vadd.f32 %v3106_v7, %v2596_v0  ;;  %v2093_v15 = vadd.f32 %v2092_v9, %v6072_v42  ;;  %v6086_v52 = vld [vmem:[%s3816_s18 + $0xa28] sm:$0xff] }
 0x32c   : > { %v628_v9 = vld [vmem:[%s3809_s20 + $0xc68] sm:$0xff] }
 0x32d   : > { %v1633_v28 = vadd.f32 %v1632_v21, %v609_v18  ;;  %v2599_v18 = vmul.f32 %v6002_v57, %v6002_v57  ;;  %v3108_v19 = vadd.f32 %v3107_v13, %v2597_v6  ;;  %v2094_v21 = vadd.f32 %v2093_v15, %v6079_v46  ;;  %v6093_v57 = vld [vmem:[%s3816_s18 + $0xa30] sm:$0xff] }
 0x32e   : > { %v629_v15 = vld [vmem:[%s3809_s20 + $0xc70] sm:$0xff] }
 0x32f   : > { %v1634_v35 = vadd.f32 %v1633_v28, %v610_v22  ;;  %v2600_v22 = vmul.f32 %v6009_v63, %v6009_v63  ;;  %v3109_v25 = vadd.f32 %v3108_v19, %v2598_v12  ;;  %v2095_v28 = vadd.f32 %v2094_v21, %v6086_v52  ;;  %v6100_v63 = vld [vmem:[%s3816_s18 + $0xa38] sm:$0xff] }
 0x330   : > { %v630_v21 = vld [vmem:[%s3809_s20 + $0xc78] sm:$0xff] }
 0x331   : > { %v1635_v41 = vadd.f32 %v1634_v35, %v611_v26  ;;  %v2601_v26 = vmul.f32 %v6016_v5, %v6016_v5  ;;  %v3110_v32 = vadd.f32 %v3109_v25, %v2599_v18  ;;  %v2096_v35 = vadd.f32 %v2095_v28, %v6093_v57  ;;  %v6107_v5 = vld [vmem:[%s3816_s18 + $0xa40] sm:$0xff] }
 0x332   : > { %v631_v28 = vld [vmem:[%s3809_s20 + $0xc80] sm:$0xff] }
 0x333   : > { %v1636_v48 = vadd.f32 %v1635_v41, %v612_v30  ;;  %v2602_v30 = vmul.f32 %v6023_v11, %v6023_v11  ;;  %v3111_v39 = vadd.f32 %v3110_v32, %v2600_v22  ;;  %v2097_v41 = vadd.f32 %v2096_v35, %v6100_v63  ;;  %v6114_v11 = vld [vmem:[%s3816_s18 + $0xa48] sm:$0xff] }
 0x334   : > { %v632_v35 = vld [vmem:[%s3809_s20 + $0xc88] sm:$0xff] }
 0x335   : > { %v1637_v54 = vadd.f32 %v1636_v48, %v613_v34  ;;  %v2603_v34 = vmul.f32 %v6030_v17, %v6030_v17  ;;  %v3112_v45 = vadd.f32 %v3111_v39, %v2601_v26  ;;  %v2098_v48 = vadd.f32 %v2097_v41, %v6107_v5  ;;  %v6121_v17 = vld [vmem:[%s3816_s18 + $0xa50] sm:$0xff] }
 0x336   : > { %v633_v41 = vld [vmem:[%s3809_s20 + $0xc90] sm:$0xff] }
 0x337   : > { %v1638_v60 = vadd.f32 %v1637_v54, %v614_v50  ;;  %v2604_v50 = vmul.f32 %v6037_v24, %v6037_v24  ;;  %v3113_v51 = vadd.f32 %v3112_v45, %v2602_v30  ;;  %v2099_v54 = vadd.f32 %v2098_v48, %v6114_v11  ;;  %v6128_v24 = vld [vmem:[%s3816_s18 + $0xa58] sm:$0xff] }
 0x338   : > { %v634_v48 = vld [vmem:[%s3809_s20 + $0xc98] sm:$0xff] }
 0x339   : > { %v1639_v2 = vadd.f32 %v1638_v60, %v615_v56  ;;  %v2605_v56 = vmul.f32 %v6044_v31, %v6044_v31  ;;  %v3114_v58 = vadd.f32 %v3113_v51, %v2603_v34  ;;  %v2100_v60 = vadd.f32 %v2099_v54, %v6121_v17  ;;  %v6135_v31 = vld [vmem:[%s3816_s18 + $0xa60] sm:$0xff] }
 0x33a   : > { %v635_v54 = vld [vmem:[%s3809_s20 + $0xca0] sm:$0xff] }
 0x33b   : > { %v1640_v8 = vadd.f32 %v1639_v2, %v616_v62  ;;  %v2606_v62 = vmul.f32 %v6051_v37, %v6051_v37  ;;  %v3115_v0 = vadd.f32 %v3114_v58, %v2604_v50  ;;  %v2101_v2 = vadd.f32 %v2100_v60, %v6128_v24  ;;  %v6142_v37 = vld [vmem:[%s3816_s18 + $0xa68] sm:$0xff] }
 0x33c   : > { %v636_v60 = vld [vmem:[%s3809_s20 + $0xca8] sm:$0xff] }
 0x33d   : > { %v1641_v14 = vadd.f32 %v1640_v8, %v617_v4  ;;  %v2607_v4 = vmul.f32 %v6058_v44, %v6058_v44  ;;  %v3116_v6 = vadd.f32 %v3115_v0, %v2605_v56  ;;  %v2102_v8 = vadd.f32 %v2101_v2, %v6135_v31  ;;  %v6149_v44 = vld [vmem:[%s3816_s18 + $0xa70] sm:$0xff] }
 0x33e   : > { %v637_v2 = vld [vmem:[%s3809_s20 + $0xcb0] sm:$0xff] }
 0x33f   : > { %v1642_v20 = vadd.f32 %v1641_v14, %v618_v10  ;;  %v2608_v10 = vmul.f32 %v6065_v38, %v6065_v38  ;;  %v3117_v12 = vadd.f32 %v3116_v6, %v2606_v62  ;;  %v2103_v14 = vadd.f32 %v2102_v8, %v6142_v37  ;;  %v6156_v38 = vld [vmem:[%s3816_s18 + $0xa78] sm:$0xff] }
 0x340   : > { %v638_v8 = vld [vmem:[%s3809_s20 + $0xcb8] sm:$0xff] }
 0x341   : > { %v1643_v27 = vadd.f32 %v1642_v20, %v619_v16  ;;  %v2609_v16 = vmul.f32 %v6072_v42, %v6072_v42  ;;  %v3118_v18 = vadd.f32 %v3117_v12, %v2607_v4  ;;  %v2104_v20 = vadd.f32 %v2103_v14, %v6149_v44  ;;  %v6163_v42 = vld [vmem:[%s3816_s18 + $0xa80] sm:$0xff] }
 0x342   : > { %v639_v14 = vld [vmem:[%s3809_s20 + $0xcc0] sm:$0xff] }
 0x343   : > { %v1644_v33 = vadd.f32 %v1643_v27, %v620_v23  ;;  %v2610_v23 = vmul.f32 %v6079_v46, %v6079_v46  ;;  %v3119_v22 = vadd.f32 %v3118_v18, %v2608_v10  ;;  %v2105_v27 = vadd.f32 %v2104_v20, %v6156_v38  ;;  %v6170_v46 = vld [vmem:[%s3816_s18 + $0xa88] sm:$0xff] }
 0x344   : > { %v640_v20 = vld [vmem:[%s3809_s20 + $0xcc8] sm:$0xff] }
 0x345   : > { %v1645_v40 = vadd.f32 %v1644_v33, %v621_v29  ;;  %v2611_v29 = vmul.f32 %v6086_v52, %v6086_v52  ;;  %v3120_v26 = vadd.f32 %v3119_v22, %v2609_v16  ;;  %v2106_v33 = vadd.f32 %v2105_v27, %v6163_v42  ;;  %v6177_v52 = vld [vmem:[%s3816_s18 + $0xa90] sm:$0xff] }
 0x346   : > { %v641_v27 = vld [vmem:[%s3809_s20 + $0xcd0] sm:$0xff] }
 0x347   : > { %v1646_v47 = vadd.f32 %v1645_v40, %v622_v36  ;;  %v2612_v36 = vmul.f32 %v6093_v57, %v6093_v57  ;;  %v3121_v30 = vadd.f32 %v3120_v26, %v2610_v23  ;;  %v2107_v40 = vadd.f32 %v2106_v33, %v6170_v46  ;;  %v6184_v57 = vld [vmem:[%s3816_s18 + $0xa98] sm:$0xff] }
 0x348   : > { %v642_v33 = vld [vmem:[%s3809_s20 + $0xcd8] sm:$0xff] }
 0x349   : > { %v1647_v53 = vadd.f32 %v1646_v47, %v623_v43  ;;  %v2613_v43 = vmul.f32 %v6100_v63, %v6100_v63  ;;  %v3122_v34 = vadd.f32 %v3121_v30, %v2611_v29  ;;  %v2108_v47 = vadd.f32 %v2107_v40, %v6177_v52  ;;  %v6191_v63 = vld [vmem:[%s3816_s18 + $0xaa0] sm:$0xff] }
 0x34a   : > { %v643_v40 = vld [vmem:[%s3809_s20 + $0xce0] sm:$0xff] }
 0x34b   : > { %v1648_v59 = vadd.f32 %v1647_v53, %v624_v49  ;;  %v2614_v49 = vmul.f32 %v6107_v5, %v6107_v5  ;;  %v3123_v50 = vadd.f32 %v3122_v34, %v2612_v36  ;;  %v2109_v53 = vadd.f32 %v2108_v47, %v6184_v57  ;;  %v6198_v5 = vld [vmem:[%s3816_s18 + $0xaa8] sm:$0xff] }
 0x34c   : > { %v644_v47 = vld [vmem:[%s3809_s20 + $0xce8] sm:$0xff] }
 0x34d   : > { %v1649_v1 = vadd.f32 %v1648_v59, %v625_v55  ;;  %v2615_v55 = vmul.f32 %v6114_v11, %v6114_v11  ;;  %v3124_v56 = vadd.f32 %v3123_v50, %v2613_v43  ;;  %v2110_v59 = vadd.f32 %v2109_v53, %v6191_v63  ;;  %v6205_v11 = vld [vmem:[%s3816_s18 + $0xab0] sm:$0xff] }
 0x34e   : > { %v645_v53 = vld [vmem:[%s3809_s20 + $0xcf0] sm:$0xff] }
 0x34f   : > { %v1650_v7 = vadd.f32 %v1649_v1, %v626_v61  ;;  %v2616_v61 = vmul.f32 %v6121_v17, %v6121_v17  ;;  %v3125_v62 = vadd.f32 %v3124_v56, %v2614_v49  ;;  %v2111_v1 = vadd.f32 %v2110_v59, %v6198_v5  ;;  %v6212_v17 = vld [vmem:[%s3816_s18 + $0xab8] sm:$0xff] }
 0x350   : > { %v646_v59 = vld [vmem:[%s3809_s20 + $0xcf8] sm:$0xff] }
 0x351   : > { %v1651_v13 = vadd.f32 %v1650_v7, %v627_v3  ;;  %v2617_v3 = vmul.f32 %v6128_v24, %v6128_v24  ;;  %v3126_v4 = vadd.f32 %v3125_v62, %v2615_v55  ;;  %v2112_v7 = vadd.f32 %v2111_v1, %v6205_v11  ;;  %v6219_v24 = vld [vmem:[%s3816_s18 + $0xac0] sm:$0xff] }
 0x352   : > { %v647_v1 = vld [vmem:[%s3809_s20 + $0xd00] sm:$0xff] }
 0x353   : > { %v1652_v19 = vadd.f32 %v1651_v13, %v628_v9  ;;  %v2618_v9 = vmul.f32 %v6135_v31, %v6135_v31  ;;  %v3127_v10 = vadd.f32 %v3126_v4, %v2616_v61  ;;  %v2113_v13 = vadd.f32 %v2112_v7, %v6212_v17  ;;  %v6226_v31 = vld [vmem:[%s3816_s18 + $0xac8] sm:$0xff] }
 0x354   : > { %v648_v7 = vld [vmem:[%s3809_s20 + $0xd08] sm:$0xff] }
 0x355   : > { %v1653_v25 = vadd.f32 %v1652_v19, %v629_v15  ;;  %v2619_v15 = vmul.f32 %v6142_v37, %v6142_v37  ;;  %v3128_v16 = vadd.f32 %v3127_v10, %v2617_v3  ;;  %v2114_v19 = vadd.f32 %v2113_v13, %v6219_v24  ;;  %v6233_v37 = vld [vmem:[%s3816_s18 + $0xad0] sm:$0xff] }
 0x356   : > { %v649_v13 = vld [vmem:[%s3809_s20 + $0xd10] sm:$0xff] }
 0x357   : > { %v1654_v32 = vadd.f32 %v1653_v25, %v630_v21  ;;  %v2620_v21 = vmul.f32 %v6149_v44, %v6149_v44  ;;  %v3129_v23 = vadd.f32 %v3128_v16, %v2618_v9  ;;  %v2115_v25 = vadd.f32 %v2114_v19, %v6226_v31  ;;  %v6240_v44 = vld [vmem:[%s3816_s18 + $0xad8] sm:$0xff] }
 0x358   : > { %v650_v19 = vld [vmem:[%s3809_s20 + $0xd18] sm:$0xff] }
 0x359   : > { %v1655_v39 = vadd.f32 %v1654_v32, %v631_v28  ;;  %v2621_v28 = vmul.f32 %v6156_v38, %v6156_v38  ;;  %v3130_v29 = vadd.f32 %v3129_v23, %v2619_v15  ;;  %v2116_v32 = vadd.f32 %v2115_v25, %v6233_v37  ;;  %v6247_v38 = vld [vmem:[%s3816_s18 + $0xae0] sm:$0xff] }
 0x35a   : > { %v651_v25 = vld [vmem:[%s3809_s20 + $0xd20] sm:$0xff] }
 0x35b   : > { %v1656_v45 = vadd.f32 %v1655_v39, %v632_v35  ;;  %v2622_v35 = vmul.f32 %v6163_v42, %v6163_v42  ;;  %v3131_v36 = vadd.f32 %v3130_v29, %v2620_v21  ;;  %v2117_v39 = vadd.f32 %v2116_v32, %v6240_v44  ;;  %v6254_v42 = vld [vmem:[%s3816_s18 + $0xae8] sm:$0xff] }
 0x35c   : > { %v652_v32 = vld [vmem:[%s3809_s20 + $0xd28] sm:$0xff] }
 0x35d   : > { %v1657_v51 = vadd.f32 %v1656_v45, %v633_v41  ;;  %v2623_v41 = vmul.f32 %v6170_v46, %v6170_v46  ;;  %v3132_v43 = vadd.f32 %v3131_v36, %v2621_v28  ;;  %v2118_v45 = vadd.f32 %v2117_v39, %v6247_v38  ;;  %v6261_v46 = vld [vmem:[%s3816_s18 + $0xaf0] sm:$0xff] }
 0x35e   : > { %v653_v39 = vld [vmem:[%s3809_s20 + $0xd30] sm:$0xff] }
 0x35f   : > { %v1658_v58 = vadd.f32 %v1657_v51, %v634_v48  ;;  %v2624_v48 = vmul.f32 %v6177_v52, %v6177_v52  ;;  %v3133_v49 = vadd.f32 %v3132_v43, %v2622_v35  ;;  %v2119_v51 = vadd.f32 %v2118_v45, %v6254_v42  ;;  %v6268_v52 = vld [vmem:[%s3816_s18 + $0xaf8] sm:$0xff] }
 0x360   : > { %v654_v45 = vld [vmem:[%s3809_s20 + $0xd38] sm:$0xff] }
 0x361   : > { %v1659_v0 = vadd.f32 %v1658_v58, %v635_v54  ;;  %v2625_v54 = vmul.f32 %v6184_v57, %v6184_v57  ;;  %v3134_v55 = vadd.f32 %v3133_v49, %v2623_v41  ;;  %v2120_v58 = vadd.f32 %v2119_v51, %v6261_v46  ;;  %v6275_v57 = vld [vmem:[%s3816_s18 + $0xb00] sm:$0xff] }
 0x362   : > { %v655_v51 = vld [vmem:[%s3809_s20 + $0xd40] sm:$0xff] }
 0x363   : > { %v1660_v6 = vadd.f32 %v1659_v0, %v636_v60  ;;  %v2626_v60 = vmul.f32 %v6191_v63, %v6191_v63  ;;  %v3135_v61 = vadd.f32 %v3134_v55, %v2624_v48  ;;  %v2121_v0 = vadd.f32 %v2120_v58, %v6268_v52  ;;  %v6282_v63 = vld [vmem:[%s3816_s18 + $0xb08] sm:$0xff] }
 0x364   : > { %v656_v58 = vld [vmem:[%s3809_s20 + $0xd48] sm:$0xff] }
 0x365   : > { %v1661_v12 = vadd.f32 %v1660_v6, %v637_v2  ;;  %v2627_v2 = vmul.f32 %v6198_v5, %v6198_v5  ;;  %v3136_v3 = vadd.f32 %v3135_v61, %v2625_v54  ;;  %v2122_v6 = vadd.f32 %v2121_v0, %v6275_v57  ;;  %v6289_v5 = vld [vmem:[%s3816_s18 + $0xb10] sm:$0xff] }
 0x366   : > { %v657_v0 = vld [vmem:[%s3809_s20 + $0xd50] sm:$0xff] }
 0x367   : > { %v1662_v18 = vadd.f32 %v1661_v12, %v638_v8  ;;  %v2628_v8 = vmul.f32 %v6205_v11, %v6205_v11  ;;  %v3137_v9 = vadd.f32 %v3136_v3, %v2626_v60  ;;  %v2123_v12 = vadd.f32 %v2122_v6, %v6282_v63  ;;  %v6296_v11 = vld [vmem:[%s3816_s18 + $0xb18] sm:$0xff] }
 0x368   : > { %v658_v6 = vld [vmem:[%s3809_s20 + $0xd58] sm:$0xff] }
 0x369   : > { %v1663_v22 = vadd.f32 %v1662_v18, %v639_v14  ;;  %v2629_v14 = vmul.f32 %v6212_v17, %v6212_v17  ;;  %v3138_v15 = vadd.f32 %v3137_v9, %v2627_v2  ;;  %v2124_v18 = vadd.f32 %v2123_v12, %v6289_v5  ;;  %v6303_v17 = vld [vmem:[%s3816_s18 + $0xb20] sm:$0xff] }
 0x36a   : > { %v659_v12 = vld [vmem:[%s3809_s20 + $0xd60] sm:$0xff] }
 0x36b   : > { %v1664_v26 = vadd.f32 %v1663_v22, %v640_v20  ;;  %v2630_v20 = vmul.f32 %v6219_v24, %v6219_v24  ;;  %v3139_v21 = vadd.f32 %v3138_v15, %v2628_v8  ;;  %v2125_v22 = vadd.f32 %v2124_v18, %v6296_v11  ;;  %v6310_v24 = vld [vmem:[%s3816_s18 + $0xb28] sm:$0xff] }
 0x36c   : > { %v660_v18 = vld [vmem:[%s3809_s20 + $0xd68] sm:$0xff] }
 0x36d   : > { %v1665_v30 = vadd.f32 %v1664_v26, %v641_v27  ;;  %v2631_v27 = vmul.f32 %v6226_v31, %v6226_v31  ;;  %v3140_v28 = vadd.f32 %v3139_v21, %v2629_v14  ;;  %v2126_v26 = vadd.f32 %v2125_v22, %v6303_v17  ;;  %v6317_v31 = vld [vmem:[%s3816_s18 + $0xb30] sm:$0xff] }
 0x36e   : > { %v661_v22 = vld [vmem:[%s3809_s20 + $0xd70] sm:$0xff] }
 0x36f   : > { %v1666_v34 = vadd.f32 %v1665_v30, %v642_v33  ;;  %v2632_v33 = vmul.f32 %v6233_v37, %v6233_v37  ;;  %v3141_v35 = vadd.f32 %v3140_v28, %v2630_v20  ;;  %v2127_v30 = vadd.f32 %v2126_v26, %v6310_v24  ;;  %v6324_v37 = vld [vmem:[%s3816_s18 + $0xb38] sm:$0xff] }
 0x370   : > { %v662_v26 = vld [vmem:[%s3809_s20 + $0xd78] sm:$0xff] }
 0x371   : > { %v1667_v50 = vadd.f32 %v1666_v34, %v643_v40  ;;  %v2633_v40 = vmul.f32 %v6240_v44, %v6240_v44  ;;  %v3142_v41 = vadd.f32 %v3141_v35, %v2631_v27  ;;  %v2128_v34 = vadd.f32 %v2127_v30, %v6317_v31  ;;  %v6331_v44 = vld [vmem:[%s3816_s18 + $0xb40] sm:$0xff] }
 0x372   : > { %v663_v30 = vld [vmem:[%s3809_s20 + $0xd80] sm:$0xff] }
 0x373   : > { %v1668_v56 = vadd.f32 %v1667_v50, %v644_v47  ;;  %v2634_v47 = vmul.f32 %v6247_v38, %v6247_v38  ;;  %v3143_v48 = vadd.f32 %v3142_v41, %v2632_v33  ;;  %v2129_v50 = vadd.f32 %v2128_v34, %v6324_v37  ;;  %v6338_v38 = vld [vmem:[%s3816_s18 + $0xb48] sm:$0xff] }
 0x374   : > { %v664_v34 = vld [vmem:[%s3809_s20 + $0xd88] sm:$0xff] }
 0x375   : > { %v1669_v62 = vadd.f32 %v1668_v56, %v645_v53  ;;  %v2635_v53 = vmul.f32 %v6254_v42, %v6254_v42  ;;  %v3144_v54 = vadd.f32 %v3143_v48, %v2633_v40  ;;  %v2130_v56 = vadd.f32 %v2129_v50, %v6331_v44  ;;  %v6345_v42 = vld [vmem:[%s3816_s18 + $0xb50] sm:$0xff] }
 0x376   : > { %v665_v50 = vld [vmem:[%s3809_s20 + $0xd90] sm:$0xff] }
 0x377   : > { %v1670_v4 = vadd.f32 %v1669_v62, %v646_v59  ;;  %v2636_v59 = vmul.f32 %v6261_v46, %v6261_v46  ;;  %v3145_v60 = vadd.f32 %v3144_v54, %v2634_v47  ;;  %v2131_v62 = vadd.f32 %v2130_v56, %v6338_v38  ;;  %v6352_v46 = vld [vmem:[%s3816_s18 + $0xb58] sm:$0xff] }
 0x378   : > { %v666_v56 = vld [vmem:[%s3809_s20 + $0xd98] sm:$0xff] }
 0x379   : > { %v1671_v10 = vadd.f32 %v1670_v4, %v647_v1  ;;  %v2637_v1 = vmul.f32 %v6268_v52, %v6268_v52  ;;  %v3146_v2 = vadd.f32 %v3145_v60, %v2635_v53  ;;  %v2132_v4 = vadd.f32 %v2131_v62, %v6345_v42  ;;  %v6359_v52 = vld [vmem:[%s3816_s18 + $0xb60] sm:$0xff] }
 0x37a   : > { %v667_v62 = vld [vmem:[%s3809_s20 + $0xda0] sm:$0xff] }
 0x37b   : > { %v1672_v16 = vadd.f32 %v1671_v10, %v648_v7  ;;  %v2638_v7 = vmul.f32 %v6275_v57, %v6275_v57  ;;  %v3147_v8 = vadd.f32 %v3146_v2, %v2636_v59  ;;  %v2133_v10 = vadd.f32 %v2132_v4, %v6352_v46  ;;  %v6366_v57 = vld [vmem:[%s3816_s18 + $0xb68] sm:$0xff] }
 0x37c   : > { %v668_v4 = vld [vmem:[%s3809_s20 + $0xda8] sm:$0xff] }
 0x37d   : > { %v1673_v23 = vadd.f32 %v1672_v16, %v649_v13  ;;  %v2639_v13 = vmul.f32 %v6282_v63, %v6282_v63  ;;  %v3148_v14 = vadd.f32 %v3147_v8, %v2637_v1  ;;  %v2134_v16 = vadd.f32 %v2133_v10, %v6359_v52  ;;  %v6373_v63 = vld [vmem:[%s3816_s18 + $0xb70] sm:$0xff] }
 0x37e   : > { %v669_v10 = vld [vmem:[%s3809_s20 + $0xdb0] sm:$0xff] }
 0x37f   : > { %v1674_v29 = vadd.f32 %v1673_v23, %v650_v19  ;;  %v2640_v19 = vmul.f32 %v6289_v5, %v6289_v5  ;;  %v3149_v20 = vadd.f32 %v3148_v14, %v2638_v7  ;;  %v2135_v23 = vadd.f32 %v2134_v16, %v6366_v57  ;;  %v6380_v5 = vld [vmem:[%s3816_s18 + $0xb78] sm:$0xff] }
 0x380   : > { %v670_v16 = vld [vmem:[%s3809_s20 + $0xdb8] sm:$0xff] }
 0x381   : > { %v1675_v36 = vadd.f32 %v1674_v29, %v651_v25  ;;  %v2641_v25 = vmul.f32 %v6296_v11, %v6296_v11  ;;  %v3150_v27 = vadd.f32 %v3149_v20, %v2639_v13  ;;  %v2136_v29 = vadd.f32 %v2135_v23, %v6373_v63  ;;  %v6387_v11 = vld [vmem:[%s3816_s18 + $0xb80] sm:$0xff] }
 0x382   : > { %v671_v23 = vld [vmem:[%s3809_s20 + $0xdc0] sm:$0xff] }
 0x383   : > { %v1676_v43 = vadd.f32 %v1675_v36, %v652_v32  ;;  %v2642_v32 = vmul.f32 %v6303_v17, %v6303_v17  ;;  %v3151_v33 = vadd.f32 %v3150_v27, %v2640_v19  ;;  %v2137_v36 = vadd.f32 %v2136_v29, %v6380_v5  ;;  %v6394_v17 = vld [vmem:[%s3816_s18 + $0xb88] sm:$0xff] }
 0x384   : > { %v672_v29 = vld [vmem:[%s3809_s20 + $0xdc8] sm:$0xff] }
 0x385   : > { %v1677_v49 = vadd.f32 %v1676_v43, %v653_v39  ;;  %v2643_v39 = vmul.f32 %v6310_v24, %v6310_v24  ;;  %v3152_v40 = vadd.f32 %v3151_v33, %v2641_v25  ;;  %v2138_v43 = vadd.f32 %v2137_v36, %v6387_v11  ;;  %v6401_v24 = vld [vmem:[%s3816_s18 + $0xb90] sm:$0xff] }
 0x386   : > { %v673_v36 = vld [vmem:[%s3809_s20 + $0xdd0] sm:$0xff] }
 0x387   : > { %v1678_v55 = vadd.f32 %v1677_v49, %v654_v45  ;;  %v2644_v45 = vmul.f32 %v6317_v31, %v6317_v31  ;;  %v3153_v47 = vadd.f32 %v3152_v40, %v2642_v32  ;;  %v2139_v49 = vadd.f32 %v2138_v43, %v6394_v17  ;;  %v6408_v31 = vld [vmem:[%s3816_s18 + $0xb98] sm:$0xff] }
 0x388   : > { %v674_v43 = vld [vmem:[%s3809_s20 + $0xdd8] sm:$0xff] }
 0x389   : > { %v1679_v61 = vadd.f32 %v1678_v55, %v655_v51  ;;  %v2645_v51 = vmul.f32 %v6324_v37, %v6324_v37  ;;  %v3154_v53 = vadd.f32 %v3153_v47, %v2643_v39  ;;  %v2140_v55 = vadd.f32 %v2139_v49, %v6401_v24  ;;  %v6415_v37 = vld [vmem:[%s3816_s18 + $0xba0] sm:$0xff] }
 0x38a   : > { %v675_v49 = vld [vmem:[%s3809_s20 + $0xde0] sm:$0xff] }
 0x38b   : > { %v1680_v3 = vadd.f32 %v1679_v61, %v656_v58  ;;  %v2646_v58 = vmul.f32 %v6331_v44, %v6331_v44  ;;  %v3155_v59 = vadd.f32 %v3154_v53, %v2644_v45  ;;  %v2141_v61 = vadd.f32 %v2140_v55, %v6408_v31  ;;  %v6422_v44 = vld [vmem:[%s3816_s18 + $0xba8] sm:$0xff] }
 0x38c   : > { %v676_v55 = vld [vmem:[%s3809_s20 + $0xde8] sm:$0xff] }
 0x38d   : > { %v1681_v9 = vadd.f32 %v1680_v3, %v657_v0  ;;  %v2647_v0 = vmul.f32 %v6338_v38, %v6338_v38  ;;  %v3156_v1 = vadd.f32 %v3155_v59, %v2645_v51  ;;  %v2142_v3 = vadd.f32 %v2141_v61, %v6415_v37  ;;  %v6429_v38 = vld [vmem:[%s3816_s18 + $0xbb0] sm:$0xff] }
 0x38e   : > { %v677_v61 = vld [vmem:[%s3809_s20 + $0xdf0] sm:$0xff] }
 0x38f   : > { %v1682_v15 = vadd.f32 %v1681_v9, %v658_v6  ;;  %v2648_v6 = vmul.f32 %v6345_v42, %v6345_v42  ;;  %v3157_v7 = vadd.f32 %v3156_v1, %v2646_v58  ;;  %v2143_v9 = vadd.f32 %v2142_v3, %v6422_v44  ;;  %v6436_v42 = vld [vmem:[%s3816_s18 + $0xbb8] sm:$0xff] }
 0x390   : > { %v678_v3 = vld [vmem:[%s3809_s20 + $0xdf8] sm:$0xff] }
 0x391   : > { %v1683_v21 = vadd.f32 %v1682_v15, %v659_v12  ;;  %v2649_v12 = vmul.f32 %v6352_v46, %v6352_v46  ;;  %v3158_v13 = vadd.f32 %v3157_v7, %v2647_v0  ;;  %v2144_v15 = vadd.f32 %v2143_v9, %v6429_v38  ;;  %v6443_v46 = vld [vmem:[%s3816_s18 + $0xbc0] sm:$0xff] }
 0x392   : > { %v679_v9 = vld [vmem:[%s3809_s20 + $0xe00] sm:$0xff] }
 0x393   : > { %v1684_v28 = vadd.f32 %v1683_v21, %v660_v18  ;;  %v2650_v18 = vmul.f32 %v6359_v52, %v6359_v52  ;;  %v3159_v19 = vadd.f32 %v3158_v13, %v2648_v6  ;;  %v2145_v21 = vadd.f32 %v2144_v15, %v6436_v42  ;;  %v6450_v52 = vld [vmem:[%s3816_s18 + $0xbc8] sm:$0xff] }
 0x394   : > { %v680_v15 = vld [vmem:[%s3809_s20 + $0xe08] sm:$0xff] }
 0x395   : > { %v1685_v35 = vadd.f32 %v1684_v28, %v661_v22  ;;  %v2651_v22 = vmul.f32 %v6366_v57, %v6366_v57  ;;  %v3160_v25 = vadd.f32 %v3159_v19, %v2649_v12  ;;  %v2146_v28 = vadd.f32 %v2145_v21, %v6443_v46  ;;  %v6457_v57 = vld [vmem:[%s3816_s18 + $0xbd0] sm:$0xff] }
 0x396   : > { %v681_v21 = vld [vmem:[%s3809_s20 + $0xe10] sm:$0xff] }
 0x397   : > { %v1686_v41 = vadd.f32 %v1685_v35, %v662_v26  ;;  %v2652_v26 = vmul.f32 %v6373_v63, %v6373_v63  ;;  %v3161_v32 = vadd.f32 %v3160_v25, %v2650_v18  ;;  %v2147_v35 = vadd.f32 %v2146_v28, %v6450_v52  ;;  %v6464_v63 = vld [vmem:[%s3816_s18 + $0xbd8] sm:$0xff] }
 0x398   : > { %v682_v28 = vld [vmem:[%s3809_s20 + $0xe18] sm:$0xff] }
 0x399   : > { %v1687_v48 = vadd.f32 %v1686_v41, %v663_v30  ;;  %v2653_v30 = vmul.f32 %v6380_v5, %v6380_v5  ;;  %v3162_v39 = vadd.f32 %v3161_v32, %v2651_v22  ;;  %v2148_v41 = vadd.f32 %v2147_v35, %v6457_v57  ;;  %v6471_v5 = vld [vmem:[%s3816_s18 + $0xbe0] sm:$0xff] }
 0x39a   : > { %v683_v35 = vld [vmem:[%s3809_s20 + $0xe20] sm:$0xff] }
 0x39b   : > { %v1688_v54 = vadd.f32 %v1687_v48, %v664_v34  ;;  %v2654_v34 = vmul.f32 %v6387_v11, %v6387_v11  ;;  %v3163_v45 = vadd.f32 %v3162_v39, %v2652_v26  ;;  %v2149_v48 = vadd.f32 %v2148_v41, %v6464_v63  ;;  %v6478_v11 = vld [vmem:[%s3816_s18 + $0xbe8] sm:$0xff] }
 0x39c   : > { %v684_v41 = vld [vmem:[%s3809_s20 + $0xe28] sm:$0xff] }
 0x39d   : > { %v1689_v60 = vadd.f32 %v1688_v54, %v665_v50  ;;  %v2655_v50 = vmul.f32 %v6394_v17, %v6394_v17  ;;  %v3164_v51 = vadd.f32 %v3163_v45, %v2653_v30  ;;  %v2150_v54 = vadd.f32 %v2149_v48, %v6471_v5  ;;  %v6485_v17 = vld [vmem:[%s3816_s18 + $0xbf0] sm:$0xff] }
 0x39e   : > { %v685_v48 = vld [vmem:[%s3809_s20 + $0xe30] sm:$0xff] }
 0x39f   : > { %v1690_v2 = vadd.f32 %v1689_v60, %v666_v56  ;;  %v2656_v56 = vmul.f32 %v6401_v24, %v6401_v24  ;;  %v3165_v58 = vadd.f32 %v3164_v51, %v2654_v34  ;;  %v2151_v60 = vadd.f32 %v2150_v54, %v6478_v11  ;;  %v6492_v24 = vld [vmem:[%s3816_s18 + $0xbf8] sm:$0xff] }
 0x3a0   : > { %v686_v54 = vld [vmem:[%s3809_s20 + $0xe38] sm:$0xff] }
 0x3a1   : > { %v1691_v8 = vadd.f32 %v1690_v2, %v667_v62  ;;  %v2657_v62 = vmul.f32 %v6408_v31, %v6408_v31  ;;  %v3166_v0 = vadd.f32 %v3165_v58, %v2655_v50  ;;  %v2152_v2 = vadd.f32 %v2151_v60, %v6485_v17  ;;  %v6499_v31 = vld [vmem:[%s3816_s18 + $0xc00] sm:$0xff] }
 0x3a2   : > { %v687_v60 = vld [vmem:[%s3809_s20 + $0xe40] sm:$0xff] }
 0x3a3   : > { %v1692_v14 = vadd.f32 %v1691_v8, %v668_v4  ;;  %v2658_v4 = vmul.f32 %v6415_v37, %v6415_v37  ;;  %v3167_v6 = vadd.f32 %v3166_v0, %v2656_v56  ;;  %v2153_v8 = vadd.f32 %v2152_v2, %v6492_v24  ;;  %v6506_v37 = vld [vmem:[%s3816_s18 + $0xc08] sm:$0xff] }
 0x3a4   : > { %v688_v2 = vld [vmem:[%s3809_s20 + $0xe48] sm:$0xff] }
 0x3a5   : > { %v1693_v20 = vadd.f32 %v1692_v14, %v669_v10  ;;  %v2659_v10 = vmul.f32 %v6422_v44, %v6422_v44  ;;  %v3168_v12 = vadd.f32 %v3167_v6, %v2657_v62  ;;  %v2154_v14 = vadd.f32 %v2153_v8, %v6499_v31  ;;  %v6513_v44 = vld [vmem:[%s3816_s18 + $0xc10] sm:$0xff] }
 0x3a6   : > { %v689_v8 = vld [vmem:[%s3809_s20 + $0xe50] sm:$0xff] }
 0x3a7   : > { %v1694_v27 = vadd.f32 %v1693_v20, %v670_v16  ;;  %v2660_v16 = vmul.f32 %v6429_v38, %v6429_v38  ;;  %v3169_v18 = vadd.f32 %v3168_v12, %v2658_v4  ;;  %v2155_v20 = vadd.f32 %v2154_v14, %v6506_v37  ;;  %v6520_v38 = vld [vmem:[%s3816_s18 + $0xc18] sm:$0xff] }
 0x3a8   : > { %v690_v14 = vld [vmem:[%s3809_s20 + $0xe58] sm:$0xff] }
 0x3a9   : > { %v1695_v33 = vadd.f32 %v1694_v27, %v671_v23  ;;  %v2661_v23 = vmul.f32 %v6436_v42, %v6436_v42  ;;  %v3170_v22 = vadd.f32 %v3169_v18, %v2659_v10  ;;  %v2156_v27 = vadd.f32 %v2155_v20, %v6513_v44  ;;  %v6527_v42 = vld [vmem:[%s3816_s18 + $0xc20] sm:$0xff] }
 0x3aa   : > { %v691_v20 = vld [vmem:[%s3809_s20 + $0xe60] sm:$0xff] }
 0x3ab   : > { %v1696_v40 = vadd.f32 %v1695_v33, %v672_v29  ;;  %v2662_v29 = vmul.f32 %v6443_v46, %v6443_v46  ;;  %v3171_v26 = vadd.f32 %v3170_v22, %v2660_v16  ;;  %v2157_v33 = vadd.f32 %v2156_v27, %v6520_v38  ;;  %v6534_v46 = vld [vmem:[%s3816_s18 + $0xc28] sm:$0xff] }
 0x3ac   : > { %v692_v27 = vld [vmem:[%s3809_s20 + $0xe68] sm:$0xff] }
 0x3ad   : > { %v1697_v47 = vadd.f32 %v1696_v40, %v673_v36  ;;  %v2663_v36 = vmul.f32 %v6450_v52, %v6450_v52  ;;  %v3172_v30 = vadd.f32 %v3171_v26, %v2661_v23  ;;  %v2158_v40 = vadd.f32 %v2157_v33, %v6527_v42  ;;  %v6541_v52 = vld [vmem:[%s3816_s18 + $0xc30] sm:$0xff] }
 0x3ae   : > { %v693_v33 = vld [vmem:[%s3809_s20 + $0xe70] sm:$0xff] }
 0x3af   : > { %v1698_v53 = vadd.f32 %v1697_v47, %v674_v43  ;;  %v2664_v43 = vmul.f32 %v6457_v57, %v6457_v57  ;;  %v3173_v34 = vadd.f32 %v3172_v30, %v2662_v29  ;;  %v2159_v47 = vadd.f32 %v2158_v40, %v6534_v46  ;;  %v6548_v57 = vld [vmem:[%s3816_s18 + $0xc38] sm:$0xff] }
 0x3b0   : > { %v694_v40 = vld [vmem:[%s3809_s20 + $0xe78] sm:$0xff] }
 0x3b1   : > { %v1699_v59 = vadd.f32 %v1698_v53, %v675_v49  ;;  %v2665_v49 = vmul.f32 %v6464_v63, %v6464_v63  ;;  %v3174_v50 = vadd.f32 %v3173_v34, %v2663_v36  ;;  %v2160_v53 = vadd.f32 %v2159_v47, %v6541_v52  ;;  %v6555_v63 = vld [vmem:[%s3816_s18 + $0xc40] sm:$0xff] }
 0x3b2   : > { %v695_v47 = vld [vmem:[%s3809_s20 + $0xe80] sm:$0xff] }
 0x3b3   : > { %v1700_v1 = vadd.f32 %v1699_v59, %v676_v55  ;;  %v2666_v55 = vmul.f32 %v6471_v5, %v6471_v5  ;;  %v3175_v56 = vadd.f32 %v3174_v50, %v2664_v43  ;;  %v2161_v59 = vadd.f32 %v2160_v53, %v6548_v57  ;;  %v6562_v5 = vld [vmem:[%s3816_s18 + $0xc48] sm:$0xff] }
 0x3b4   : > { %v696_v53 = vld [vmem:[%s3809_s20 + $0xe88] sm:$0xff] }
 0x3b5   : > { %v1701_v7 = vadd.f32 %v1700_v1, %v677_v61  ;;  %v2667_v61 = vmul.f32 %v6478_v11, %v6478_v11  ;;  %v3176_v62 = vadd.f32 %v3175_v56, %v2665_v49  ;;  %v2162_v1 = vadd.f32 %v2161_v59, %v6555_v63  ;;  %v6569_v11 = vld [vmem:[%s3816_s18 + $0xc50] sm:$0xff] }
 0x3b6   : > { %v697_v59 = vld [vmem:[%s3809_s20 + $0xe90] sm:$0xff] }
 0x3b7   : > { %v1702_v13 = vadd.f32 %v1701_v7, %v678_v3  ;;  %v2668_v3 = vmul.f32 %v6485_v17, %v6485_v17  ;;  %v3177_v4 = vadd.f32 %v3176_v62, %v2666_v55  ;;  %v2163_v7 = vadd.f32 %v2162_v1, %v6562_v5  ;;  %v6576_v17 = vld [vmem:[%s3816_s18 + $0xc58] sm:$0xff] }
 0x3b8   : > { %v698_v1 = vld [vmem:[%s3809_s20 + $0xe98] sm:$0xff] }
 0x3b9   : > { %v1703_v19 = vadd.f32 %v1702_v13, %v679_v9  ;;  %v2669_v9 = vmul.f32 %v6492_v24, %v6492_v24  ;;  %v3178_v10 = vadd.f32 %v3177_v4, %v2667_v61  ;;  %v2164_v13 = vadd.f32 %v2163_v7, %v6569_v11  ;;  %v6583_v24 = vld [vmem:[%s3816_s18 + $0xc60] sm:$0xff] }
 0x3ba   : > { %v699_v7 = vld [vmem:[%s3809_s20 + $0xea0] sm:$0xff] }
 0x3bb   : > { %v1704_v25 = vadd.f32 %v1703_v19, %v680_v15  ;;  %v2670_v15 = vmul.f32 %v6499_v31, %v6499_v31  ;;  %v3179_v16 = vadd.f32 %v3178_v10, %v2668_v3  ;;  %v2165_v19 = vadd.f32 %v2164_v13, %v6576_v17  ;;  %v6590_v31 = vld [vmem:[%s3816_s18 + $0xc68] sm:$0xff] }
 0x3bc   : > { %v700_v13 = vld [vmem:[%s3809_s20 + $0xea8] sm:$0xff] }
 0x3bd   : > { %v1705_v32 = vadd.f32 %v1704_v25, %v681_v21  ;;  %v2671_v21 = vmul.f32 %v6506_v37, %v6506_v37  ;;  %v3180_v23 = vadd.f32 %v3179_v16, %v2669_v9  ;;  %v2166_v25 = vadd.f32 %v2165_v19, %v6583_v24  ;;  %v6597_v37 = vld [vmem:[%s3816_s18 + $0xc70] sm:$0xff] }
 0x3be   : > { %v701_v19 = vld [vmem:[%s3809_s20 + $0xeb0] sm:$0xff] }
 0x3bf   : > { %v1706_v39 = vadd.f32 %v1705_v32, %v682_v28  ;;  %v2672_v28 = vmul.f32 %v6513_v44, %v6513_v44  ;;  %v3181_v29 = vadd.f32 %v3180_v23, %v2670_v15  ;;  %v2167_v32 = vadd.f32 %v2166_v25, %v6590_v31  ;;  %v6604_v44 = vld [vmem:[%s3816_s18 + $0xc78] sm:$0xff] }
 0x3c0   : > { %v702_v25 = vld [vmem:[%s3809_s20 + $0xeb8] sm:$0xff] }
 0x3c1   : > { %v1707_v45 = vadd.f32 %v1706_v39, %v683_v35  ;;  %v2673_v35 = vmul.f32 %v6520_v38, %v6520_v38  ;;  %v3182_v36 = vadd.f32 %v3181_v29, %v2671_v21  ;;  %v2168_v39 = vadd.f32 %v2167_v32, %v6597_v37  ;;  %v6611_v38 = vld [vmem:[%s3816_s18 + $0xc80] sm:$0xff] }
 0x3c2   : > { %v703_v32 = vld [vmem:[%s3809_s20 + $0xec0] sm:$0xff] }
 0x3c3   : > { %v1708_v51 = vadd.f32 %v1707_v45, %v684_v41  ;;  %v2674_v41 = vmul.f32 %v6527_v42, %v6527_v42  ;;  %v3183_v43 = vadd.f32 %v3182_v36, %v2672_v28  ;;  %v2169_v45 = vadd.f32 %v2168_v39, %v6604_v44  ;;  %v6618_v42 = vld [vmem:[%s3816_s18 + $0xc88] sm:$0xff] }
 0x3c4   : > { %v704_v39 = vld [vmem:[%s3809_s20 + $0xec8] sm:$0xff] }
 0x3c5   : > { %v1709_v58 = vadd.f32 %v1708_v51, %v685_v48  ;;  %v2675_v48 = vmul.f32 %v6534_v46, %v6534_v46  ;;  %v3184_v49 = vadd.f32 %v3183_v43, %v2673_v35  ;;  %v2170_v51 = vadd.f32 %v2169_v45, %v6611_v38  ;;  %v6625_v46 = vld [vmem:[%s3816_s18 + $0xc90] sm:$0xff] }
 0x3c6   : > { %v705_v45 = vld [vmem:[%s3809_s20 + $0xed0] sm:$0xff] }
 0x3c7   : > { %v1710_v0 = vadd.f32 %v1709_v58, %v686_v54  ;;  %v2676_v54 = vmul.f32 %v6541_v52, %v6541_v52  ;;  %v3185_v55 = vadd.f32 %v3184_v49, %v2674_v41  ;;  %v2171_v58 = vadd.f32 %v2170_v51, %v6618_v42  ;;  %v6632_v52 = vld [vmem:[%s3816_s18 + $0xc98] sm:$0xff] }
 0x3c8   : > { %v706_v51 = vld [vmem:[%s3809_s20 + $0xed8] sm:$0xff] }
 0x3c9   : > { %v1711_v6 = vadd.f32 %v1710_v0, %v687_v60  ;;  %v2677_v60 = vmul.f32 %v6548_v57, %v6548_v57  ;;  %v3186_v61 = vadd.f32 %v3185_v55, %v2675_v48  ;;  %v2172_v0 = vadd.f32 %v2171_v58, %v6625_v46  ;;  %v6639_v57 = vld [vmem:[%s3816_s18 + $0xca0] sm:$0xff] }
 0x3ca   : > { %v707_v58 = vld [vmem:[%s3809_s20 + $0xee0] sm:$0xff] }
 0x3cb   : > { %v1712_v12 = vadd.f32 %v1711_v6, %v688_v2  ;;  %v2678_v2 = vmul.f32 %v6555_v63, %v6555_v63  ;;  %v3187_v3 = vadd.f32 %v3186_v61, %v2676_v54  ;;  %v2173_v6 = vadd.f32 %v2172_v0, %v6632_v52  ;;  %v6646_v63 = vld [vmem:[%s3816_s18 + $0xca8] sm:$0xff] }
 0x3cc   : > { %v708_v0 = vld [vmem:[%s3809_s20 + $0xee8] sm:$0xff] }
 0x3cd   : > { %v1713_v18 = vadd.f32 %v1712_v12, %v689_v8  ;;  %v2679_v8 = vmul.f32 %v6562_v5, %v6562_v5  ;;  %v3188_v9 = vadd.f32 %v3187_v3, %v2677_v60  ;;  %v2174_v12 = vadd.f32 %v2173_v6, %v6639_v57  ;;  %v6653_v5 = vld [vmem:[%s3816_s18 + $0xcb0] sm:$0xff] }
 0x3ce   : > { %v709_v6 = vld [vmem:[%s3809_s20 + $0xef0] sm:$0xff] }
 0x3cf   : > { %v1714_v22 = vadd.f32 %v1713_v18, %v690_v14  ;;  %v2680_v14 = vmul.f32 %v6569_v11, %v6569_v11  ;;  %v3189_v15 = vadd.f32 %v3188_v9, %v2678_v2  ;;  %v2175_v18 = vadd.f32 %v2174_v12, %v6646_v63  ;;  %v6660_v11 = vld [vmem:[%s3816_s18 + $0xcb8] sm:$0xff] }
 0x3d0   : > { %v710_v12 = vld [vmem:[%s3809_s20 + $0xef8] sm:$0xff] }
 0x3d1   : > { %v1715_v26 = vadd.f32 %v1714_v22, %v691_v20  ;;  %v2681_v20 = vmul.f32 %v6576_v17, %v6576_v17  ;;  %v3190_v21 = vadd.f32 %v3189_v15, %v2679_v8  ;;  %v2176_v22 = vadd.f32 %v2175_v18, %v6653_v5  ;;  %v6667_v17 = vld [vmem:[%s3816_s18 + $0xcc0] sm:$0xff] }
 0x3d2   : > { %v711_v18 = vld [vmem:[%s3809_s20 + $0xf00] sm:$0xff] }
 0x3d3   : > { %v1716_v30 = vadd.f32 %v1715_v26, %v692_v27  ;;  %v2682_v27 = vmul.f32 %v6583_v24, %v6583_v24  ;;  %v3191_v28 = vadd.f32 %v3190_v21, %v2680_v14  ;;  %v2177_v26 = vadd.f32 %v2176_v22, %v6660_v11  ;;  %v6674_v24 = vld [vmem:[%s3816_s18 + $0xcc8] sm:$0xff] }
 0x3d4   : > { %v712_v22 = vld [vmem:[%s3809_s20 + $0xf08] sm:$0xff] }
 0x3d5   : > { %v1717_v34 = vadd.f32 %v1716_v30, %v693_v33  ;;  %v2683_v33 = vmul.f32 %v6590_v31, %v6590_v31  ;;  %v3192_v35 = vadd.f32 %v3191_v28, %v2681_v20  ;;  %v2178_v30 = vadd.f32 %v2177_v26, %v6667_v17  ;;  %v6681_v31 = vld [vmem:[%s3816_s18 + $0xcd0] sm:$0xff] }
 0x3d6   : > { %v713_v26 = vld [vmem:[%s3809_s20 + $0xf10] sm:$0xff] }
 0x3d7   : > { %v1718_v50 = vadd.f32 %v1717_v34, %v694_v40  ;;  %v2684_v40 = vmul.f32 %v6597_v37, %v6597_v37  ;;  %v3193_v41 = vadd.f32 %v3192_v35, %v2682_v27  ;;  %v2179_v34 = vadd.f32 %v2178_v30, %v6674_v24  ;;  %v6688_v37 = vld [vmem:[%s3816_s18 + $0xcd8] sm:$0xff] }
 0x3d8   : > { %v714_v30 = vld [vmem:[%s3809_s20 + $0xf18] sm:$0xff] }
 0x3d9   : > { %v1719_v56 = vadd.f32 %v1718_v50, %v695_v47  ;;  %v2685_v47 = vmul.f32 %v6604_v44, %v6604_v44  ;;  %v3194_v48 = vadd.f32 %v3193_v41, %v2683_v33  ;;  %v2180_v50 = vadd.f32 %v2179_v34, %v6681_v31  ;;  %v6695_v44 = vld [vmem:[%s3816_s18 + $0xce0] sm:$0xff] }
 0x3da   : > { %v715_v34 = vld [vmem:[%s3809_s20 + $0xf20] sm:$0xff] }
 0x3db   : > { %v1720_v62 = vadd.f32 %v1719_v56, %v696_v53  ;;  %v2686_v53 = vmul.f32 %v6611_v38, %v6611_v38  ;;  %v3195_v54 = vadd.f32 %v3194_v48, %v2684_v40  ;;  %v2181_v56 = vadd.f32 %v2180_v50, %v6688_v37  ;;  %v6702_v38 = vld [vmem:[%s3816_s18 + $0xce8] sm:$0xff] }
 0x3dc   : > { %v716_v50 = vld [vmem:[%s3809_s20 + $0xf28] sm:$0xff] }
 0x3dd   : > { %v1721_v4 = vadd.f32 %v1720_v62, %v697_v59  ;;  %v2687_v59 = vmul.f32 %v6618_v42, %v6618_v42  ;;  %v3196_v60 = vadd.f32 %v3195_v54, %v2685_v47  ;;  %v2182_v62 = vadd.f32 %v2181_v56, %v6695_v44  ;;  %v6709_v42 = vld [vmem:[%s3816_s18 + $0xcf0] sm:$0xff] }
 0x3de   : > { %v717_v56 = vld [vmem:[%s3809_s20 + $0xf30] sm:$0xff] }
 0x3df   : > { %v1722_v10 = vadd.f32 %v1721_v4, %v698_v1  ;;  %v2688_v1 = vmul.f32 %v6625_v46, %v6625_v46  ;;  %v3197_v2 = vadd.f32 %v3196_v60, %v2686_v53  ;;  %v2183_v4 = vadd.f32 %v2182_v62, %v6702_v38  ;;  %v6716_v46 = vld [vmem:[%s3816_s18 + $0xcf8] sm:$0xff] }
 0x3e0   : > { %v718_v62 = vld [vmem:[%s3809_s20 + $0xf38] sm:$0xff] }
 0x3e1   : > { %v1723_v16 = vadd.f32 %v1722_v10, %v699_v7  ;;  %v2689_v7 = vmul.f32 %v6632_v52, %v6632_v52  ;;  %v3198_v8 = vadd.f32 %v3197_v2, %v2687_v59  ;;  %v2184_v10 = vadd.f32 %v2183_v4, %v6709_v42  ;;  %v6723_v52 = vld [vmem:[%s3816_s18 + $0xd00] sm:$0xff] }
 0x3e2   : > { %v719_v4 = vld [vmem:[%s3809_s20 + $0xf40] sm:$0xff] }
 0x3e3   : > { %v1724_v23 = vadd.f32 %v1723_v16, %v700_v13  ;;  %v2690_v13 = vmul.f32 %v6639_v57, %v6639_v57  ;;  %v3199_v14 = vadd.f32 %v3198_v8, %v2688_v1  ;;  %v2185_v16 = vadd.f32 %v2184_v10, %v6716_v46  ;;  %v6730_v57 = vld [vmem:[%s3816_s18 + $0xd08] sm:$0xff] }
 0x3e4   : > { %v720_v10 = vld [vmem:[%s3809_s20 + $0xf48] sm:$0xff] }
 0x3e5   : > { %v1725_v29 = vadd.f32 %v1724_v23, %v701_v19  ;;  %v2691_v19 = vmul.f32 %v6646_v63, %v6646_v63  ;;  %v3200_v20 = vadd.f32 %v3199_v14, %v2689_v7  ;;  %v2186_v23 = vadd.f32 %v2185_v16, %v6723_v52  ;;  %v6737_v63 = vld [vmem:[%s3816_s18 + $0xd10] sm:$0xff] }
 0x3e6   : > { %v721_v16 = vld [vmem:[%s3809_s20 + $0xf50] sm:$0xff] }
 0x3e7   : > { %v1726_v36 = vadd.f32 %v1725_v29, %v702_v25  ;;  %v2692_v25 = vmul.f32 %v6653_v5, %v6653_v5  ;;  %v3201_v27 = vadd.f32 %v3200_v20, %v2690_v13  ;;  %v2187_v29 = vadd.f32 %v2186_v23, %v6730_v57  ;;  %v6744_v5 = vld [vmem:[%s3816_s18 + $0xd18] sm:$0xff] }
 0x3e8   : > { %v722_v23 = vld [vmem:[%s3809_s20 + $0xf58] sm:$0xff] }
 0x3e9   : > { %v1727_v43 = vadd.f32 %v1726_v36, %v703_v32  ;;  %v2693_v32 = vmul.f32 %v6660_v11, %v6660_v11  ;;  %v3202_v33 = vadd.f32 %v3201_v27, %v2691_v19  ;;  %v2188_v36 = vadd.f32 %v2187_v29, %v6737_v63  ;;  %v6751_v11 = vld [vmem:[%s3816_s18 + $0xd20] sm:$0xff] }
 0x3ea   : > { %v723_v29 = vld [vmem:[%s3809_s20 + $0xf60] sm:$0xff] }
 0x3eb   : > { %v1728_v49 = vadd.f32 %v1727_v43, %v704_v39  ;;  %v2694_v39 = vmul.f32 %v6667_v17, %v6667_v17  ;;  %v3203_v40 = vadd.f32 %v3202_v33, %v2692_v25  ;;  %v2189_v43 = vadd.f32 %v2188_v36, %v6744_v5  ;;  %v6758_v17 = vld [vmem:[%s3816_s18 + $0xd28] sm:$0xff] }
 0x3ec   : > { %v724_v36 = vld [vmem:[%s3809_s20 + $0xf68] sm:$0xff] }
 0x3ed   : > { %v1729_v55 = vadd.f32 %v1728_v49, %v705_v45  ;;  %v2695_v45 = vmul.f32 %v6674_v24, %v6674_v24  ;;  %v3204_v47 = vadd.f32 %v3203_v40, %v2693_v32  ;;  %v2190_v49 = vadd.f32 %v2189_v43, %v6751_v11  ;;  %v6765_v24 = vld [vmem:[%s3816_s18 + $0xd30] sm:$0xff] }
 0x3ee   : > { %v725_v43 = vld [vmem:[%s3809_s20 + $0xf70] sm:$0xff] }
 0x3ef   : > { %v1730_v61 = vadd.f32 %v1729_v55, %v706_v51  ;;  %v2696_v51 = vmul.f32 %v6681_v31, %v6681_v31  ;;  %v3205_v53 = vadd.f32 %v3204_v47, %v2694_v39  ;;  %v2191_v55 = vadd.f32 %v2190_v49, %v6758_v17  ;;  %v6772_v31 = vld [vmem:[%s3816_s18 + $0xd38] sm:$0xff] }
 0x3f0   : > { %v726_v49 = vld [vmem:[%s3809_s20 + $0xf78] sm:$0xff] }
 0x3f1   : > { %v1731_v3 = vadd.f32 %v1730_v61, %v707_v58  ;;  %v2697_v58 = vmul.f32 %v6688_v37, %v6688_v37  ;;  %v3206_v59 = vadd.f32 %v3205_v53, %v2695_v45  ;;  %v2192_v61 = vadd.f32 %v2191_v55, %v6765_v24  ;;  %v6779_v37 = vld [vmem:[%s3816_s18 + $0xd40] sm:$0xff] }
 0x3f2   : > { %v727_v55 = vld [vmem:[%s3809_s20 + $0xf80] sm:$0xff] }
 0x3f3   : > { %v1732_v9 = vadd.f32 %v1731_v3, %v708_v0  ;;  %v2698_v0 = vmul.f32 %v6695_v44, %v6695_v44  ;;  %v3207_v1 = vadd.f32 %v3206_v59, %v2696_v51  ;;  %v2193_v3 = vadd.f32 %v2192_v61, %v6772_v31  ;;  %v6786_v44 = vld [vmem:[%s3816_s18 + $0xd48] sm:$0xff] }
 0x3f4   : > { %v728_v61 = vld [vmem:[%s3809_s20 + $0xf88] sm:$0xff] }
 0x3f5   : > { %v1733_v15 = vadd.f32 %v1732_v9, %v709_v6  ;;  %v2699_v6 = vmul.f32 %v6702_v38, %v6702_v38  ;;  %v3208_v7 = vadd.f32 %v3207_v1, %v2697_v58  ;;  %v2194_v9 = vadd.f32 %v2193_v3, %v6779_v37  ;;  %v6793_v38 = vld [vmem:[%s3816_s18 + $0xd50] sm:$0xff] }
 0x3f6   : > { %v729_v3 = vld [vmem:[%s3809_s20 + $0xf90] sm:$0xff] }
 0x3f7   : > { %v1734_v21 = vadd.f32 %v1733_v15, %v710_v12  ;;  %v2700_v12 = vmul.f32 %v6709_v42, %v6709_v42  ;;  %v3209_v13 = vadd.f32 %v3208_v7, %v2698_v0  ;;  %v2195_v15 = vadd.f32 %v2194_v9, %v6786_v44  ;;  %v6800_v42 = vld [vmem:[%s3816_s18 + $0xd58] sm:$0xff] }
 0x3f8   : > { %v730_v9 = vld [vmem:[%s3809_s20 + $0xf98] sm:$0xff] }
 0x3f9   : > { %v1735_v28 = vadd.f32 %v1734_v21, %v711_v18  ;;  %v2701_v18 = vmul.f32 %v6716_v46, %v6716_v46  ;;  %v3210_v19 = vadd.f32 %v3209_v13, %v2699_v6  ;;  %v2196_v21 = vadd.f32 %v2195_v15, %v6793_v38  ;;  %v6807_v46 = vld [vmem:[%s3816_s18 + $0xd60] sm:$0xff] }
 0x3fa   : > { %v731_v15 = vld [vmem:[%s3809_s20 + $0xfa0] sm:$0xff] }
 0x3fb   : > { %v1736_v35 = vadd.f32 %v1735_v28, %v712_v22  ;;  %v2702_v22 = vmul.f32 %v6723_v52, %v6723_v52  ;;  %v3211_v25 = vadd.f32 %v3210_v19, %v2700_v12  ;;  %v2197_v28 = vadd.f32 %v2196_v21, %v6800_v42  ;;  %v6814_v52 = vld [vmem:[%s3816_s18 + $0xd68] sm:$0xff] }
 0x3fc   : > { %v732_v21 = vld [vmem:[%s3809_s20 + $0xfa8] sm:$0xff] }
 0x3fd   : > { %v1737_v41 = vadd.f32 %v1736_v35, %v713_v26  ;;  %v2703_v26 = vmul.f32 %v6730_v57, %v6730_v57  ;;  %v3212_v32 = vadd.f32 %v3211_v25, %v2701_v18  ;;  %v2198_v35 = vadd.f32 %v2197_v28, %v6807_v46  ;;  %v6821_v57 = vld [vmem:[%s3816_s18 + $0xd70] sm:$0xff] }
 0x3fe   : > { %v733_v28 = vld [vmem:[%s3809_s20 + $0xfb0] sm:$0xff] }
 0x3ff   : > { %v1738_v48 = vadd.f32 %v1737_v41, %v714_v30  ;;  %v2704_v30 = vmul.f32 %v6737_v63, %v6737_v63  ;;  %v3213_v39 = vadd.f32 %v3212_v32, %v2702_v22  ;;  %v2199_v41 = vadd.f32 %v2198_v35, %v6814_v52  ;;  %v6828_v63 = vld [vmem:[%s3816_s18 + $0xd78] sm:$0xff] }
 0x400   : > { %v734_v35 = vld [vmem:[%s3809_s20 + $0xfb8] sm:$0xff] }
 0x401   : > { %v1739_v54 = vadd.f32 %v1738_v48, %v715_v34  ;;  %v2705_v34 = vmul.f32 %v6744_v5, %v6744_v5  ;;  %v3214_v45 = vadd.f32 %v3213_v39, %v2703_v26  ;;  %v2200_v48 = vadd.f32 %v2199_v41, %v6821_v57  ;;  %v6835_v5 = vld [vmem:[%s3816_s18 + $0xd80] sm:$0xff] }
 0x402   : > { %v735_v41 = vld [vmem:[%s3809_s20 + $0xfc0] sm:$0xff] }
 0x403   : > { %v1740_v60 = vadd.f32 %v1739_v54, %v716_v50  ;;  %v2706_v50 = vmul.f32 %v6751_v11, %v6751_v11  ;;  %v3215_v51 = vadd.f32 %v3214_v45, %v2704_v30  ;;  %v2201_v54 = vadd.f32 %v2200_v48, %v6828_v63  ;;  %v6842_v11 = vld [vmem:[%s3816_s18 + $0xd88] sm:$0xff] }
 0x404   : > { %v736_v48 = vld [vmem:[%s3809_s20 + $0xfc8] sm:$0xff] }
 0x405   : > { %v1741_v2 = vadd.f32 %v1740_v60, %v717_v56  ;;  %v2707_v56 = vmul.f32 %v6758_v17, %v6758_v17  ;;  %v3216_v58 = vadd.f32 %v3215_v51, %v2705_v34  ;;  %v2202_v60 = vadd.f32 %v2201_v54, %v6835_v5  ;;  %v6849_v17 = vld [vmem:[%s3816_s18 + $0xd90] sm:$0xff] }
 0x406   : > { %v737_v54 = vld [vmem:[%s3809_s20 + $0xfd0] sm:$0xff] }
 0x407   : > { %v1742_v8 = vadd.f32 %v1741_v2, %v718_v62  ;;  %v2708_v62 = vmul.f32 %v6765_v24, %v6765_v24  ;;  %v3217_v0 = vadd.f32 %v3216_v58, %v2706_v50  ;;  %v2203_v2 = vadd.f32 %v2202_v60, %v6842_v11  ;;  %v6856_v24 = vld [vmem:[%s3816_s18 + $0xd98] sm:$0xff] }
 0x408   : > { %v738_v60 = vld [vmem:[%s3809_s20 + $0xfd8] sm:$0xff] }
 0x409   : > { %v1743_v14 = vadd.f32 %v1742_v8, %v719_v4  ;;  %v2709_v4 = vmul.f32 %v6772_v31, %v6772_v31  ;;  %v3218_v6 = vadd.f32 %v3217_v0, %v2707_v56  ;;  %v2204_v8 = vadd.f32 %v2203_v2, %v6849_v17  ;;  %v6863_v31 = vld [vmem:[%s3816_s18 + $0xda0] sm:$0xff] }
 0x40a   : > { %v739_v2 = vld [vmem:[%s3809_s20 + $0xfe0] sm:$0xff] }
 0x40b   : > { %v1744_v20 = vadd.f32 %v1743_v14, %v720_v10  ;;  %v2710_v10 = vmul.f32 %v6779_v37, %v6779_v37  ;;  %v3219_v12 = vadd.f32 %v3218_v6, %v2708_v62  ;;  %v2205_v14 = vadd.f32 %v2204_v8, %v6856_v24  ;;  %v6870_v37 = vld [vmem:[%s3816_s18 + $0xda8] sm:$0xff] }
 0x40c   : > { %v740_v8 = vld [vmem:[%s3809_s20 + $0xfe8] sm:$0xff] }
 0x40d   : > { %v1745_v27 = vadd.f32 %v1744_v20, %v721_v16  ;;  %v2711_v16 = vmul.f32 %v6786_v44, %v6786_v44  ;;  %v3220_v18 = vadd.f32 %v3219_v12, %v2709_v4  ;;  %v2206_v20 = vadd.f32 %v2205_v14, %v6863_v31  ;;  %v6877_v44 = vld [vmem:[%s3816_s18 + $0xdb0] sm:$0xff] }
 0x40e   : > { %v741_v14 = vld [vmem:[%s3809_s20 + $0xff0] sm:$0xff] }
 0x40f   : > { %v1746_v33 = vadd.f32 %v1745_v27, %v722_v23  ;;  %v2712_v23 = vmul.f32 %v6793_v38, %v6793_v38  ;;  %v3221_v22 = vadd.f32 %v3220_v18, %v2710_v10  ;;  %v2207_v27 = vadd.f32 %v2206_v20, %v6870_v37  ;;  %v6884_v38 = vld [vmem:[%s3816_s18 + $0xdb8] sm:$0xff] }
 0x410   : > { %v742_v20 = vld [vmem:[%s3809_s20 + $0xff8] sm:$0xff] }
 0x411   : > { %v1747_v40 = vadd.f32 %v1746_v33, %v723_v29  ;;  %v2713_v29 = vmul.f32 %v6800_v42, %v6800_v42  ;;  %v3222_v26 = vadd.f32 %v3221_v22, %v2711_v16  ;;  %v2208_v33 = vadd.f32 %v2207_v27, %v6877_v44  ;;  %v6891_v42 = vld [vmem:[%s3816_s18 + $0xdc0] sm:$0xff] }
 0x412   : > { %v1191_v27 = vld [vmem:[%s3816_s18 + $0xe00] sm:$0xff] }
 0x413   : > { %v1748_v47 = vadd.f32 %v1747_v40, %v724_v36  ;;  %v2714_v36 = vmul.f32 %v6807_v46, %v6807_v46  ;;  %v3223_v30 = vadd.f32 %v3222_v26, %v2712_v23  ;;  %v2209_v40 = vadd.f32 %v2208_v33, %v6884_v38  ;;  %v1184_v46 = vld [vmem:[%s3816_s18 + $0xdc8] sm:$0xff] }
 0x414   : > { %v2724_v33 = vmul.f32 %v6877_v44, %v6877_v44 }
 0x415   : > { %v1749_v53 = vadd.f32 %v1748_v47, %v725_v43  ;;  %v2715_v43 = vmul.f32 %v6814_v52, %v6814_v52  ;;  %v3224_v34 = vadd.f32 %v3223_v30, %v2713_v29  ;;  %v2210_v47 = vadd.f32 %v2209_v40, %v6891_v42  ;;  %v1194_v40 = vld [vmem:[%s3816_s18 + $0xe18] sm:$0xff] }
 0x416   : > { %v2717_v52 = vmul.f32 %v6828_v63, %v6828_v63  ;;  %v2719_v63 = vmul.f32 %v6842_v11, %v6842_v11  ;;  %v2721_v11 = vmul.f32 %v6856_v24, %v6856_v24  ;;  %v2725_v30 = vmul.f32 %v6884_v38, %v6884_v38  ;;  %v1196_v38 = vld [vmem:[%s3816_s18 + $0xe28] sm:$0xff] }
 0x417   : > { %v1750_v59 = vadd.f32 %v1749_v53, %v726_v49  ;;  %v2716_v49 = vmul.f32 %v6821_v57, %v6821_v57  ;;  %v3225_v50 = vadd.f32 %v3224_v34, %v2714_v36  ;;  %v2211_v53 = vadd.f32 %v2210_v47, %v1184_v46  ;;  %v1195_v34 = vld [vmem:[%s3816_s18 + $0xe20] sm:$0xff] }
 0x418   : > { %v2718_v57 = vmul.f32 %v6835_v5, %v6835_v5  ;;  %v2720_v5 = vmul.f32 %v6849_v17, %v6849_v17  ;;  %v2722_v17 = vmul.f32 %v6863_v31, %v6863_v31  ;;  %v1193_v31 = vld [vmem:[%s3816_s18 + $0xe10] sm:$0xff] }
 0x419   : > { %v1751_v1 = vadd.f32 %v1750_v59, %v727_v55  ;;  %v1185_v55 = vld [vmem:[%s3816_s18 + $0xdd0] sm:$0xff]  ;;  %v3226_v56 = vadd.f32 %v3225_v50, %v2715_v43 }
 0x41a   : > { %v2212_v59 = vadd.f32 %v2211_v53, %v1185_v55  ;;  %v1197_v53 = vld [vmem:[%s3816_s18 + $0xe30] sm:$0xff] }
 0x41b   : > { %v1752_v7 = vadd.f32 %v1751_v1, %v728_v61  ;;  %v1186_v61 = vld [vmem:[%s3816_s18 + $0xdd8] sm:$0xff]  ;;  %v3227_v62 = vadd.f32 %v3226_v56, %v2716_v49  ;;  %v2728_v49 = vmul.f32 %v1185_v55, %v1185_v55 }
 0x41c   : > { %v2213_v1 = vadd.f32 %v2212_v59, %v1186_v61 }
 0x41d   : > { %v1753_v13 = vadd.f32 %v1752_v7, %v729_v3  ;;  %v1187_v3 = vld [vmem:[%s3816_s18 + $0xde0] sm:$0xff]  ;;  %v3228_v4 = vadd.f32 %v3227_v62, %v2717_v52 }
 0x41e   : > { %v2214_v7 = vadd.f32 %v2213_v1, %v1187_v3  ;;  %v1200_v1 = vld [vmem:[%s3816_s18 + $0xe48] sm:$0xff] }
 0x41f   : > { %v1754_v19 = vadd.f32 %v1753_v13, %v730_v9  ;;  %v1188_v9 = vld [vmem:[%s3816_s18 + $0xde8] sm:$0xff]  ;;  %v3229_v10 = vadd.f32 %v3228_v4, %v2718_v57  ;;  %v1199_v57 = vld [vmem:[%s3816_s18 + $0xe40] sm:$0xff]  ;;  %v1201_v4 = vld [vmem:[%s3816_s18 + $0xe50] sm:$0xff] }
 0x420   : > { %v2215_v13 = vadd.f32 %v2214_v7, %v1188_v9 }
 0x421   : > { %v1755_v25 = vadd.f32 %v1754_v19, %v731_v15  ;;  %v1189_v15 = vld [vmem:[%s3816_s18 + $0xdf0] sm:$0xff]  ;;  %v3230_v16 = vadd.f32 %v3229_v10, %v2719_v63 }
 0x422   : > { %v2216_v19 = vadd.f32 %v2215_v13, %v1189_v15  ;;  %v2732_v55 = vmul.f32 %v1189_v15, %v1189_v15  ;;  %v2736_v15 = vmul.f32 %v1193_v31, %v1193_v31 }
 0x423   : > { %v1756_v32 = vadd.f32 %v1755_v25, %v732_v21  ;;  %v1190_v21 = vld [vmem:[%s3816_s18 + $0xdf8] sm:$0xff]  ;;  %v3231_v23 = vadd.f32 %v3230_v16, %v2720_v5 }
 0x424   : > { %v2217_v25 = vadd.f32 %v2216_v19, %v1190_v21  ;;  %v1205_v19 = vld [vmem:[%s3816_s18 + $0xe70] sm:$0xff] }
 0x425   : > { %v1757_v39 = vadd.f32 %v1756_v32, %v733_v28  ;;  %v2723_v28 = vmul.f32 %v6870_v37, %v6870_v37  ;;  %v3232_v24 = vadd.f32 %v3231_v23, %v2721_v11  ;;  %v1192_v32 = vld [vmem:[%s3816_s18 + $0xe08] sm:$0xff]  ;;  %v1206_v23 = vld [vmem:[%s3816_s18 + $0xe78] sm:$0xff] }
 0x426   : > { %v2218_v26 = vadd.f32 %v2217_v25, %v1191_v27  ;;  %v1204_v11 = vld [vmem:[%s3816_s18 + $0xe68] sm:$0xff] }
 0x427   : > { %v1758_v45 = vadd.f32 %v1757_v39, %v734_v35  ;;  %v3233_v35 = vadd.f32 %v3232_v24, %v2722_v17  ;;  %v2739_v24 = vmul.f32 %v1196_v38, %v1196_v38 }
 0x428   : > { %v2219_v36 = vadd.f32 %v2218_v26, %v1192_v32 }
 0x429   : > { %v1759_v51 = vadd.f32 %v1758_v45, %v735_v41  ;;  %v3234_v39 = vadd.f32 %v3233_v35, %v2723_v28  ;;  %v2726_v41 = vmul.f32 %v6891_v42, %v6891_v42  ;;  %v2727_v45 = vmul.f32 %v1184_v46, %v1184_v46  ;;  %v1207_v28 = vld [vmem:[%s3816_s18 + $0xe80] sm:$0xff] }
 0x42a   : > { %v2220_v37 = vadd.f32 %v2219_v36, %v1193_v31  ;;  %v2730_v42 = vmul.f32 %v1187_v3, %v1187_v3  ;;  %v2731_v46 = vmul.f32 %v1188_v9, %v1188_v9  ;;  %v2734_v3 = vmul.f32 %v1191_v27, %v1191_v27  ;;  %v1209_v31 = vld [vmem:[%s3816_s18 + $0xe90] sm:$0xff] }
 0x42b   : > { %v1760_v58 = vadd.f32 %v1759_v51, %v736_v48  ;;  %v3235_v44 = vadd.f32 %v3234_v39, %v2724_v33  ;;  %v2735_v9 = vmul.f32 %v1192_v32, %v1192_v32  ;;  %v1208_v32 = vld [vmem:[%s3816_s18 + $0xe88] sm:$0xff]  ;;  %v2740_v33 = vmul.f32 %v1197_v53, %v1197_v53 }
 0x42c   : > { %v2221_v43 = vadd.f32 %v2220_v37, %v1194_v40 }
 0x42d   : > { %v1761_v0 = vadd.f32 %v1760_v58, %v737_v54  ;;  %v3236_v47 = vadd.f32 %v3235_v44, %v2725_v30  ;;  %v2729_v54 = vmul.f32 %v1186_v61, %v1186_v61  ;;  %v1198_v58 = vld [vmem:[%s3816_s18 + $0xe38] sm:$0xff]  ;;  %v2733_v61 = vmul.f32 %v1190_v21, %v1190_v21 }
 0x42e   : > { %v2222_v48 = vadd.f32 %v2221_v43, %v1195_v34  ;;  %v2741_v30 = vmul.f32 %v1198_v58, %v1198_v58 }
 0x42f   : > { %v1762_v6 = vadd.f32 %v1761_v0, %v738_v60  ;;  %v3237_v50 = vadd.f32 %v3236_v47, %v2726_v41  ;;  %v2742_v41 = vmul.f32 %v1199_v57, %v1199_v57 }
 0x430   : > { %v2223_v51 = vadd.f32 %v2222_v48, %v1196_v38  ;;  %v1212_v38 = vld [vmem:[%s3816_s18 + $0xea8] sm:$0xff] }
 0x431   : > { %v1763_v12 = vadd.f32 %v1762_v6, %v739_v2  ;;  %v3238_v52 = vadd.f32 %v3237_v50, %v2727_v45  ;;  %v2743_v45 = vmul.f32 %v1200_v1, %v1200_v1 }
 0x432   : > { %v2224_v56 = vadd.f32 %v2223_v51, %v1197_v53  ;;  %v1213_v53 = vld [vmem:[%s3816_s18 + $0xeb0] sm:$0xff] }
 0x433   : > { %v1764_v18 = vadd.f32 %v1763_v12, %v740_v8  ;;  %v3239_v59 = vadd.f32 %v3238_v52, %v2728_v49  ;;  %v1202_v8 = vld [vmem:[%s3816_s18 + $0xe58] sm:$0xff]  ;;  %v1203_v12 = vld [vmem:[%s3816_s18 + $0xe60] sm:$0xff]  ;;  %v2744_v49 = vmul.f32 %v1201_v4, %v1201_v4 }
 0x434   : > { %v2225_v60 = vadd.f32 %v2224_v56, %v1198_v58  ;;  %v1214_v58 = vld [vmem:[%s3816_s18 + $0xeb8] sm:$0xff] }
 0x435   : > { %v1765_v22 = vadd.f32 %v1764_v18, %v741_v14  ;;  %v3240_v62 = vadd.f32 %v3239_v59, %v2729_v54  ;;  %v2745_v54 = vmul.f32 %v1202_v8, %v1202_v8 }
 0x436   : > { %v2226_v0 = vadd.f32 %v2225_v60, %v1199_v57  ;;  %v1215_v57 = vld [vmem:[%s3816_s18 + $0xec0] sm:$0xff] }
 0x437   : > { %v1766_v29 = vadd.f32 %v1765_v22, %v742_v20  ;;  %v3241_v2 = vadd.f32 %v3240_v62, %v2730_v42  ;;  %v2737_v20 = vmul.f32 %v1194_v40, %v1194_v40  ;;  %v2738_v22 = vmul.f32 %v1195_v34, %v1195_v34  ;;  %v1210_v40 = vld [vmem:[%s3816_s18 + $0xe98] sm:$0xff]  ;;  %v1211_v34 = vld [vmem:[%s3816_s18 + $0xea0] sm:$0xff] }
 0x438   : > { %v2227_v63 = vadd.f32 %v2226_v0, %v1200_v1  ;;  %v2746_v42 = vmul.f32 %v1203_v12, %v1203_v12  ;;  %v1216_v1 = vld [vmem:[%s3816_s18 + $0xec8] sm:$0xff] }
 0x439   : > { %1768 = vst [vmem:[%s6934_s19] sm:$0xff] %v1766_v29  ;;  %v3242_v6 = vadd.f32 %v3241_v2, %v2731_v46  ;;  %v2747_v46 = vmul.f32 %v1204_v11, %v1204_v11 }
 0x43a   : > { %v2228_v7 = vadd.f32 %v2227_v63, %v1201_v4  ;;  %v1217_v4 = vld [vmem:[%s3816_s18 + $0xed0] sm:$0xff] }
 0x43b   : > { %v3243_v5 = vadd.f32 %v3242_v6, %v2732_v55  ;;  %v2748_v55 = vmul.f32 %v1205_v19, %v1205_v19 }
 0x43c   : > { %v2229_v10 = vadd.f32 %v2228_v7, %v1202_v8  ;;  %v1218_v8 = vld [vmem:[%s3816_s18 + $0xed8] sm:$0xff] }
 0x43d   : > { %v3244_v13 = vadd.f32 %v3243_v5, %v2733_v61  ;;  %v2749_v61 = vmul.f32 %v1206_v23, %v1206_v23 }
 0x43e   : > { %v2230_v14 = vadd.f32 %v2229_v10, %v1203_v12  ;;  %v1219_v12 = vld [vmem:[%s3816_s18 + $0xee0] sm:$0xff] }
 0x43f   : > { %v3245_v16 = vadd.f32 %v3244_v13, %v2734_v3  ;;  %v2750_v3 = vmul.f32 %v1207_v28, %v1207_v28 }
 0x440   : > { %v2231_v18 = vadd.f32 %v2230_v14, %v1204_v11  ;;  %v1220_v11 = vld [vmem:[%s3816_s18 + $0xee8] sm:$0xff] }
 0x441   : > { %v3246_v21 = vadd.f32 %v3245_v16, %v2735_v9  ;;  %v2751_v9 = vmul.f32 %v1208_v32, %v1208_v32 }
 0x442   : > { %v2232_v17 = vadd.f32 %v2231_v18, %v1205_v19  ;;  %v1221_v19 = vld [vmem:[%s3816_s18 + $0xef0] sm:$0xff] }
 0x443   : > { %v3247_v25 = vadd.f32 %v3246_v21, %v2736_v15  ;;  %v2752_v15 = vmul.f32 %v1209_v31, %v1209_v31 }
 0x444   : > { %v2233_v27 = vadd.f32 %v2232_v17, %v1206_v23  ;;  %v1222_v23 = vld [vmem:[%s3816_s18 + $0xef8] sm:$0xff] }
 0x445   : > { %v3248_v29 = vadd.f32 %v3247_v25, %v2737_v20  ;;  %v2753_v20 = vmul.f32 %v1210_v40, %v1210_v40 }
 0x446   : > { %v2234_v26 = vadd.f32 %v2233_v27, %v1207_v28  ;;  %v1223_v28 = vld [vmem:[%s3816_s18 + $0xf00] sm:$0xff] }
 0x447   : > { %v3249_v35 = vadd.f32 %v3248_v29, %v2738_v22  ;;  %v2754_v22 = vmul.f32 %v1211_v34, %v1211_v34 }
 0x448   : > { %v2235_v36 = vadd.f32 %v2234_v26, %v1208_v32  ;;  %v1224_v32 = vld [vmem:[%s3816_s18 + $0xf08] sm:$0xff] }
 0x449   : > { %v3250_v39 = vadd.f32 %v3249_v35, %v2739_v24  ;;  %v2755_v24 = vmul.f32 %v1212_v38, %v1212_v38 }
 0x44a   : > { %v2236_v37 = vadd.f32 %v2235_v36, %v1209_v31  ;;  %v1225_v31 = vld [vmem:[%s3816_s18 + $0xf10] sm:$0xff] }
 0x44b   : > { %v3251_v44 = vadd.f32 %v3250_v39, %v2740_v33  ;;  %v2756_v33 = vmul.f32 %v1213_v53, %v1213_v53 }
 0x44c   : > { %v2237_v43 = vadd.f32 %v2236_v37, %v1210_v40  ;;  %v1226_v40 = vld [vmem:[%s3816_s18 + $0xf18] sm:$0xff] }
 0x44d   : > { %v3252_v47 = vadd.f32 %v3251_v44, %v2741_v30  ;;  %v2757_v30 = vmul.f32 %v1214_v58, %v1214_v58 }
 0x44e   : > { %v2238_v48 = vadd.f32 %v2237_v43, %v1211_v34  ;;  %v1227_v34 = vld [vmem:[%s3816_s18 + $0xf20] sm:$0xff] }
 0x44f   : > { %v3253_v50 = vadd.f32 %v3252_v47, %v2742_v41  ;;  %v2758_v41 = vmul.f32 %v1215_v57, %v1215_v57 }
 0x450   : > { %v2239_v51 = vadd.f32 %v2238_v48, %v1212_v38  ;;  %v1228_v38 = vld [vmem:[%s3816_s18 + $0xf28] sm:$0xff] }
 0x451   : > { %v3254_v52 = vadd.f32 %v3253_v50, %v2743_v45  ;;  %v2759_v45 = vmul.f32 %v1216_v1, %v1216_v1 }
 0x452   : > { %v2240_v56 = vadd.f32 %v2239_v51, %v1213_v53  ;;  %v1229_v53 = vld [vmem:[%s3816_s18 + $0xf30] sm:$0xff] }
 0x453   : > { %v3255_v59 = vadd.f32 %v3254_v52, %v2744_v49  ;;  %v2760_v49 = vmul.f32 %v1217_v4, %v1217_v4 }
 0x454   : > { %v2241_v60 = vadd.f32 %v2240_v56, %v1214_v58  ;;  %v1230_v58 = vld [vmem:[%s3816_s18 + $0xf38] sm:$0xff] }
 0x455   : > { %v3256_v62 = vadd.f32 %v3255_v59, %v2745_v54  ;;  %v2761_v54 = vmul.f32 %v1218_v8, %v1218_v8 }
 0x456   : > { %v2242_v0 = vadd.f32 %v2241_v60, %v1215_v57  ;;  %v1231_v57 = vld [vmem:[%s3816_s18 + $0xf40] sm:$0xff] }
 0x457   : > { %v3257_v2 = vadd.f32 %v3256_v62, %v2746_v42  ;;  %v2762_v42 = vmul.f32 %v1219_v12, %v1219_v12 }
 0x458   : > { %v2243_v63 = vadd.f32 %v2242_v0, %v1216_v1  ;;  %v1232_v1 = vld [vmem:[%s3816_s18 + $0xf48] sm:$0xff] }
 0x459   : > { %v3258_v6 = vadd.f32 %v3257_v2, %v2747_v46  ;;  %v2763_v46 = vmul.f32 %v1220_v11, %v1220_v11 }
 0x45a   : > { %v2244_v7 = vadd.f32 %v2243_v63, %v1217_v4  ;;  %v1233_v4 = vld [vmem:[%s3816_s18 + $0xf50] sm:$0xff] }
 0x45b   : > { %v3259_v5 = vadd.f32 %v3258_v6, %v2748_v55  ;;  %v2764_v55 = vmul.f32 %v1221_v19, %v1221_v19 }
 0x45c   : > { %v2245_v10 = vadd.f32 %v2244_v7, %v1218_v8  ;;  %v1234_v8 = vld [vmem:[%s3816_s18 + $0xf58] sm:$0xff] }
 0x45d   : > { %v3260_v13 = vadd.f32 %v3259_v5, %v2749_v61  ;;  %v2765_v61 = vmul.f32 %v1222_v23, %v1222_v23 }
 0x45e   : > { %v2246_v14 = vadd.f32 %v2245_v10, %v1219_v12  ;;  %v1235_v12 = vld [vmem:[%s3816_s18 + $0xf60] sm:$0xff] }
 0x45f   : > { %v3261_v16 = vadd.f32 %v3260_v13, %v2750_v3  ;;  %v2766_v3 = vmul.f32 %v1223_v28, %v1223_v28 }
 0x460   : > { %v2247_v18 = vadd.f32 %v2246_v14, %v1220_v11  ;;  %v1236_v11 = vld [vmem:[%s3816_s18 + $0xf68] sm:$0xff] }
 0x461   : > { %v3262_v21 = vadd.f32 %v3261_v16, %v2751_v9  ;;  %v2767_v9 = vmul.f32 %v1224_v32, %v1224_v32 }
 0x462   : > { %v2248_v17 = vadd.f32 %v2247_v18, %v1221_v19  ;;  %v1237_v19 = vld [vmem:[%s3816_s18 + $0xf70] sm:$0xff] }
 0x463   : > { %v3263_v25 = vadd.f32 %v3262_v21, %v2752_v15  ;;  %v2768_v15 = vmul.f32 %v1225_v31, %v1225_v31 }
 0x464   : > { %v2249_v27 = vadd.f32 %v2248_v17, %v1222_v23  ;;  %v1238_v23 = vld [vmem:[%s3816_s18 + $0xf78] sm:$0xff] }
 0x465   : > { %v3264_v29 = vadd.f32 %v3263_v25, %v2753_v20  ;;  %v2769_v20 = vmul.f32 %v1226_v40, %v1226_v40 }
 0x466   : > { %v2250_v26 = vadd.f32 %v2249_v27, %v1223_v28  ;;  %v1239_v28 = vld [vmem:[%s3816_s18 + $0xf80] sm:$0xff] }
 0x467   : > { %v3265_v35 = vadd.f32 %v3264_v29, %v2754_v22  ;;  %v2770_v22 = vmul.f32 %v1227_v34, %v1227_v34 }
 0x468   : > { %v2251_v36 = vadd.f32 %v2250_v26, %v1224_v32  ;;  %v1240_v32 = vld [vmem:[%s3816_s18 + $0xf88] sm:$0xff] }
 0x469   : > { %v3266_v39 = vadd.f32 %v3265_v35, %v2755_v24  ;;  %v2771_v24 = vmul.f32 %v1228_v38, %v1228_v38 }
 0x46a   : > { %v2252_v37 = vadd.f32 %v2251_v36, %v1225_v31  ;;  %v1241_v31 = vld [vmem:[%s3816_s18 + $0xf90] sm:$0xff] }
 0x46b   : > { %v3267_v44 = vadd.f32 %v3266_v39, %v2756_v33  ;;  %v2772_v33 = vmul.f32 %v1229_v53, %v1229_v53 }
 0x46c   : > { %v2253_v43 = vadd.f32 %v2252_v37, %v1226_v40  ;;  %v1242_v40 = vld [vmem:[%s3816_s18 + $0xf98] sm:$0xff] }
 0x46d   : > { %v3268_v47 = vadd.f32 %v3267_v44, %v2757_v30  ;;  %v2773_v30 = vmul.f32 %v1230_v58, %v1230_v58 }
 0x46e   : > { %v2254_v48 = vadd.f32 %v2253_v43, %v1227_v34  ;;  %v1243_v34 = vld [vmem:[%s3816_s18 + $0xfa0] sm:$0xff] }
 0x46f   : > { %v3269_v50 = vadd.f32 %v3268_v47, %v2758_v41  ;;  %v2774_v41 = vmul.f32 %v1231_v57, %v1231_v57 }
 0x470   : > { %v2255_v51 = vadd.f32 %v2254_v48, %v1228_v38  ;;  %v1244_v38 = vld [vmem:[%s3816_s18 + $0xfa8] sm:$0xff] }
 0x471   : > { %v3270_v52 = vadd.f32 %v3269_v50, %v2759_v45  ;;  %v2775_v45 = vmul.f32 %v1232_v1, %v1232_v1 }
 0x472   : > { %v2256_v56 = vadd.f32 %v2255_v51, %v1229_v53  ;;  %v1245_v53 = vld [vmem:[%s3816_s18 + $0xfb0] sm:$0xff] }
 0x473   : > { %v3271_v59 = vadd.f32 %v3270_v52, %v2760_v49  ;;  %v2776_v49 = vmul.f32 %v1233_v4, %v1233_v4 }
 0x474   : > { %v2257_v60 = vadd.f32 %v2256_v56, %v1230_v58  ;;  %v1246_v58 = vld [vmem:[%s3816_s18 + $0xfb8] sm:$0xff] }
 0x475   : > { %v3272_v62 = vadd.f32 %v3271_v59, %v2761_v54  ;;  %v2777_v54 = vmul.f32 %v1234_v8, %v1234_v8 }
 0x476   : > { %v2258_v0 = vadd.f32 %v2257_v60, %v1231_v57  ;;  %v1247_v57 = vld [vmem:[%s3816_s18 + $0xfc0] sm:$0xff] }
 0x477   : > { %v3273_v2 = vadd.f32 %v3272_v62, %v2762_v42  ;;  %v2778_v42 = vmul.f32 %v1235_v12, %v1235_v12 }
 0x478   : > { %v2259_v63 = vadd.f32 %v2258_v0, %v1232_v1  ;;  %v1248_v1 = vld [vmem:[%s3816_s18 + $0xfc8] sm:$0xff] }
 0x479   : > { %v3274_v6 = vadd.f32 %v3273_v2, %v2763_v46  ;;  %v2779_v46 = vmul.f32 %v1236_v11, %v1236_v11 }
 0x47a   : > { %v2260_v7 = vadd.f32 %v2259_v63, %v1233_v4  ;;  %v1249_v4 = vld [vmem:[%s3816_s18 + $0xfd0] sm:$0xff] }
 0x47b   : > { %v3275_v5 = vadd.f32 %v3274_v6, %v2764_v55  ;;  %v2780_v55 = vmul.f32 %v1237_v19, %v1237_v19 }
 0x47c   : > { %v2261_v10 = vadd.f32 %v2260_v7, %v1234_v8  ;;  %v1250_v8 = vld [vmem:[%s3816_s18 + $0xfd8] sm:$0xff] }
 0x47d   : > { %v3276_v13 = vadd.f32 %v3275_v5, %v2765_v61  ;;  %v2781_v61 = vmul.f32 %v1238_v23, %v1238_v23 }
 0x47e   : > { %v2262_v14 = vadd.f32 %v2261_v10, %v1235_v12  ;;  %v1251_v12 = vld [vmem:[%s3816_s18 + $0xfe0] sm:$0xff] }
 0x47f   : > { %v3277_v16 = vadd.f32 %v3276_v13, %v2766_v3  ;;  %v2782_v3 = vmul.f32 %v1239_v28, %v1239_v28 }
 0x480   : > { %v2263_v18 = vadd.f32 %v2262_v14, %v1236_v11  ;;  %v1252_v11 = vld [vmem:[%s3816_s18 + $0xfe8] sm:$0xff] }
 0x481   : > { %v3278_v21 = vadd.f32 %v3277_v16, %v2767_v9  ;;  %v2783_v9 = vmul.f32 %v1240_v32, %v1240_v32 }
 0x482   : > { %v2264_v17 = vadd.f32 %v2263_v18, %v1237_v19  ;;  %v1253_v19 = vld [vmem:[%s3816_s18 + $0xff0] sm:$0xff] }
 0x483   : > { %v3279_v25 = vadd.f32 %v3278_v21, %v2768_v15  ;;  %v2784_v15 = vmul.f32 %v1241_v31, %v1241_v31 }
 0x484   : > { %v2265_v27 = vadd.f32 %v2264_v17, %v1238_v23  ;;  %v1254_v23 = vld [vmem:[%s3816_s18 + $0xff8] sm:$0xff] }
 0x485   : > { %v3280_v29 = vadd.f32 %v3279_v25, %v2769_v20  ;;  %v2785_v20 = vmul.f32 %v1242_v40, %v1242_v40 }
 0x486   : > { %v2266_v26 = vadd.f32 %v2265_v27, %v1239_v28  ;;  %v2787_v28 = vmul.f32 %v1244_v38, %v1244_v38 }
 0x487   : > { %v3281_v35 = vadd.f32 %v3280_v29, %v2770_v22  ;;  %v2786_v22 = vmul.f32 %v1243_v34, %v1243_v34  ;;  %v2788_v29 = vmul.f32 %v1245_v53, %v1245_v53 }
 0x488   : > { %v2267_v36 = vadd.f32 %v2266_v26, %v1240_v32  ;;  %v2789_v32 = vmul.f32 %v1246_v58, %v1246_v58 }
 0x489   : > { %v3282_v39 = vadd.f32 %v3281_v35, %v2771_v24  ;;  %v2790_v35 = vmul.f32 %v1247_v57, %v1247_v57 }
 0x48a   : > { %v2268_v37 = vadd.f32 %v2267_v36, %v1241_v31  ;;  %v2791_v31 = vmul.f32 %v1248_v1, %v1248_v1 }
 0x48b   : > { %v3283_v44 = vadd.f32 %v3282_v39, %v2772_v33  ;;  %v2792_v39 = vmul.f32 %v1249_v4, %v1249_v4 }
 0x48c   : > { %v2269_v43 = vadd.f32 %v2268_v37, %v1242_v40  ;;  %v2793_v40 = vmul.f32 %v1250_v8, %v1250_v8 }
 0x48d   : > { %v3284_v47 = vadd.f32 %v3283_v44, %v2773_v30  ;;  %v2794_v44 = vmul.f32 %v1251_v12, %v1251_v12 }
 0x48e   : > { %v2270_v48 = vadd.f32 %v2269_v43, %v1243_v34  ;;  %v2795_v34 = vmul.f32 %v1252_v11, %v1252_v11 }
 0x48f   : > { %v3285_v50 = vadd.f32 %v3284_v47, %v2774_v41  ;;  %v2796_v47 = vmul.f32 %v1253_v19, %v1253_v19 }
 0x490   : > { %v2271_v51 = vadd.f32 %v2270_v48, %v1244_v38  ;;  %v2797_v38 = vmul.f32 %v1254_v23, %v1254_v23 }
 0x491   : > { %v3286_v52 = vadd.f32 %v3285_v50, %v2775_v45 }
 0x492   : > { %v2272_v56 = vadd.f32 %v2271_v51, %v1245_v53 }
 0x493   : > { %v3287_v59 = vadd.f32 %v3286_v52, %v2776_v49 }
 0x494   : > { %v2273_v60 = vadd.f32 %v2272_v56, %v1246_v58 }
 0x495   : > { %v3288_v62 = vadd.f32 %v3287_v59, %v2777_v54 }
 0x496   : > { %v2274_v0 = vadd.f32 %v2273_v60, %v1247_v57 }
 0x497   : > { %v3289_v2 = vadd.f32 %v3288_v62, %v2778_v42 }
 0x498   : > { %v2275_v63 = vadd.f32 %v2274_v0, %v1248_v1 }
 0x499   : > { %v3290_v6 = vadd.f32 %v3289_v2, %v2779_v46 }
 0x49a   : > { %v2276_v7 = vadd.f32 %v2275_v63, %v1249_v4 }
 0x49b   : > { %v3291_v5 = vadd.f32 %v3290_v6, %v2780_v55 }
 0x49c   : > { %v2277_v10 = vadd.f32 %v2276_v7, %v1250_v8 }
 0x49d   : > { %v3292_v13 = vadd.f32 %v3291_v5, %v2781_v61 }
 0x49e   : > { %v2278_v14 = vadd.f32 %v2277_v10, %v1251_v12 }
 0x49f   : > { %v3293_v16 = vadd.f32 %v3292_v13, %v2782_v3 }
 0x4a0   : > { %v2279_v18 = vadd.f32 %v2278_v14, %v1252_v11 }
 0x4a1   : > { %v3294_v21 = vadd.f32 %v3293_v16, %v2783_v9 }
 0x4a2   : > { %v2280_v17 = vadd.f32 %v2279_v18, %v1253_v19 }
 0x4a3   : > { %v3295_v25 = vadd.f32 %v3294_v21, %v2784_v15 }
 0x4a4   : > { %v2281_v27 = vadd.f32 %v2280_v17, %v1254_v23 }
 0x4a5   : > { %v3296_v24 = vadd.f32 %v3295_v25, %v2785_v20 }
 0x4a6   : > { %3445 = vst [vmem:[%s6934_s19 + $0x8] sm:$0xff] %v2281_v27 }
 0x4a7   : > { %v3297_v26 = vadd.f32 %v3296_v24, %v2786_v22 }
 0x4a9   : > { %v3298_v33 = vadd.f32 %v3297_v26, %v2787_v28 }
 0x4ab   : > { %v3299_v36 = vadd.f32 %v3298_v33, %v2788_v29 }
 0x4ad   : > { %v3300_v30 = vadd.f32 %v3299_v36, %v2789_v32 }
 0x4af   : > { %v3301_v37 = vadd.f32 %v3300_v30, %v2790_v35 }
 0x4b1   : > { %v3302_v41 = vadd.f32 %v3301_v37, %v2791_v31 }
 0x4b3   : > { %v3303_v43 = vadd.f32 %v3302_v41, %v2792_v39 }
 0x4b5   : > { %v3304_v45 = vadd.f32 %v3303_v43, %v2793_v40 }
 0x4b7   : > { %v3305_v48 = vadd.f32 %v3304_v45, %v2794_v44 }
 0x4b9   : > { %v3306_v49 = vadd.f32 %v3305_v48, %v2795_v34 }
 0x4bb   : > { %v3307_v50 = vadd.f32 %v3306_v49, %v2796_v47 }
 0x4bd   : > { %v3308_v51 = vadd.f32 %v3307_v50, %v2797_v38 }
 0x4bf   : > { %3447 = vst [vmem:[%s6934_s19 + $0x10] sm:$0xff] %v3308_v51 }
 0x4c0   : > { %3596 = shalt.err (!%p3593_p7)
}
 0x4c1   : > { %s3597_s27 = scalar_lea.hbm %s7006_s8, 384  ;;  %s3601_s20 = scalar_lea.hbm %s7059_s2, 768 }
 0x4c2   : > { %p3598_p10 = scmp.ne.s32.totalorder %s7006_s8, %s3597_s27  ;;  %p3602_p3 = scmp.lt.s32.totalorder %s7006_s8, %s7059_s2 }
 0x4c3   : > { %p3603_p8 = scmp.lt.s32.totalorder %s3601_s20, %s3597_s27 }
 0x4c4   : > { %p3599_p1 = pnand %p3598_p10, %p3742_p9 }
 0x4c5   : > { %p3604_p0 = por %p3603_p8, %p3602_p3 }
 0x4c6   : > { %p3600_p13 = pneg %p3599_p1 }
 0x4c8   : > { %p3605_p2 = pnand %p3604_p0, %p3600_p13 }
 0x4ca   : > { %3608 = shalt.err (!%p3605_p2)
}
 0x4cb   : > { %s3674_s21 = smov 128   ;;  %s3675_s19 = smov 8  }
 0x4cc   : > { %3459 = dma.vmem_to_hbm [thread:$0]  (%p3742_p9), %s7008_s29, 384, %s7006_s8, %s3312_s15, %s3674_s21, %s3674_s21, %s3675_s19  }
 0x4cd PF: > { %s3340_s28 = sand.u32 1, %s3647_s9   ;;  %p3469_p5 = pnand %p3434_p12, %p3749_p11 }
 0x4ce   : > { %s3341_s3 = scalar_lea.sflag [#allocation4], %s3340_s28 }
 0x4cf   : > { %p3470_p6 = pneg %p3469_p5 }
 0x4d1   : > { %3642 = dma.done.wait (%p3470_p6), %s3341_s3, 384  }
 0x4d2   : > { %3644 = vsyncadd (%p3470_p6), %s3341_s3, 4294966912  ;;  %s21_s14 = sadd.s32 1, %s3667_s14   ;;  %s7066_s9 = smov %s3651_s10 }
 0x4d3   : > { %p18_p4 = scmp.ge.s32.totalorder %s21_s14, 4   ;;  %s7067_s10 = smov %s3655_s11 }
 0x4d4   : > { %s7068_s11 = smov %s3747_s23  ;;  %s7069_s12 = smov %s3663_s13 }
 0x4d5   : > { %s7070_s13 = smov %s7072_s17  ;;  %20 = sbr.rel (!%p18_p4) target bundleno = 8 (0x8), region = 92 }
 0x4da   :  { %3346 = vsyncpa [#allocation3], 1 }
 0x4db   :  { %3348 = vsyncpa [#allocation3 + $0x1], 1 }
 0x4dc   :  { %3349 = vsyncpa [#allocation6], 1 }
 0x4dd   :  { %3351 = vsyncpa [#allocation6 + $0x1], 1 }
 0x4de   :  { %3352 = vsyncpa [#allocation4], 1 }
 0x4df   :  { %3354 = vsyncpa [#allocation4 + $0x1], 1 }

</bundles_post_ra>
